<compile_context>
chip_gen: v7x
topology: tpu7x:2x2x1
jax: 0.10.0
libtpu: 0.0.40
codegen_flags: <defaults>
</compile_context>

<pallas_src>
import math
import functools

import jax
import jax.numpy as jnp
from jax.experimental import pallas as pl
from jax.experimental.pallas import tpu as pltpu

MXU_DTYPE = jnp.bfloat16                 # MXU operand dtype (f32 accumulation)
ACT_DTYPE = jnp.bfloat16                 # inter-kernel activation dtype
_PARALLEL_1D = pltpu.CompilerParams(dimension_semantics=("parallel",))


# --------------------------- in-kernel helpers -----------------------------

def _layer_norm(z, gamma, beta, eps):
    """LayerNorm over the last axis (f32 math). gamma/beta are (1, E)."""
    mu = jnp.mean(z, axis=-1, keepdims=True)
    zc = z - mu
    var = jnp.mean(zc * zc, axis=-1, keepdims=True)
    return zc * jax.lax.rsqrt(var + eps) * gamma + beta


def _mha_core(q2d, k2d, v2d, nb, lq, lk, nhead, dh, scale):
    """Multi-head attention on flattened per-block projections.

    q2d: (nb*lq, nhead*dh) f32; k2d/v2d: (nb*lk, nhead*dh) f32.
    Head split/merge is done in-VMEM with static lane slices + concatenate,
    so the merged output stays lane-dense (nb*lq, E).
    """
    outs = []
    for h in range(nhead):                       # static loop, nhead is small
        sl = slice(h * dh, (h + 1) * dh)
        qh = q2d[:, sl].reshape(nb, lq, dh).astype(MXU_DTYPE)
        kh = k2d[:, sl].reshape(nb, lk, dh).astype(MXU_DTYPE)
        vh = v2d[:, sl].reshape(nb, lk, dh).astype(MXU_DTYPE)
        s = jnp.einsum("bqd,bkd->bqk", qh, kh,
                       preferred_element_type=jnp.float32) * scale
        m = jnp.max(s, axis=-1, keepdims=True)
        p = jnp.exp(s - m)
        denom = jnp.sum(p, axis=-1, keepdims=True)
        p = p * pl.reciprocal(denom, approx=True)          # EUP, not VPU div
        o = jnp.einsum("bqk,bkd->bqd", p.astype(MXU_DTYPE), vh,
                       preferred_element_type=jnp.float32)  # (nb, lq, dh)
        outs.append(o.reshape(nb * lq, dh))
    return jnp.concatenate(outs, axis=-1)        # (nb*lq, nhead*dh) f32


# ------------------------------ Pallas kernels ------------------------------

def _self_attn_block_kernel(x_ref, wqkv_ref, bqkv_ref, wo_ref, bo_ref,
                            g_ref, beta_ref, o_ref, *, nhead, scale, eps):
    """o = LayerNorm(x + OutProj(MHA(QKVProj(x)))) for a (Bblk, T, E) block."""
    nb, t, e = x_ref.shape
    dh = e // nhead
    x = x_ref[...].reshape(nb * t, e)
    res = x.astype(jnp.float32)
    qkv = jnp.dot(x.astype(MXU_DTYPE), wqkv_ref[...],
                  preferred_element_type=jnp.float32) + bqkv_ref[...]
    att = _mha_core(qkv[:, :e], qkv[:, e:2 * e], qkv[:, 2 * e:],
                    nb, t, t, nhead, dh, scale)
    y = jnp.dot(att.astype(MXU_DTYPE), wo_ref[...],
                preferred_element_type=jnp.float32) + bo_ref[...]
    out = _layer_norm(res + y, g_ref[...], beta_ref[...], eps)
    o_ref[...] = out.reshape(nb, t, e).astype(o_ref.dtype)


def _cross_attn_block_kernel(x_ref, mem_ref, wq_ref, bq_ref, wkv_ref, bkv_ref,
                             wo_ref, bo_ref, g_ref, beta_ref, o_ref,
                             *, nhead, scale, eps):
    """o = LayerNorm(x + OutProj(MHA(QProj(x), KVProj(mem))))."""
    nb, t, e = x_ref.shape
    s_len = mem_ref.shape[1]
    dh = e // nhead
    x = x_ref[...].reshape(nb * t, e)
    res = x.astype(jnp.float32)
    mem = mem_ref[...].reshape(nb * s_len, e)
    q = jnp.dot(x.astype(MXU_DTYPE), wq_ref[...],
                preferred_element_type=jnp.float32) + bq_ref[...]
    kv = jnp.dot(mem.astype(MXU_DTYPE), wkv_ref[...],
                 preferred_element_type=jnp.float32) + bkv_ref[...]
    att = _mha_core(q, kv[:, :e], kv[:, e:], nb, t, s_len, nhead, dh, scale)
    y = jnp.dot(att.astype(MXU_DTYPE), wo_ref[...],
                preferred_element_type=jnp.float32) + bo_ref[...]
    out = _layer_norm(res + y, g_ref[...], beta_ref[...], eps)
    o_ref[...] = out.reshape(nb, t, e).astype(o_ref.dtype)


def _ffn_block_kernel(x_ref, w1_ref, b1_ref, w2_ref, b2_ref,
                      g_ref, beta_ref, o_ref, *, eps):
    """o = LayerNorm(x + W2 @ relu(W1 @ x)); the hidden h never leaves VMEM."""
    x = x_ref[...]
    h = jnp.dot(x.astype(MXU_DTYPE), w1_ref[...],
                preferred_element_type=jnp.float32) + b1_ref[...]
    h = jnp.maximum(h, 0.0)
    y = jnp.dot(h.astype(MXU_DTYPE), w2_ref[...],
                preferred_element_type=jnp.float32) + b2_ref[...]
    out = _layer_norm(x.astype(jnp.float32) + y, g_ref[...], beta_ref[...], eps)
    o_ref[...] = out.astype(o_ref.dtype)


# ------------------------------ tiling helpers ------------------------------

def _batch_block(B, rows_per_elem, max_rows=2048, min_grid=2):
    """Largest divisor of B giving >= min_grid grid steps (v7x: 2 TensorCores),
    capped so one block carries at most max_rows sequence rows."""
    best = 1
    for blk in range(1, B + 1):
        if B % blk != 0 or blk * rows_per_elem > max_rows:
            continue
        if B // blk >= min_grid or B == 1:
            best = blk
    return best


def _row_tile(M, min_grid=2):
    """Largest sublane-aligned row tile that still yields >= min_grid steps."""
    for t in (1024, 512, 256, 128, 64, 32, 16, 8):
        if M % t == 0 and M // t >= min_grid:
            return t
    return M            # full-extent block (always legal), grid of 1


# ------------------------------ Pallas wrappers ------------------------------

def _self_attn_block(x_bt, p, gamma, beta, *, nhead, scale, eps, bblk):
    B, T, E = x_bt.shape
    kernel = functools.partial(_self_attn_block_kernel,
                               nhead=nhead, scale=scale, eps=eps)
    wspec = lambda shp: pl.BlockSpec(shp, lambda i: (0, 0))
    return pl.pallas_call(
        kernel,
        out_shape=jax.ShapeDtypeStruct((B, T, E), ACT_DTYPE),
        grid=(B // bblk,),
        in_specs=[
            pl.BlockSpec((bblk, T, E), lambda i: (i, 0, 0)),
            wspec((E, 3 * E)), wspec((1, 3 * E)),
            wspec((E, E)), wspec((1, E)),
            wspec((1, E)), wspec((1, E)),
        ],
        out_specs=pl.BlockSpec((bblk, T, E), lambda i: (i, 0, 0)),
        compiler_params=_PARALLEL_1D,
    )(x_bt, p["w_qkv"], p["b_qkv"].reshape(1, -1),
      p["w_o"], p["b_o"].reshape(1, -1),
      gamma.reshape(1, -1), beta.reshape(1, -1))


def _cross_attn_block(x1_bt, mem_bt, p, gamma, beta, *, nhead, scale, eps, bblk):
    B, T, E = x1_bt.shape
    S = mem_bt.shape[1]
    kernel = functools.partial(_cross_attn_block_kernel,
                               nhead=nhead, scale=scale, eps=eps)
    wspec = lambda shp: pl.BlockSpec(shp, lambda i: (0, 0))
    return pl.pallas_call(
        kernel,
        out_shape=jax.ShapeDtypeStruct((B, T, E), ACT_DTYPE),
        grid=(B // bblk,),
        in_specs=[
            pl.BlockSpec((bblk, T, E), lambda i: (i, 0, 0)),
            pl.BlockSpec((bblk, S, E), lambda i: (i, 0, 0)),
            wspec((E, E)), wspec((1, E)),
            wspec((E, 2 * E)), wspec((1, 2 * E)),
            wspec((E, E)), wspec((1, E)),
            wspec((1, E)), wspec((1, E)),
        ],
        out_specs=pl.BlockSpec((bblk, T, E), lambda i: (i, 0, 0)),
        compiler_params=_PARALLEL_1D,
    )(x1_bt, mem_bt, p["w_q"], p["b_q"].reshape(1, -1),
      p["w_kv"], p["b_kv"].reshape(1, -1),
      p["w_o"], p["b_o"].reshape(1, -1),
      gamma.reshape(1, -1), beta.reshape(1, -1))


def _ffn_block(x2_2d, w1, b1, w2, b2, gamma, beta, *, eps, out_dtype):
    M, E = x2_2d.shape
    F = w1.shape[1]
    tm = _row_tile(M)
    kernel = functools.partial(_ffn_block_kernel, eps=eps)
    wspec = lambda shp: pl.BlockSpec(shp, lambda i: (0, 0))
    return pl.pallas_call(
        kernel,
        out_shape=jax.ShapeDtypeStruct((M, E), out_dtype),
        grid=(M // tm,),
        in_specs=[
            pl.BlockSpec((tm, E), lambda i: (i, 0)),
            wspec((E, F)), wspec((1, F)),
            wspec((F, E)), wspec((1, E)),
            wspec((1, E)), wspec((1, E)),
        ],
        out_specs=pl.BlockSpec((tm, E), lambda i: (i, 0)),
        compiler_params=_PARALLEL_1D,
    )(x2_2d, w1, b1.reshape(1, -1), w2, b2.reshape(1, -1),
      gamma.reshape(1, -1), beta.reshape(1, -1))


# ----------------------------- layer composition -----------------------------

def mesh_decoder_layer_forward(params, tgt, memory, *, nhead, eps=1e-5):
    """tgt: (T, B, E), memory: (S, B, E) — seq-first (batch_first=False)."""
    T, B, E = tgt.shape
    S = memory.shape[0]
    dh = E // nhead
    scale = 1.0 / math.sqrt(dh)
    bblk = _batch_block(B, max(T, S))

    # batch-first so per-grid-step blocks are contiguous (bblk, L, E) slabs
    x_bt = jnp.transpose(tgt, (1, 0, 2))         # (B, T, E)
    mem_bt = jnp.transpose(memory, (1, 0, 2))    # (B, S, E)

    # x1 = norm1(tgt + self_attn(tgt, tgt, tgt))
    x1 = _self_attn_block(x_bt, params["self_attn"],
                          params["ln1_g"], params["ln1_b"],
                          nhead=nhead, scale=scale, eps=eps, bblk=bblk)

    # x2 = norm2(x1 + multihead_attn2(x1, memory, memory))
    #      (torch.cat([memory[:, :, :]], dim=0) == memory)
    x2 = _cross_attn_block(x1, mem_bt, params["cross_attn"],
                           params["ln2_g"], params["ln2_b"],
                           nhead=nhead, scale=scale, eps=eps, bblk=bblk)

    # x3 = norm3(x2 + linear2(relu(linear1(x2))))
    x3 = _ffn_block(x2.reshape(B * T, E), params["w1"], params["b1"],
                    params["w2"], params["b2"],
                    params["ln3_g"], params["ln3_b"],
                    eps=eps, out_dtype=tgt.dtype)

    return jnp.transpose(x3.reshape(B, T, E), (1, 0, 2))      # (T, B, E)


# -------------------------------- parameters --------------------------------

def _xavier(key, shape):
    fan_in, fan_out = shape
    lim = math.sqrt(6.0 / (fan_in + fan_out))
    return jax.random.uniform(key, shape, jnp.float32, -lim, lim)


def init_params(key, d_model, dim_ff):
    """NOTE: weights stored (in, out), i.e. transposed vs torch nn.Linear /
    in_proj_weight; transpose when porting a PyTorch checkpoint."""
    E = d_model
    keys = iter(jax.random.split(key, 8))
    nk = lambda: next(keys)
    zeros = lambda n: jnp.zeros((n,), jnp.float32)
    ones = lambda n: jnp.ones((n,), jnp.float32)
    return dict(
        self_attn=dict(
            w_qkv=_xavier(nk(), (E, 3 * E)), b_qkv=zeros(3 * E),
            w_o=_xavier(nk(), (E, E)), b_o=zeros(E)),
        cross_attn=dict(
            w_q=_xavier(nk(), (E, E)), b_q=zeros(E),
            w_kv=_xavier(nk(), (E, 2 * E)), b_kv=zeros(2 * E),
            w_o=_xavier(nk(), (E, E)), b_o=zeros(E)),
        ln1_g=ones(E), ln1_b=zeros(E),
        ln2_g=ones(E), ln2_b=zeros(E),
        ln3_g=ones(E), ln3_b=zeros(E),
        w1=_xavier(nk(), (E, dim_ff)), b1=zeros(dim_ff),
        w2=_xavier(nk(), (dim_ff, E)), b2=zeros(E),
    )


_MATMUL_WEIGHTS = ("w_qkv", "w_q", "w_kv", "w_o", "w1", "w2")


def prepare_params(params):
    """Pre-cast matmul weights to bf16 ONCE (outside the kernels); keep
    biases / LayerNorm affine params in f32."""
    def cast(d):
        return {k: (cast(v) if isinstance(v, dict)
                    else (v.astype(MXU_DTYPE) if k in _MATMUL_WEIGHTS else v))
                for k, v in d.items()}
    return cast(params)


# ------------------------------------ main ------------------------------------

if __name__ == "__main__":
    # small demo shapes: d_model=128 (lane-dense), 4 heads (Dh=32),
    # dim_feedforward=256, tgt seq T=16, memory seq S=32, batch B=8.
    d_model, nhead, dim_ff = 128, 4, 256
    T, S, B = 16, 32, 8

    key = jax.random.PRNGKey(0)
    kp, kt, km = jax.random.split(key, 3)
    params = prepare_params(init_params(kp, d_model, dim_ff))
    tgt = jax.random.normal(kt, (T, B, d_model), jnp.float32)
    memory = jax.random.normal(km, (S, B, d_model), jnp.float32)

    fwd = jax.jit(functools.partial(mesh_decoder_layer_forward, nhead=nhead))
    out = jax.block_until_ready(fwd(params, tgt, memory))

    assert out.shape == (T, B, d_model), out.shape
    assert bool(jnp.all(jnp.isfinite(out)))
    print("KERNEL_OK")
</pallas_src>

<mosaic_0001>
module attributes {stable_mosaic.version = 11 : i64} {
  func.func @_self_attn_block_kernel(%arg0: i32, %arg1: memref<4x16x128xf32, #tpu.memory_space<vmem>>, %arg2: memref<128x384xbf16, #tpu.memory_space<vmem>>, %arg3: memref<1x384xf32, #tpu.memory_space<vmem>>, %arg4: memref<128x128xbf16, #tpu.memory_space<vmem>>, %arg5: memref<1x128xf32, #tpu.memory_space<vmem>>, %arg6: memref<1x128xf32, #tpu.memory_space<vmem>>, %arg7: memref<1x128xf32, #tpu.memory_space<vmem>>, %arg8: memref<4x16x128xbf16, #tpu.memory_space<vmem>>) attributes {dimension_semantics = [#tpu.dimension_semantics<parallel>], iteration_bounds = array<i64: 2>, scalar_prefetch = 0 : i64, scratch_operands = 0 : i64, tpu.core_type = #tpu.core_type<tc>, window_params = [{transform_indices = @transform_0, window_bounds = array<i64: 4, 16, 128>}, {pipeline_mode = #tpu.pipeline_mode<synchronous>, transform_indices = @transform_1, window_bounds = array<i64: 128, 384>}, {pipeline_mode = #tpu.pipeline_mode<synchronous>, transform_indices = @transform_2, window_bounds = array<i64: 1, 384>}, {pipeline_mode = #tpu.pipeline_mode<synchronous>, transform_indices = @transform_3, window_bounds = array<i64: 128, 128>}, {pipeline_mode = #tpu.pipeline_mode<synchronous>, transform_indices = @transform_4, window_bounds = array<i64: 1, 128>}, {pipeline_mode = #tpu.pipeline_mode<synchronous>, transform_indices = @transform_5, window_bounds = array<i64: 1, 128>}, {pipeline_mode = #tpu.pipeline_mode<synchronous>, transform_indices = @transform_6, window_bounds = array<i64: 1, 128>}, {transform_indices = @transform_7, window_bounds = array<i64: 4, 16, 128>}]} {
    %c0 = arith.constant 0 : index
    %c0_0 = arith.constant 0 : index
    %c0_1 = arith.constant 0 : index
    %0 = vector.load %arg1[%c0, %c0_0, %c0_1] : memref<4x16x128xf32, #tpu.memory_space<vmem>>, vector<4x16x128xf32>
    %1 = vector.shape_cast %0 : vector<4x16x128xf32> to vector<64x128xf32>
    %2 = arith.truncf %1 : vector<64x128xf32> to vector<64x128xbf16>
    %c0_2 = arith.constant 0 : index
    %c0_3 = arith.constant 0 : index
    %3 = vector.load %arg2[%c0_2, %c0_3] : memref<128x384xbf16, #tpu.memory_space<vmem>>, vector<128x384xbf16>
    %cst = arith.constant dense<0.000000e+00> : vector<64x384xf32>
    %4 = tpu.matmul %2, %3, %cst {dimension_numbers = #tpu.dot_dimension_numbers<[1], [0], [0], [1], [0, 0, 1, 1], [], []>} : vector<64x128xbf16>, vector<128x384xbf16>, vector<64x384xf32> -> vector<64x384xf32>
    %c0_4 = arith.constant 0 : index
    %c0_5 = arith.constant 0 : index
    %5 = vector.load %arg3[%c0_4, %c0_5] : memref<1x384xf32, #tpu.memory_space<vmem>>, vector<1x384xf32>
    %6 = vector.broadcast %5 : vector<1x384xf32> to vector<64x384xf32>
    %7 = arith.addf %4, %6 : vector<64x384xf32>
    %8 = vector.extract_strided_slice %7 {offsets = [0, 0], sizes = [64, 128], strides = [1, 1]} : vector<64x384xf32> to vector<64x128xf32>
    %9 = vector.extract_strided_slice %7 {offsets = [0, 128], sizes = [64, 128], strides = [1, 1]} : vector<64x384xf32> to vector<64x128xf32>
    %10 = vector.extract_strided_slice %7 {offsets = [0, 256], sizes = [64, 128], strides = [1, 1]} : vector<64x384xf32> to vector<64x128xf32>
    %11 = vector.extract_strided_slice %8 {offsets = [0, 0], sizes = [64, 32], strides = [1, 1]} : vector<64x128xf32> to vector<64x32xf32>
    %12 = vector.shape_cast %11 : vector<64x32xf32> to vector<4x16x32xf32>
    %13 = arith.truncf %12 : vector<4x16x32xf32> to vector<4x16x32xbf16>
    %14 = vector.extract_strided_slice %9 {offsets = [0, 0], sizes = [64, 32], strides = [1, 1]} : vector<64x128xf32> to vector<64x32xf32>
    %15 = vector.shape_cast %14 : vector<64x32xf32> to vector<4x16x32xf32>
    %16 = arith.truncf %15 : vector<4x16x32xf32> to vector<4x16x32xbf16>
    %17 = vector.extract_strided_slice %10 {offsets = [0, 0], sizes = [64, 32], strides = [1, 1]} : vector<64x128xf32> to vector<64x32xf32>
    %18 = vector.shape_cast %17 : vector<64x32xf32> to vector<4x16x32xf32>
    %19 = arith.truncf %18 : vector<4x16x32xf32> to vector<4x16x32xbf16>
    "tpu.trace_start"() <{level = 10 : i32, message = "bqd,bkd->bqk"}> : () -> ()
    %cst_6 = arith.constant dense<0.000000e+00> : vector<4x16x16xf32>
    %20 = tpu.matmul %13, %16, %cst_6 {dimension_numbers = #tpu.dot_dimension_numbers<[2], [2], [1], [1], [0, 0, 0, 1, 1, 1], [0], [0]>} : vector<4x16x32xbf16>, vector<4x16x32xbf16>, vector<4x16x16xf32> -> vector<4x16x16xf32>
    "tpu.trace_stop"() : () -> ()
    %cst_7 = arith.constant 0.176776692 : f32
    %21 = vector.broadcast %cst_7 : f32 to vector<4x16x16xf32>
    %22 = arith.mulf %20, %21 : vector<4x16x16xf32>
    %cst_8 = arith.constant dense<0xFF800000> : vector<4x16xf32>
    %23 = vector.multi_reduction <maximumf>, %22, %cst_8 [2] : vector<4x16x16xf32> to vector<4x16xf32>
    %24 = vector.shape_cast %23 : vector<4x16xf32> to vector<4x16x1xf32>
    %25 = vector.broadcast %24 : vector<4x16x1xf32> to vector<4x16x16xf32>
    %26 = arith.subf %22, %25 : vector<4x16x16xf32>
    %27 = math.exp %26 : vector<4x16x16xf32>
    %cst_9 = arith.constant dense<0.000000e+00> : vector<4x16xf32>
    %28 = vector.multi_reduction <add>, %27, %cst_9 [2] : vector<4x16x16xf32> to vector<4x16xf32>
    %29 = vector.shape_cast %28 : vector<4x16xf32> to vector<4x16x1xf32>
    %30 = tpu.reciprocal %29 {approx = true} : vector<4x16x1xf32> -> vector<4x16x1xf32>
    %31 = vector.broadcast %30 : vector<4x16x1xf32> to vector<4x16x16xf32>
    %32 = arith.mulf %27, %31 : vector<4x16x16xf32>
    %33 = arith.truncf %32 : vector<4x16x16xf32> to vector<4x16x16xbf16>
    "tpu.trace_start"() <{level = 10 : i32, message = "bqk,bkd->bqd"}> : () -> ()
    %cst_10 = arith.constant dense<0.000000e+00> : vector<4x16x32xf32>
    %34 = tpu.matmul %33, %19, %cst_10 {dimension_numbers = #tpu.dot_dimension_numbers<[2], [1], [1], [2], [0, 0, 0, 1, 1, 2], [0], [0]>} : vector<4x16x16xbf16>, vector<4x16x32xbf16>, vector<4x16x32xf32> -> vector<4x16x32xf32>
    "tpu.trace_stop"() : () -> ()
    %35 = vector.shape_cast %34 : vector<4x16x32xf32> to vector<64x32xf32>
    %36 = vector.extract_strided_slice %8 {offsets = [0, 32], sizes = [64, 32], strides = [1, 1]} : vector<64x128xf32> to vector<64x32xf32>
    %37 = vector.shape_cast %36 : vector<64x32xf32> to vector<4x16x32xf32>
    %38 = arith.truncf %37 : vector<4x16x32xf32> to vector<4x16x32xbf16>
    %39 = vector.extract_strided_slice %9 {offsets = [0, 32], sizes = [64, 32], strides = [1, 1]} : vector<64x128xf32> to vector<64x32xf32>
    %40 = vector.shape_cast %39 : vector<64x32xf32> to vector<4x16x32xf32>
    %41 = arith.truncf %40 : vector<4x16x32xf32> to vector<4x16x32xbf16>
    %42 = vector.extract_strided_slice %10 {offsets = [0, 32], sizes = [64, 32], strides = [1, 1]} : vector<64x128xf32> to vector<64x32xf32>
    %43 = vector.shape_cast %42 : vector<64x32xf32> to vector<4x16x32xf32>
    %44 = arith.truncf %43 : vector<4x16x32xf32> to vector<4x16x32xbf16>
    "tpu.trace_start"() <{level = 10 : i32, message = "bqd,bkd->bqk"}> : () -> ()
    %cst_11 = arith.constant dense<0.000000e+00> : vector<4x16x16xf32>
    %45 = tpu.matmul %38, %41, %cst_11 {dimension_numbers = #tpu.dot_dimension_numbers<[2], [2], [1], [1], [0, 0, 0, 1, 1, 1], [0], [0]>} : vector<4x16x32xbf16>, vector<4x16x32xbf16>, vector<4x16x16xf32> -> vector<4x16x16xf32>
    "tpu.trace_stop"() : () -> ()
    %cst_12 = arith.constant 0.176776692 : f32
    %46 = vector.broadcast %cst_12 : f32 to vector<4x16x16xf32>
    %47 = arith.mulf %45, %46 : vector<4x16x16xf32>
    %cst_13 = arith.constant dense<0xFF800000> : vector<4x16xf32>
    %48 = vector.multi_reduction <maximumf>, %47, %cst_13 [2] : vector<4x16x16xf32> to vector<4x16xf32>
    %49 = vector.shape_cast %48 : vector<4x16xf32> to vector<4x16x1xf32>
    %50 = vector.broadcast %49 : vector<4x16x1xf32> to vector<4x16x16xf32>
    %51 = arith.subf %47, %50 : vector<4x16x16xf32>
    %52 = math.exp %51 : vector<4x16x16xf32>
    %cst_14 = arith.constant dense<0.000000e+00> : vector<4x16xf32>
    %53 = vector.multi_reduction <add>, %52, %cst_14 [2] : vector<4x16x16xf32> to vector<4x16xf32>
    %54 = vector.shape_cast %53 : vector<4x16xf32> to vector<4x16x1xf32>
    %55 = tpu.reciprocal %54 {approx = true} : vector<4x16x1xf32> -> vector<4x16x1xf32>
    %56 = vector.broadcast %55 : vector<4x16x1xf32> to vector<4x16x16xf32>
    %57 = arith.mulf %52, %56 : vector<4x16x16xf32>
    %58 = arith.truncf %57 : vector<4x16x16xf32> to vector<4x16x16xbf16>
    "tpu.trace_start"() <{level = 10 : i32, message = "bqk,bkd->bqd"}> : () -> ()
    %cst_15 = arith.constant dense<0.000000e+00> : vector<4x16x32xf32>
    %59 = tpu.matmul %58, %44, %cst_15 {dimension_numbers = #tpu.dot_dimension_numbers<[2], [1], [1], [2], [0, 0, 0, 1, 1, 2], [0], [0]>} : vector<4x16x16xbf16>, vector<4x16x32xbf16>, vector<4x16x32xf32> -> vector<4x16x32xf32>
    "tpu.trace_stop"() : () -> ()
    %60 = vector.shape_cast %59 : vector<4x16x32xf32> to vector<64x32xf32>
    %61 = vector.extract_strided_slice %8 {offsets = [0, 64], sizes = [64, 32], strides = [1, 1]} : vector<64x128xf32> to vector<64x32xf32>
    %62 = vector.shape_cast %61 : vector<64x32xf32> to vector<4x16x32xf32>
    %63 = arith.truncf %62 : vector<4x16x32xf32> to vector<4x16x32xbf16>
    %64 = vector.extract_strided_slice %9 {offsets = [0, 64], sizes = [64, 32], strides = [1, 1]} : vector<64x128xf32> to vector<64x32xf32>
    %65 = vector.shape_cast %64 : vector<64x32xf32> to vector<4x16x32xf32>
    %66 = arith.truncf %65 : vector<4x16x32xf32> to vector<4x16x32xbf16>
    %67 = vector.extract_strided_slice %10 {offsets = [0, 64], sizes = [64, 32], strides = [1, 1]} : vector<64x128xf32> to vector<64x32xf32>
    %68 = vector.shape_cast %67 : vector<64x32xf32> to vector<4x16x32xf32>
    %69 = arith.truncf %68 : vector<4x16x32xf32> to vector<4x16x32xbf16>
    "tpu.trace_start"() <{level = 10 : i32, message = "bqd,bkd->bqk"}> : () -> ()
    %cst_16 = arith.constant dense<0.000000e+00> : vector<4x16x16xf32>
    %70 = tpu.matmul %63, %66, %cst_16 {dimension_numbers = #tpu.dot_dimension_numbers<[2], [2], [1], [1], [0, 0, 0, 1, 1, 1], [0], [0]>} : vector<4x16x32xbf16>, vector<4x16x32xbf16>, vector<4x16x16xf32> -> vector<4x16x16xf32>
    "tpu.trace_stop"() : () -> ()
    %cst_17 = arith.constant 0.176776692 : f32
    %71 = vector.broadcast %cst_17 : f32 to vector<4x16x16xf32>
    %72 = arith.mulf %70, %71 : vector<4x16x16xf32>
    %cst_18 = arith.constant dense<0xFF800000> : vector<4x16xf32>
    %73 = vector.multi_reduction <maximumf>, %72, %cst_18 [2] : vector<4x16x16xf32> to vector<4x16xf32>
    %74 = vector.shape_cast %73 : vector<4x16xf32> to vector<4x16x1xf32>
    %75 = vector.broadcast %74 : vector<4x16x1xf32> to vector<4x16x16xf32>
    %76 = arith.subf %72, %75 : vector<4x16x16xf32>
    %77 = math.exp %76 : vector<4x16x16xf32>
    %cst_19 = arith.constant dense<0.000000e+00> : vector<4x16xf32>
    %78 = vector.multi_reduction <add>, %77, %cst_19 [2] : vector<4x16x16xf32> to vector<4x16xf32>
    %79 = vector.shape_cast %78 : vector<4x16xf32> to vector<4x16x1xf32>
    %80 = tpu.reciprocal %79 {approx = true} : vector<4x16x1xf32> -> vector<4x16x1xf32>
    %81 = vector.broadcast %80 : vector<4x16x1xf32> to vector<4x16x16xf32>
    %82 = arith.mulf %77, %81 : vector<4x16x16xf32>
    %83 = arith.truncf %82 : vector<4x16x16xf32> to vector<4x16x16xbf16>
    "tpu.trace_start"() <{level = 10 : i32, message = "bqk,bkd->bqd"}> : () -> ()
    %cst_20 = arith.constant dense<0.000000e+00> : vector<4x16x32xf32>
    %84 = tpu.matmul %83, %69, %cst_20 {dimension_numbers = #tpu.dot_dimension_numbers<[2], [1], [1], [2], [0, 0, 0, 1, 1, 2], [0], [0]>} : vector<4x16x16xbf16>, vector<4x16x32xbf16>, vector<4x16x32xf32> -> vector<4x16x32xf32>
    "tpu.trace_stop"() : () -> ()
    %85 = vector.shape_cast %84 : vector<4x16x32xf32> to vector<64x32xf32>
    %86 = vector.extract_strided_slice %8 {offsets = [0, 96], sizes = [64, 32], strides = [1, 1]} : vector<64x128xf32> to vector<64x32xf32>
    %87 = vector.shape_cast %86 : vector<64x32xf32> to vector<4x16x32xf32>
    %88 = arith.truncf %87 : vector<4x16x32xf32> to vector<4x16x32xbf16>
    %89 = vector.extract_strided_slice %9 {offsets = [0, 96], sizes = [64, 32], strides = [1, 1]} : vector<64x128xf32> to vector<64x32xf32>
    %90 = vector.shape_cast %89 : vector<64x32xf32> to vector<4x16x32xf32>
    %91 = arith.truncf %90 : vector<4x16x32xf32> to vector<4x16x32xbf16>
    %92 = vector.extract_strided_slice %10 {offsets = [0, 96], sizes = [64, 32], strides = [1, 1]} : vector<64x128xf32> to vector<64x32xf32>
    %93 = vector.shape_cast %92 : vector<64x32xf32> to vector<4x16x32xf32>
    %94 = arith.truncf %93 : vector<4x16x32xf32> to vector<4x16x32xbf16>
    "tpu.trace_start"() <{level = 10 : i32, message = "bqd,bkd->bqk"}> : () -> ()
    %cst_21 = arith.constant dense<0.000000e+00> : vector<4x16x16xf32>
    %95 = tpu.matmul %88, %91, %cst_21 {dimension_numbers = #tpu.dot_dimension_numbers<[2], [2], [1], [1], [0, 0, 0, 1, 1, 1], [0], [0]>} : vector<4x16x32xbf16>, vector<4x16x32xbf16>, vector<4x16x16xf32> -> vector<4x16x16xf32>
    "tpu.trace_stop"() : () -> ()
    %cst_22 = arith.constant 0.176776692 : f32
    %96 = vector.broadcast %cst_22 : f32 to vector<4x16x16xf32>
    %97 = arith.mulf %95, %96 : vector<4x16x16xf32>
    %cst_23 = arith.constant dense<0xFF800000> : vector<4x16xf32>
    %98 = vector.multi_reduction <maximumf>, %97, %cst_23 [2] : vector<4x16x16xf32> to vector<4x16xf32>
    %99 = vector.shape_cast %98 : vector<4x16xf32> to vector<4x16x1xf32>
    %100 = vector.broadcast %99 : vector<4x16x1xf32> to vector<4x16x16xf32>
    %101 = arith.subf %97, %100 : vector<4x16x16xf32>
    %102 = math.exp %101 : vector<4x16x16xf32>
    %cst_24 = arith.constant dense<0.000000e+00> : vector<4x16xf32>
    %103 = vector.multi_reduction <add>, %102, %cst_24 [2] : vector<4x16x16xf32> to vector<4x16xf32>
    %104 = vector.shape_cast %103 : vector<4x16xf32> to vector<4x16x1xf32>
    %105 = tpu.reciprocal %104 {approx = true} : vector<4x16x1xf32> -> vector<4x16x1xf32>
    %106 = vector.broadcast %105 : vector<4x16x1xf32> to vector<4x16x16xf32>
    %107 = arith.mulf %102, %106 : vector<4x16x16xf32>
    %108 = arith.truncf %107 : vector<4x16x16xf32> to vector<4x16x16xbf16>
    "tpu.trace_start"() <{level = 10 : i32, message = "bqk,bkd->bqd"}> : () -> ()
    %cst_25 = arith.constant dense<0.000000e+00> : vector<4x16x32xf32>
    %109 = tpu.matmul %108, %94, %cst_25 {dimension_numbers = #tpu.dot_dimension_numbers<[2], [1], [1], [2], [0, 0, 0, 1, 1, 2], [0], [0]>} : vector<4x16x16xbf16>, vector<4x16x32xbf16>, vector<4x16x32xf32> -> vector<4x16x32xf32>
    "tpu.trace_stop"() : () -> ()
    %110 = vector.shape_cast %109 : vector<4x16x32xf32> to vector<64x32xf32>
    %111 = tpu.concatenate %35, %60, %85, %110 in 1 : vector<64x32xf32>, vector<64x32xf32>, vector<64x32xf32>, vector<64x32xf32> -> vector<64x128xf32>
    %112 = arith.truncf %111 : vector<64x128xf32> to vector<64x128xbf16>
    %c0_26 = arith.constant 0 : index
    %c0_27 = arith.constant 0 : index
    %113 = vector.load %arg4[%c0_26, %c0_27] : memref<128x128xbf16, #tpu.memory_space<vmem>>, vector<128x128xbf16>
    %cst_28 = arith.constant dense<0.000000e+00> : vector<64x128xf32>
    %114 = tpu.matmul %112, %113, %cst_28 {dimension_numbers = #tpu.dot_dimension_numbers<[1], [0], [0], [1], [0, 0, 1, 1], [], []>} : vector<64x128xbf16>, vector<128x128xbf16>, vector<64x128xf32> -> vector<64x128xf32>
    %c0_29 = arith.constant 0 : index
    %c0_30 = arith.constant 0 : index
    %115 = vector.load %arg5[%c0_29, %c0_30] : memref<1x128xf32, #tpu.memory_space<vmem>>, vector<1x128xf32>
    %116 = vector.broadcast %115 : vector<1x128xf32> to vector<64x128xf32>
    %117 = arith.addf %114, %116 : vector<64x128xf32>
    %118 = arith.addf %1, %117 : vector<64x128xf32>
    %c0_31 = arith.constant 0 : index
    %c0_32 = arith.constant 0 : index
    %119 = vector.load %arg6[%c0_31, %c0_32] : memref<1x128xf32, #tpu.memory_space<vmem>>, vector<1x128xf32>
    %c0_33 = arith.constant 0 : index
    %c0_34 = arith.constant 0 : index
    %120 = vector.load %arg7[%c0_33, %c0_34] : memref<1x128xf32, #tpu.memory_space<vmem>>, vector<1x128xf32>
    %cst_35 = arith.constant dense<0.000000e+00> : vector<64xf32>
    %121 = vector.multi_reduction <add>, %118, %cst_35 [1] : vector<64x128xf32> to vector<64xf32>
    %122 = vector.shape_cast %121 : vector<64xf32> to vector<64x1xf32>
    %cst_36 = arith.constant 1.280000e+02 : f32
    %123 = vector.broadcast %cst_36 : f32 to vector<64x1xf32>
    %124 = arith.divf %122, %123 : vector<64x1xf32>
    %125 = vector.broadcast %124 : vector<64x1xf32> to vector<64x128xf32>
    %126 = arith.subf %118, %125 : vector<64x128xf32>
    %127 = arith.mulf %126, %126 : vector<64x128xf32>
    %cst_37 = arith.constant dense<0.000000e+00> : vector<64xf32>
    %128 = vector.multi_reduction <add>, %127, %cst_37 [1] : vector<64x128xf32> to vector<64xf32>
    %129 = vector.shape_cast %128 : vector<64xf32> to vector<64x1xf32>
    %cst_38 = arith.constant 1.280000e+02 : f32
    %130 = vector.broadcast %cst_38 : f32 to vector<64x1xf32>
    %131 = arith.divf %129, %130 : vector<64x1xf32>
    %cst_39 = arith.constant 9.99999974E-6 : f32
    %132 = vector.broadcast %cst_39 : f32 to vector<64x1xf32>
    %133 = arith.addf %131, %132 : vector<64x1xf32>
    %134 = math.rsqrt %133 : vector<64x1xf32>
    %135 = vector.broadcast %134 : vector<64x1xf32> to vector<64x128xf32>
    %136 = arith.mulf %126, %135 : vector<64x128xf32>
    %137 = vector.broadcast %119 : vector<1x128xf32> to vector<64x128xf32>
    %138 = arith.mulf %136, %137 : vector<64x128xf32>
    %139 = vector.broadcast %120 : vector<1x128xf32> to vector<64x128xf32>
    %140 = arith.addf %138, %139 : vector<64x128xf32>
    %141 = vector.shape_cast %140 : vector<64x128xf32> to vector<4x16x128xf32>
    %142 = arith.truncf %141 : vector<4x16x128xf32> to vector<4x16x128xbf16>
    %c0_40 = arith.constant 0 : index
    %c0_41 = arith.constant 0 : index
    %c0_42 = arith.constant 0 : index
    %143 = vector.load %arg8[%c0_40, %c0_41, %c0_42] : memref<4x16x128xbf16, #tpu.memory_space<vmem>>, vector<4x16x128xbf16>
    tpu.vector_store %arg8[%c0_40, %c0_41, %c0_42], %142 {strides = array<i32>} : memref<4x16x128xbf16, #tpu.memory_space<vmem>>, vector<4x16x128xbf16>,
    return
  }
  func.func @transform_0(%arg0: i32) -> (i32, i32, i32) {
    %c0_i32 = arith.constant 0 : i32
    %c0_i32_0 = arith.constant 0 : i32
    %c0_i32_1 = arith.constant 0 : i32
    return %arg0, %c0_i32, %c0_i32_0 : i32, i32, i32
  }
  func.func @transform_1(%arg0: i32) -> (i32, i32) {
    %c0_i32 = arith.constant 0 : i32
    %c0_i32_0 = arith.constant 0 : i32
    %c0_i32_1 = arith.constant 0 : i32
    return %c0_i32, %c0_i32_0 : i32, i32
  }
  func.func @transform_2(%arg0: i32) -> (i32, i32) {
    %c0_i32 = arith.constant 0 : i32
    %c0_i32_0 = arith.constant 0 : i32
    %c0_i32_1 = arith.constant 0 : i32
    return %c0_i32, %c0_i32_0 : i32, i32
  }
  func.func @transform_3(%arg0: i32) -> (i32, i32) {
    %c0_i32 = arith.constant 0 : i32
    %c0_i32_0 = arith.constant 0 : i32
    %c0_i32_1 = arith.constant 0 : i32
    return %c0_i32, %c0_i32_0 : i32, i32
  }
  func.func @transform_4(%arg0: i32) -> (i32, i32) {
    %c0_i32 = arith.constant 0 : i32
    %c0_i32_0 = arith.constant 0 : i32
    %c0_i32_1 = arith.constant 0 : i32
    return %c0_i32, %c0_i32_0 : i32, i32
  }
  func.func @transform_5(%arg0: i32) -> (i32, i32) {
    %c0_i32 = arith.constant 0 : i32
    %c0_i32_0 = arith.constant 0 : i32
    %c0_i32_1 = arith.constant 0 : i32
    return %c0_i32, %c0_i32_0 : i32, i32
  }
  func.func @transform_6(%arg0: i32) -> (i32, i32) {
    %c0_i32 = arith.constant 0 : i32
    %c0_i32_0 = arith.constant 0 : i32
    %c0_i32_1 = arith.constant 0 : i32
    return %c0_i32, %c0_i32_0 : i32, i32
  }
  func.func @transform_7(%arg0: i32) -> (i32, i32, i32) {
    %c0_i32 = arith.constant 0 : i32
    %c0_i32_0 = arith.constant 0 : i32
    %c0_i32_1 = arith.constant 0 : i32
    return %arg0, %c0_i32, %c0_i32_0 : i32, i32, i32
  }
}

module attributes {stable_mosaic.version = 11 : i64} {
  func.func @_ffn_block_kernel(%arg0: i32, %arg1: memref<64x128xbf16, #tpu.memory_space<vmem>>, %arg2: memref<128x256xbf16, #tpu.memory_space<vmem>>, %arg3: memref<1x256xf32, #tpu.memory_space<vmem>>, %arg4: memref<256x128xbf16, #tpu.memory_space<vmem>>, %arg5: memref<1x128xf32, #tpu.memory_space<vmem>>, %arg6: memref<1x128xf32, #tpu.memory_space<vmem>>, %arg7: memref<1x128xf32, #tpu.memory_space<vmem>>, %arg8: memref<64x128xf32, #tpu.memory_space<vmem>>) attributes {dimension_semantics = [#tpu.dimension_semantics<parallel>], iteration_bounds = array<i64: 2>, scalar_prefetch = 0 : i64, scratch_operands = 0 : i64, tpu.core_type = #tpu.core_type<tc>, window_params = [{transform_indices = @transform_0, window_bounds = array<i64: 64, 128>}, {pipeline_mode = #tpu.pipeline_mode<synchronous>, transform_indices = @transform_1, window_bounds = array<i64: 128, 256>}, {pipeline_mode = #tpu.pipeline_mode<synchronous>, transform_indices = @transform_2, window_bounds = array<i64: 1, 256>}, {pipeline_mode = #tpu.pipeline_mode<synchronous>, transform_indices = @transform_3, window_bounds = array<i64: 256, 128>}, {pipeline_mode = #tpu.pipeline_mode<synchronous>, transform_indices = @transform_4, window_bounds = array<i64: 1, 128>}, {pipeline_mode = #tpu.pipeline_mode<synchronous>, transform_indices = @transform_5, window_bounds = array<i64: 1, 128>}, {pipeline_mode = #tpu.pipeline_mode<synchronous>, transform_indices = @transform_6, window_bounds = array<i64: 1, 128>}, {transform_indices = @transform_7, window_bounds = array<i64: 64, 128>}]} {
    %c0 = arith.constant 0 : index
    %c0_0 = arith.constant 0 : index
    %0 = vector.load %arg1[%c0, %c0_0] : memref<64x128xbf16, #tpu.memory_space<vmem>>, vector<64x128xbf16>
    %c0_1 = arith.constant 0 : index
    %c0_2 = arith.constant 0 : index
    %1 = vector.load %arg2[%c0_1, %c0_2] : memref<128x256xbf16, #tpu.memory_space<vmem>>, vector<128x256xbf16>
    %cst = arith.constant dense<0.000000e+00> : vector<64x256xf32>
    %2 = tpu.matmul %0, %1, %cst {dimension_numbers = #tpu.dot_dimension_numbers<[1], [0], [0], [1], [0, 0, 1, 1], [], []>} : vector<64x128xbf16>, vector<128x256xbf16>, vector<64x256xf32> -> vector<64x256xf32>
    %c0_3 = arith.constant 0 : index
    %c0_4 = arith.constant 0 : index
    %3 = vector.load %arg3[%c0_3, %c0_4] : memref<1x256xf32, #tpu.memory_space<vmem>>, vector<1x256xf32>
    %4 = vector.broadcast %3 : vector<1x256xf32> to vector<64x256xf32>
    %5 = arith.addf %2, %4 : vector<64x256xf32>
    %cst_5 = arith.constant 0.000000e+00 : f32
    %6 = vector.broadcast %cst_5 : f32 to vector<64x256xf32>
    %7 = arith.maximumf %5, %6 : vector<64x256xf32>
    %8 = arith.truncf %7 : vector<64x256xf32> to vector<64x256xbf16>
    %c0_6 = arith.constant 0 : index
    %c0_7 = arith.constant 0 : index
    %9 = vector.load %arg4[%c0_6, %c0_7] : memref<256x128xbf16, #tpu.memory_space<vmem>>, vector<256x128xbf16>
    %cst_8 = arith.constant dense<0.000000e+00> : vector<64x128xf32>
    %10 = tpu.matmul %8, %9, %cst_8 {dimension_numbers = #tpu.dot_dimension_numbers<[1], [0], [0], [1], [0, 0, 1, 1], [], []>} : vector<64x256xbf16>, vector<256x128xbf16>, vector<64x128xf32> -> vector<64x128xf32>
    %c0_9 = arith.constant 0 : index
    %c0_10 = arith.constant 0 : index
    %11 = vector.load %arg5[%c0_9, %c0_10] : memref<1x128xf32, #tpu.memory_space<vmem>>, vector<1x128xf32>
    %12 = vector.broadcast %11 : vector<1x128xf32> to vector<64x128xf32>
    %13 = arith.addf %10, %12 : vector<64x128xf32>
    %14 = arith.extf %0 : vector<64x128xbf16> to vector<64x128xf32>
    %15 = arith.addf %14, %13 : vector<64x128xf32>
    %c0_11 = arith.constant 0 : index
    %c0_12 = arith.constant 0 : index
    %16 = vector.load %arg6[%c0_11, %c0_12] : memref<1x128xf32, #tpu.memory_space<vmem>>, vector<1x128xf32>
    %c0_13 = arith.constant 0 : index
    %c0_14 = arith.constant 0 : index
    %17 = vector.load %arg7[%c0_13, %c0_14] : memref<1x128xf32, #tpu.memory_space<vmem>>, vector<1x128xf32>
    %cst_15 = arith.constant dense<0.000000e+00> : vector<64xf32>
    %18 = vector.multi_reduction <add>, %15, %cst_15 [1] : vector<64x128xf32> to vector<64xf32>
    %19 = vector.shape_cast %18 : vector<64xf32> to vector<64x1xf32>
    %cst_16 = arith.constant 1.280000e+02 : f32
    %20 = vector.broadcast %cst_16 : f32 to vector<64x1xf32>
    %21 = arith.divf %19, %20 : vector<64x1xf32>
    %22 = vector.broadcast %21 : vector<64x1xf32> to vector<64x128xf32>
    %23 = arith.subf %15, %22 : vector<64x128xf32>
    %24 = arith.mulf %23, %23 : vector<64x128xf32>
    %cst_17 = arith.constant dense<0.000000e+00> : vector<64xf32>
    %25 = vector.multi_reduction <add>, %24, %cst_17 [1] : vector<64x128xf32> to vector<64xf32>
    %26 = vector.shape_cast %25 : vector<64xf32> to vector<64x1xf32>
    %cst_18 = arith.constant 1.280000e+02 : f32
    %27 = vector.broadcast %cst_18 : f32 to vector<64x1xf32>
    %28 = arith.divf %26, %27 : vector<64x1xf32>
    %cst_19 = arith.constant 9.99999974E-6 : f32
    %29 = vector.broadcast %cst_19 : f32 to vector<64x1xf32>
    %30 = arith.addf %28, %29 : vector<64x1xf32>
    %31 = math.rsqrt %30 : vector<64x1xf32>
    %32 = vector.broadcast %31 : vector<64x1xf32> to vector<64x128xf32>
    %33 = arith.mulf %23, %32 : vector<64x128xf32>
    %34 = vector.broadcast %16 : vector<1x128xf32> to vector<64x128xf32>
    %35 = arith.mulf %33, %34 : vector<64x128xf32>
    %36 = vector.broadcast %17 : vector<1x128xf32> to vector<64x128xf32>
    %37 = arith.addf %35, %36 : vector<64x128xf32>
    %c0_20 = arith.constant 0 : index
    %c0_21 = arith.constant 0 : index
    %38 = vector.load %arg8[%c0_20, %c0_21] : memref<64x128xf32, #tpu.memory_space<vmem>>, vector<64x128xf32>
    tpu.vector_store %arg8[%c0_20, %c0_21], %37 {strides = array<i32>} : memref<64x128xf32, #tpu.memory_space<vmem>>, vector<64x128xf32>,
    return
  }
  func.func @transform_0(%arg0: i32) -> (i32, i32) {
    %c0_i32 = arith.constant 0 : i32
    %c0_i32_0 = arith.constant 0 : i32
    return %arg0, %c0_i32 : i32, i32
  }
  func.func @transform_1(%arg0: i32) -> (i32, i32) {
    %c0_i32 = arith.constant 0 : i32
    %c0_i32_0 = arith.constant 0 : i32
    %c0_i32_1 = arith.constant 0 : i32
    return %c0_i32, %c0_i32_0 : i32, i32
  }
  func.func @transform_2(%arg0: i32) -> (i32, i32) {
    %c0_i32 = arith.constant 0 : i32
    %c0_i32_0 = arith.constant 0 : i32
    %c0_i32_1 = arith.constant 0 : i32
    return %c0_i32, %c0_i32_0 : i32, i32
  }
  func.func @transform_3(%arg0: i32) -> (i32, i32) {
    %c0_i32 = arith.constant 0 : i32
    %c0_i32_0 = arith.constant 0 : i32
    %c0_i32_1 = arith.constant 0 : i32
    return %c0_i32, %c0_i32_0 : i32, i32
  }
  func.func @transform_4(%arg0: i32) -> (i32, i32) {
    %c0_i32 = arith.constant 0 : i32
    %c0_i32_0 = arith.constant 0 : i32
    %c0_i32_1 = arith.constant 0 : i32
    return %c0_i32, %c0_i32_0 : i32, i32
  }
  func.func @transform_5(%arg0: i32) -> (i32, i32) {
    %c0_i32 = arith.constant 0 : i32
    %c0_i32_0 = arith.constant 0 : i32
    %c0_i32_1 = arith.constant 0 : i32
    return %c0_i32, %c0_i32_0 : i32, i32
  }
  func.func @transform_6(%arg0: i32) -> (i32, i32) {
    %c0_i32 = arith.constant 0 : i32
    %c0_i32_0 = arith.constant 0 : i32
    %c0_i32_1 = arith.constant 0 : i32
    return %c0_i32, %c0_i32_0 : i32, i32
  }
  func.func @transform_7(%arg0: i32) -> (i32, i32) {
    %c0_i32 = arith.constant 0 : i32
    %c0_i32_0 = arith.constant 0 : i32
    return %arg0, %c0_i32 : i32, i32
  }
}

module attributes {stable_mosaic.version = 11 : i64} {
  func.func @_cross_attn_block_kernel(%arg0: i32, %arg1: memref<4x16x128xbf16, #tpu.memory_space<vmem>>, %arg2: memref<4x32x128xf32, #tpu.memory_space<vmem>>, %arg3: memref<128x128xbf16, #tpu.memory_space<vmem>>, %arg4: memref<1x128xf32, #tpu.memory_space<vmem>>, %arg5: memref<128x256xbf16, #tpu.memory_space<vmem>>, %arg6: memref<1x256xf32, #tpu.memory_space<vmem>>, %arg7: memref<128x128xbf16, #tpu.memory_space<vmem>>, %arg8: memref<1x128xf32, #tpu.memory_space<vmem>>, %arg9: memref<1x128xf32, #tpu.memory_space<vmem>>, %arg10: memref<1x128xf32, #tpu.memory_space<vmem>>, %arg11: memref<4x16x128xbf16, #tpu.memory_space<vmem>>) attributes {dimension_semantics = [#tpu.dimension_semantics<parallel>], iteration_bounds = array<i64: 2>, scalar_prefetch = 0 : i64, scratch_operands = 0 : i64, tpu.core_type = #tpu.core_type<tc>, window_params = [{transform_indices = @transform_0, window_bounds = array<i64: 4, 16, 128>}, {transform_indices = @transform_1, window_bounds = array<i64: 4, 32, 128>}, {pipeline_mode = #tpu.pipeline_mode<synchronous>, transform_indices = @transform_2, window_bounds = array<i64: 128, 128>}, {pipeline_mode = #tpu.pipeline_mode<synchronous>, transform_indices = @transform_3, window_bounds = array<i64: 1, 128>}, {pipeline_mode = #tpu.pipeline_mode<synchronous>, transform_indices = @transform_4, window_bounds = array<i64: 128, 256>}, {pipeline_mode = #tpu.pipeline_mode<synchronous>, transform_indices = @transform_5, window_bounds = array<i64: 1, 256>}, {pipeline_mode = #tpu.pipeline_mode<synchronous>, transform_indices = @transform_6, window_bounds = array<i64: 128, 128>}, {pipeline_mode = #tpu.pipeline_mode<synchronous>, transform_indices = @transform_7, window_bounds = array<i64: 1, 128>}, {pipeline_mode = #tpu.pipeline_mode<synchronous>, transform_indices = @transform_8, window_bounds = array<i64: 1, 128>}, {pipeline_mode = #tpu.pipeline_mode<synchronous>, transform_indices = @transform_9, window_bounds = array<i64: 1, 128>}, {transform_indices = @transform_10, window_bounds = array<i64: 4, 16, 128>}]} {
    %c0 = arith.constant 0 : index
    %c0_0 = arith.constant 0 : index
    %c0_1 = arith.constant 0 : index
    %0 = vector.load %arg1[%c0, %c0_0, %c0_1] : memref<4x16x128xbf16, #tpu.memory_space<vmem>>, vector<4x16x128xbf16>
    %1 = vector.shape_cast %0 : vector<4x16x128xbf16> to vector<64x128xbf16>
    %2 = arith.extf %1 : vector<64x128xbf16> to vector<64x128xf32>
    %c0_2 = arith.constant 0 : index
    %c0_3 = arith.constant 0 : index
    %c0_4 = arith.constant 0 : index
    %3 = vector.load %arg2[%c0_2, %c0_3, %c0_4] : memref<4x32x128xf32, #tpu.memory_space<vmem>>, vector<4x32x128xf32>
    %4 = vector.shape_cast %3 : vector<4x32x128xf32> to vector<128x128xf32>
    %c0_5 = arith.constant 0 : index
    %c0_6 = arith.constant 0 : index
    %5 = vector.load %arg3[%c0_5, %c0_6] : memref<128x128xbf16, #tpu.memory_space<vmem>>, vector<128x128xbf16>
    %cst = arith.constant dense<0.000000e+00> : vector<64x128xf32>
    %6 = tpu.matmul %1, %5, %cst {dimension_numbers = #tpu.dot_dimension_numbers<[1], [0], [0], [1], [0, 0, 1, 1], [], []>} : vector<64x128xbf16>, vector<128x128xbf16>, vector<64x128xf32> -> vector<64x128xf32>
    %c0_7 = arith.constant 0 : index
    %c0_8 = arith.constant 0 : index
    %7 = vector.load %arg4[%c0_7, %c0_8] : memref<1x128xf32, #tpu.memory_space<vmem>>, vector<1x128xf32>
    %8 = vector.broadcast %7 : vector<1x128xf32> to vector<64x128xf32>
    %9 = arith.addf %6, %8 : vector<64x128xf32>
    %10 = arith.truncf %4 : vector<128x128xf32> to vector<128x128xbf16>
    %c0_9 = arith.constant 0 : index
    %c0_10 = arith.constant 0 : index
    %11 = vector.load %arg5[%c0_9, %c0_10] : memref<128x256xbf16, #tpu.memory_space<vmem>>, vector<128x256xbf16>
    %cst_11 = arith.constant dense<0.000000e+00> : vector<128x256xf32>
    %12 = tpu.matmul %10, %11, %cst_11 {dimension_numbers = #tpu.dot_dimension_numbers<[1], [0], [0], [1], [0, 0, 1, 1], [], []>} : vector<128x128xbf16>, vector<128x256xbf16>, vector<128x256xf32> -> vector<128x256xf32>
    %c0_12 = arith.constant 0 : index
    %c0_13 = arith.constant 0 : index
    %13 = vector.load %arg6[%c0_12, %c0_13] : memref<1x256xf32, #tpu.memory_space<vmem>>, vector<1x256xf32>
    %14 = vector.broadcast %13 : vector<1x256xf32> to vector<128x256xf32>
    %15 = arith.addf %12, %14 : vector<128x256xf32>
    %16 = vector.extract_strided_slice %15 {offsets = [0, 0], sizes = [128, 128], strides = [1, 1]} : vector<128x256xf32> to vector<128x128xf32>
    %17 = vector.extract_strided_slice %15 {offsets = [0, 128], sizes = [128, 128], strides = [1, 1]} : vector<128x256xf32> to vector<128x128xf32>
    %18 = vector.extract_strided_slice %9 {offsets = [0, 0], sizes = [64, 32], strides = [1, 1]} : vector<64x128xf32> to vector<64x32xf32>
    %19 = vector.shape_cast %18 : vector<64x32xf32> to vector<4x16x32xf32>
    %20 = arith.truncf %19 : vector<4x16x32xf32> to vector<4x16x32xbf16>
    %21 = vector.extract_strided_slice %16 {offsets = [0, 0], sizes = [128, 32], strides = [1, 1]} : vector<128x128xf32> to vector<128x32xf32>
    %22 = vector.shape_cast %21 : vector<128x32xf32> to vector<4x32x32xf32>
    %23 = arith.truncf %22 : vector<4x32x32xf32> to vector<4x32x32xbf16>
    %24 = vector.extract_strided_slice %17 {offsets = [0, 0], sizes = [128, 32], strides = [1, 1]} : vector<128x128xf32> to vector<128x32xf32>
    %25 = vector.shape_cast %24 : vector<128x32xf32> to vector<4x32x32xf32>
    %26 = arith.truncf %25 : vector<4x32x32xf32> to vector<4x32x32xbf16>
    "tpu.trace_start"() <{level = 10 : i32, message = "bqd,bkd->bqk"}> : () -> ()
    %cst_14 = arith.constant dense<0.000000e+00> : vector<4x16x32xf32>
    %27 = tpu.matmul %20, %23, %cst_14 {dimension_numbers = #tpu.dot_dimension_numbers<[2], [2], [1], [1], [0, 0, 0, 1, 1, 1], [0], [0]>} : vector<4x16x32xbf16>, vector<4x32x32xbf16>, vector<4x16x32xf32> -> vector<4x16x32xf32>
    "tpu.trace_stop"() : () -> ()
    %cst_15 = arith.constant 0.176776692 : f32
    %28 = vector.broadcast %cst_15 : f32 to vector<4x16x32xf32>
    %29 = arith.mulf %27, %28 : vector<4x16x32xf32>
    %cst_16 = arith.constant dense<0xFF800000> : vector<4x16xf32>
    %30 = vector.multi_reduction <maximumf>, %29, %cst_16 [2] : vector<4x16x32xf32> to vector<4x16xf32>
    %31 = vector.shape_cast %30 : vector<4x16xf32> to vector<4x16x1xf32>
    %32 = vector.broadcast %31 : vector<4x16x1xf32> to vector<4x16x32xf32>
    %33 = arith.subf %29, %32 : vector<4x16x32xf32>
    %34 = math.exp %33 : vector<4x16x32xf32>
    %cst_17 = arith.constant dense<0.000000e+00> : vector<4x16xf32>
    %35 = vector.multi_reduction <add>, %34, %cst_17 [2] : vector<4x16x32xf32> to vector<4x16xf32>
    %36 = vector.shape_cast %35 : vector<4x16xf32> to vector<4x16x1xf32>
    %37 = tpu.reciprocal %36 {approx = true} : vector<4x16x1xf32> -> vector<4x16x1xf32>
    %38 = vector.broadcast %37 : vector<4x16x1xf32> to vector<4x16x32xf32>
    %39 = arith.mulf %34, %38 : vector<4x16x32xf32>
    %40 = arith.truncf %39 : vector<4x16x32xf32> to vector<4x16x32xbf16>
    "tpu.trace_start"() <{level = 10 : i32, message = "bqk,bkd->bqd"}> : () -> ()
    %cst_18 = arith.constant dense<0.000000e+00> : vector<4x16x32xf32>
    %41 = tpu.matmul %40, %26, %cst_18 {dimension_numbers = #tpu.dot_dimension_numbers<[2], [1], [1], [2], [0, 0, 0, 1, 1, 2], [0], [0]>} : vector<4x16x32xbf16>, vector<4x32x32xbf16>, vector<4x16x32xf32> -> vector<4x16x32xf32>
    "tpu.trace_stop"() : () -> ()
    %42 = vector.shape_cast %41 : vector<4x16x32xf32> to vector<64x32xf32>
    %43 = vector.extract_strided_slice %9 {offsets = [0, 32], sizes = [64, 32], strides = [1, 1]} : vector<64x128xf32> to vector<64x32xf32>
    %44 = vector.shape_cast %43 : vector<64x32xf32> to vector<4x16x32xf32>
    %45 = arith.truncf %44 : vector<4x16x32xf32> to vector<4x16x32xbf16>
    %46 = vector.extract_strided_slice %16 {offsets = [0, 32], sizes = [128, 32], strides = [1, 1]} : vector<128x128xf32> to vector<128x32xf32>
    %47 = vector.shape_cast %46 : vector<128x32xf32> to vector<4x32x32xf32>
    %48 = arith.truncf %47 : vector<4x32x32xf32> to vector<4x32x32xbf16>
    %49 = vector.extract_strided_slice %17 {offsets = [0, 32], sizes = [128, 32], strides = [1, 1]} : vector<128x128xf32> to vector<128x32xf32>
    %50 = vector.shape_cast %49 : vector<128x32xf32> to vector<4x32x32xf32>
    %51 = arith.truncf %50 : vector<4x32x32xf32> to vector<4x32x32xbf16>
    "tpu.trace_start"() <{level = 10 : i32, message = "bqd,bkd->bqk"}> : () -> ()
    %cst_19 = arith.constant dense<0.000000e+00> : vector<4x16x32xf32>
    %52 = tpu.matmul %45, %48, %cst_19 {dimension_numbers = #tpu.dot_dimension_numbers<[2], [2], [1], [1], [0, 0, 0, 1, 1, 1], [0], [0]>} : vector<4x16x32xbf16>, vector<4x32x32xbf16>, vector<4x16x32xf32> -> vector<4x16x32xf32>
    "tpu.trace_stop"() : () -> ()
    %cst_20 = arith.constant 0.176776692 : f32
    %53 = vector.broadcast %cst_20 : f32 to vector<4x16x32xf32>
    %54 = arith.mulf %52, %53 : vector<4x16x32xf32>
    %cst_21 = arith.constant dense<0xFF800000> : vector<4x16xf32>
    %55 = vector.multi_reduction <maximumf>, %54, %cst_21 [2] : vector<4x16x32xf32> to vector<4x16xf32>
    %56 = vector.shape_cast %55 : vector<4x16xf32> to vector<4x16x1xf32>
    %57 = vector.broadcast %56 : vector<4x16x1xf32> to vector<4x16x32xf32>
    %58 = arith.subf %54, %57 : vector<4x16x32xf32>
    %59 = math.exp %58 : vector<4x16x32xf32>
    %cst_22 = arith.constant dense<0.000000e+00> : vector<4x16xf32>
    %60 = vector.multi_reduction <add>, %59, %cst_22 [2] : vector<4x16x32xf32> to vector<4x16xf32>
    %61 = vector.shape_cast %60 : vector<4x16xf32> to vector<4x16x1xf32>
    %62 = tpu.reciprocal %61 {approx = true} : vector<4x16x1xf32> -> vector<4x16x1xf32>
    %63 = vector.broadcast %62 : vector<4x16x1xf32> to vector<4x16x32xf32>
    %64 = arith.mulf %59, %63 : vector<4x16x32xf32>
    %65 = arith.truncf %64 : vector<4x16x32xf32> to vector<4x16x32xbf16>
    "tpu.trace_start"() <{level = 10 : i32, message = "bqk,bkd->bqd"}> : () -> ()
    %cst_23 = arith.constant dense<0.000000e+00> : vector<4x16x32xf32>
    %66 = tpu.matmul %65, %51, %cst_23 {dimension_numbers = #tpu.dot_dimension_numbers<[2], [1], [1], [2], [0, 0, 0, 1, 1, 2], [0], [0]>} : vector<4x16x32xbf16>, vector<4x32x32xbf16>, vector<4x16x32xf32> -> vector<4x16x32xf32>
    "tpu.trace_stop"() : () -> ()
    %67 = vector.shape_cast %66 : vector<4x16x32xf32> to vector<64x32xf32>
    %68 = vector.extract_strided_slice %9 {offsets = [0, 64], sizes = [64, 32], strides = [1, 1]} : vector<64x128xf32> to vector<64x32xf32>
    %69 = vector.shape_cast %68 : vector<64x32xf32> to vector<4x16x32xf32>
    %70 = arith.truncf %69 : vector<4x16x32xf32> to vector<4x16x32xbf16>
    %71 = vector.extract_strided_slice %16 {offsets = [0, 64], sizes = [128, 32], strides = [1, 1]} : vector<128x128xf32> to vector<128x32xf32>
    %72 = vector.shape_cast %71 : vector<128x32xf32> to vector<4x32x32xf32>
    %73 = arith.truncf %72 : vector<4x32x32xf32> to vector<4x32x32xbf16>
    %74 = vector.extract_strided_slice %17 {offsets = [0, 64], sizes = [128, 32], strides = [1, 1]} : vector<128x128xf32> to vector<128x32xf32>
    %75 = vector.shape_cast %74 : vector<128x32xf32> to vector<4x32x32xf32>
    %76 = arith.truncf %75 : vector<4x32x32xf32> to vector<4x32x32xbf16>
    "tpu.trace_start"() <{level = 10 : i32, message = "bqd,bkd->bqk"}> : () -> ()
    %cst_24 = arith.constant dense<0.000000e+00> : vector<4x16x32xf32>
    %77 = tpu.matmul %70, %73, %cst_24 {dimension_numbers = #tpu.dot_dimension_numbers<[2], [2], [1], [1], [0, 0, 0, 1, 1, 1], [0], [0]>} : vector<4x16x32xbf16>, vector<4x32x32xbf16>, vector<4x16x32xf32> -> vector<4x16x32xf32>
    "tpu.trace_stop"() : () -> ()
    %cst_25 = arith.constant 0.176776692 : f32
    %78 = vector.broadcast %cst_25 : f32 to vector<4x16x32xf32>
    %79 = arith.mulf %77, %78 : vector<4x16x32xf32>
    %cst_26 = arith.constant dense<0xFF800000> : vector<4x16xf32>
    %80 = vector.multi_reduction <maximumf>, %79, %cst_26 [2] : vector<4x16x32xf32> to vector<4x16xf32>
    %81 = vector.shape_cast %80 : vector<4x16xf32> to vector<4x16x1xf32>
    %82 = vector.broadcast %81 : vector<4x16x1xf32> to vector<4x16x32xf32>
    %83 = arith.subf %79, %82 : vector<4x16x32xf32>
    %84 = math.exp %83 : vector<4x16x32xf32>
    %cst_27 = arith.constant dense<0.000000e+00> : vector<4x16xf32>
    %85 = vector.multi_reduction <add>, %84, %cst_27 [2] : vector<4x16x32xf32> to vector<4x16xf32>
    %86 = vector.shape_cast %85 : vector<4x16xf32> to vector<4x16x1xf32>
    %87 = tpu.reciprocal %86 {approx = true} : vector<4x16x1xf32> -> vector<4x16x1xf32>
    %88 = vector.broadcast %87 : vector<4x16x1xf32> to vector<4x16x32xf32>
    %89 = arith.mulf %84, %88 : vector<4x16x32xf32>
    %90 = arith.truncf %89 : vector<4x16x32xf32> to vector<4x16x32xbf16>
    "tpu.trace_start"() <{level = 10 : i32, message = "bqk,bkd->bqd"}> : () -> ()
    %cst_28 = arith.constant dense<0.000000e+00> : vector<4x16x32xf32>
    %91 = tpu.matmul %90, %76, %cst_28 {dimension_numbers = #tpu.dot_dimension_numbers<[2], [1], [1], [2], [0, 0, 0, 1, 1, 2], [0], [0]>} : vector<4x16x32xbf16>, vector<4x32x32xbf16>, vector<4x16x32xf32> -> vector<4x16x32xf32>
    "tpu.trace_stop"() : () -> ()
    %92 = vector.shape_cast %91 : vector<4x16x32xf32> to vector<64x32xf32>
    %93 = vector.extract_strided_slice %9 {offsets = [0, 96], sizes = [64, 32], strides = [1, 1]} : vector<64x128xf32> to vector<64x32xf32>
    %94 = vector.shape_cast %93 : vector<64x32xf32> to vector<4x16x32xf32>
    %95 = arith.truncf %94 : vector<4x16x32xf32> to vector<4x16x32xbf16>
    %96 = vector.extract_strided_slice %16 {offsets = [0, 96], sizes = [128, 32], strides = [1, 1]} : vector<128x128xf32> to vector<128x32xf32>
    %97 = vector.shape_cast %96 : vector<128x32xf32> to vector<4x32x32xf32>
    %98 = arith.truncf %97 : vector<4x32x32xf32> to vector<4x32x32xbf16>
    %99 = vector.extract_strided_slice %17 {offsets = [0, 96], sizes = [128, 32], strides = [1, 1]} : vector<128x128xf32> to vector<128x32xf32>
    %100 = vector.shape_cast %99 : vector<128x32xf32> to vector<4x32x32xf32>
    %101 = arith.truncf %100 : vector<4x32x32xf32> to vector<4x32x32xbf16>
    "tpu.trace_start"() <{level = 10 : i32, message = "bqd,bkd->bqk"}> : () -> ()
    %cst_29 = arith.constant dense<0.000000e+00> : vector<4x16x32xf32>
    %102 = tpu.matmul %95, %98, %cst_29 {dimension_numbers = #tpu.dot_dimension_numbers<[2], [2], [1], [1], [0, 0, 0, 1, 1, 1], [0], [0]>} : vector<4x16x32xbf16>, vector<4x32x32xbf16>, vector<4x16x32xf32> -> vector<4x16x32xf32>
    "tpu.trace_stop"() : () -> ()
    %cst_30 = arith.constant 0.176776692 : f32
    %103 = vector.broadcast %cst_30 : f32 to vector<4x16x32xf32>
    %104 = arith.mulf %102, %103 : vector<4x16x32xf32>
    %cst_31 = arith.constant dense<0xFF800000> : vector<4x16xf32>
    %105 = vector.multi_reduction <maximumf>, %104, %cst_31 [2] : vector<4x16x32xf32> to vector<4x16xf32>
    %106 = vector.shape_cast %105 : vector<4x16xf32> to vector<4x16x1xf32>
    %107 = vector.broadcast %106 : vector<4x16x1xf32> to vector<4x16x32xf32>
    %108 = arith.subf %104, %107 : vector<4x16x32xf32>
    %109 = math.exp %108 : vector<4x16x32xf32>
    %cst_32 = arith.constant dense<0.000000e+00> : vector<4x16xf32>
    %110 = vector.multi_reduction <add>, %109, %cst_32 [2] : vector<4x16x32xf32> to vector<4x16xf32>
    %111 = vector.shape_cast %110 : vector<4x16xf32> to vector<4x16x1xf32>
    %112 = tpu.reciprocal %111 {approx = true} : vector<4x16x1xf32> -> vector<4x16x1xf32>
    %113 = vector.broadcast %112 : vector<4x16x1xf32> to vector<4x16x32xf32>
    %114 = arith.mulf %109, %113 : vector<4x16x32xf32>
    %115 = arith.truncf %114 : vector<4x16x32xf32> to vector<4x16x32xbf16>
    "tpu.trace_start"() <{level = 10 : i32, message = "bqk,bkd->bqd"}> : () -> ()
    %cst_33 = arith.constant dense<0.000000e+00> : vector<4x16x32xf32>
    %116 = tpu.matmul %115, %101, %cst_33 {dimension_numbers = #tpu.dot_dimension_numbers<[2], [1], [1], [2], [0, 0, 0, 1, 1, 2], [0], [0]>} : vector<4x16x32xbf16>, vector<4x32x32xbf16>, vector<4x16x32xf32> -> vector<4x16x32xf32>
    "tpu.trace_stop"() : () -> ()
    %117 = vector.shape_cast %116 : vector<4x16x32xf32> to vector<64x32xf32>
    %118 = tpu.concatenate %42, %67, %92, %117 in 1 : vector<64x32xf32>, vector<64x32xf32>, vector<64x32xf32>, vector<64x32xf32> -> vector<64x128xf32>
    %119 = arith.truncf %118 : vector<64x128xf32> to vector<64x128xbf16>
    %c0_34 = arith.constant 0 : index
    %c0_35 = arith.constant 0 : index
    %120 = vector.load %arg7[%c0_34, %c0_35] : memref<128x128xbf16, #tpu.memory_space<vmem>>, vector<128x128xbf16>
    %cst_36 = arith.constant dense<0.000000e+00> : vector<64x128xf32>
    %121 = tpu.matmul %119, %120, %cst_36 {dimension_numbers = #tpu.dot_dimension_numbers<[1], [0], [0], [1], [0, 0, 1, 1], [], []>} : vector<64x128xbf16>, vector<128x128xbf16>, vector<64x128xf32> -> vector<64x128xf32>
    %c0_37 = arith.constant 0 : index
    %c0_38 = arith.constant 0 : index
    %122 = vector.load %arg8[%c0_37, %c0_38] : memref<1x128xf32, #tpu.memory_space<vmem>>, vector<1x128xf32>
    %123 = vector.broadcast %122 : vector<1x128xf32> to vector<64x128xf32>
    %124 = arith.addf %121, %123 : vector<64x128xf32>
    %125 = arith.addf %2, %124 : vector<64x128xf32>
    %c0_39 = arith.constant 0 : index
    %c0_40 = arith.constant 0 : index
    %126 = vector.load %arg9[%c0_39, %c0_40] : memref<1x128xf32, #tpu.memory_space<vmem>>, vector<1x128xf32>
    %c0_41 = arith.constant 0 : index
    %c0_42 = arith.constant 0 : index
    %127 = vector.load %arg10[%c0_41, %c0_42] : memref<1x128xf32, #tpu.memory_space<vmem>>, vector<1x128xf32>
    %cst_43 = arith.constant dense<0.000000e+00> : vector<64xf32>
    %128 = vector.multi_reduction <add>, %125, %cst_43 [1] : vector<64x128xf32> to vector<64xf32>
    %129 = vector.shape_cast %128 : vector<64xf32> to vector<64x1xf32>
    %cst_44 = arith.constant 1.280000e+02 : f32
    %130 = vector.broadcast %cst_44 : f32 to vector<64x1xf32>
    %131 = arith.divf %129, %130 : vector<64x1xf32>
    %132 = vector.broadcast %131 : vector<64x1xf32> to vector<64x128xf32>
    %133 = arith.subf %125, %132 : vector<64x128xf32>
    %134 = arith.mulf %133, %133 : vector<64x128xf32>
    %cst_45 = arith.constant dense<0.000000e+00> : vector<64xf32>
    %135 = vector.multi_reduction <add>, %134, %cst_45 [1] : vector<64x128xf32> to vector<64xf32>
    %136 = vector.shape_cast %135 : vector<64xf32> to vector<64x1xf32>
    %cst_46 = arith.constant 1.280000e+02 : f32
    %137 = vector.broadcast %cst_46 : f32 to vector<64x1xf32>
    %138 = arith.divf %136, %137 : vector<64x1xf32>
    %cst_47 = arith.constant 9.99999974E-6 : f32
    %139 = vector.broadcast %cst_47 : f32 to vector<64x1xf32>
    %140 = arith.addf %138, %139 : vector<64x1xf32>
    %141 = math.rsqrt %140 : vector<64x1xf32>
    %142 = vector.broadcast %141 : vector<64x1xf32> to vector<64x128xf32>
    %143 = arith.mulf %133, %142 : vector<64x128xf32>
    %144 = vector.broadcast %126 : vector<1x128xf32> to vector<64x128xf32>
    %145 = arith.mulf %143, %144 : vector<64x128xf32>
    %146 = vector.broadcast %127 : vector<1x128xf32> to vector<64x128xf32>
    %147 = arith.addf %145, %146 : vector<64x128xf32>
    %148 = vector.shape_cast %147 : vector<64x128xf32> to vector<4x16x128xf32>
    %149 = arith.truncf %148 : vector<4x16x128xf32> to vector<4x16x128xbf16>
    %c0_48 = arith.constant 0 : index
    %c0_49 = arith.constant 0 : index
    %c0_50 = arith.constant 0 : index
    %150 = vector.load %arg11[%c0_48, %c0_49, %c0_50] : memref<4x16x128xbf16, #tpu.memory_space<vmem>>, vector<4x16x128xbf16>
    tpu.vector_store %arg11[%c0_48, %c0_49, %c0_50], %149 {strides = array<i32>} : memref<4x16x128xbf16, #tpu.memory_space<vmem>>, vector<4x16x128xbf16>,
    return
  }
  func.func @transform_0(%arg0: i32) -> (i32, i32, i32) {
    %c0_i32 = arith.constant 0 : i32
    %c0_i32_0 = arith.constant 0 : i32
    %c0_i32_1 = arith.constant 0 : i32
    return %arg0, %c0_i32, %c0_i32_0 : i32, i32, i32
  }
  func.func @transform_1(%arg0: i32) -> (i32, i32, i32) {
    %c0_i32 = arith.constant 0 : i32
    %c0_i32_0 = arith.constant 0 : i32
    %c0_i32_1 = arith.constant 0 : i32
    return %arg0, %c0_i32, %c0_i32_0 : i32, i32, i32
  }
  func.func @transform_2(%arg0: i32) -> (i32, i32) {
    %c0_i32 = arith.constant 0 : i32
    %c0_i32_0 = arith.constant 0 : i32
    %c0_i32_1 = arith.constant 0 : i32
    return %c0_i32, %c0_i32_0 : i32, i32
  }
  func.func @transform_3(%arg0: i32) -> (i32, i32) {
    %c0_i32 = arith.constant 0 : i32
    %c0_i32_0 = arith.constant 0 : i32
    %c0_i32_1 = arith.constant 0 : i32
    return %c0_i32, %c0_i32_0 : i32, i32
  }
  func.func @transform_4(%arg0: i32) -> (i32, i32) {
    %c0_i32 = arith.constant 0 : i32
    %c0_i32_0 = arith.constant 0 : i32
    %c0_i32_1 = arith.constant 0 : i32
    return %c0_i32, %c0_i32_0 : i32, i32
  }
  func.func @transform_5(%arg0: i32) -> (i32, i32) {
    %c0_i32 = arith.constant 0 : i32
    %c0_i32_0 = arith.constant 0 : i32
    %c0_i32_1 = arith.constant 0 : i32
    return %c0_i32, %c0_i32_0 : i32, i32
  }
  func.func @transform_6(%arg0: i32) -> (i32, i32) {
    %c0_i32 = arith.constant 0 : i32
    %c0_i32_0 = arith.constant 0 : i32
    %c0_i32_1 = arith.constant 0 : i32
    return %c0_i32, %c0_i32_0 : i32, i32
  }
  func.func @transform_7(%arg0: i32) -> (i32, i32) {
    %c0_i32 = arith.constant 0 : i32
    %c0_i32_0 = arith.constant 0 : i32
    %c0_i32_1 = arith.constant 0 : i32
    return %c0_i32, %c0_i32_0 : i32, i32
  }
  func.func @transform_8(%arg0: i32) -> (i32, i32) {
    %c0_i32 = arith.constant 0 : i32
    %c0_i32_0 = arith.constant 0 : i32
    %c0_i32_1 = arith.constant 0 : i32
    return %c0_i32, %c0_i32_0 : i32, i32
  }
  func.func @transform_9(%arg0: i32) -> (i32, i32) {
    %c0_i32 = arith.constant 0 : i32
    %c0_i32_0 = arith.constant 0 : i32
    %c0_i32_1 = arith.constant 0 : i32
    return %c0_i32, %c0_i32_0 : i32, i32
  }
  func.func @transform_10(%arg0: i32) -> (i32, i32, i32) {
    %c0_i32 = arith.constant 0 : i32
    %c0_i32_0 = arith.constant 0 : i32
    %c0_i32_1 = arith.constant 0 : i32
    return %arg0, %c0_i32, %c0_i32_0 : i32, i32, i32
  }
}

</mosaic_0001>

<bundles_post_ra>
// kernel: mesh_decoder_layer_forward.5
= control target key start
LH: loop header
LB: loop body
LE: loop exit
PB: predicated region body
PF: predicated region fallthrough
CT: control target
= control target key end

     0   :  { %s1131_s24 = smov 0   ;;  %s1329_s0 = inlined_call_operand.vmem [shape: bf16[128,128], index: 0, kind: input, shape index: {}]   ;;  %s1330_s1 = inlined_call_operand.vmem [shape: bf16[128,256], index: 1, kind: input, shape index: {}]   ;;  %s1331_s2 = inlined_call_operand.vmem [shape: f32[1,256], index: 2, kind: input, shape index: {}]   ;;  %s1332_s3 = inlined_call_operand.vmem [shape: bf16[256,128], index: 3, kind: input, shape index: {}]   ;;  %s1333_s4 = inlined_call_operand.vmem [shape: f32[1,128], index: 4, kind: input, shape index: {}]   ;;  %s1334_s5 = inlined_call_operand.vmem [shape: f32[1,128], index: 5, kind: input, shape index: {}]   ;;  %s1335_s6 = inlined_call_operand.vmem [shape: f32[1,128], index: 6, kind: input, shape index: {}]   ;;  %s1336_s7 = inlined_call_operand.vmem [shape: f32[128,128], index: 7, kind: output, shape index: {}]  }
   0x1 LB: > { %s919_s25 = sadd.s32 4294967295, %s1088_s24   ;;  %p923_p0 = scmp.ge.s32.totalorder %s1088_s24, 1  ;;  %s1088_s24 = sphi %s1131_s24, %s17_s24  }
   0x2   : > { %p238_p1 = scmp.lt.s32.totalorder %s1088_s24, 3 }
   0x4   : > { %p239_p2 = pnand %p923_p0, %p238_p1 }
   0x5   : > { %v1018_v0 = vld [vmem:[%s1330_s1 + $0x4] ss:$8 sps:$4 sm:$0xff] (!%p239_p2)   ;;  %v1020_v1 = vld [vmem:[%s1330_s1] ss:$8 sps:$4 sm:$0xff] (!%p239_p2)   ;;  %v1090_v2 = vmov (!%p239_p2), 0   ;;  %s924_s17 = sshll.u32 (!%p239_p2), %s919_s25, 3  ;;  %v309_v37 = vlaneseq (!%p239_p2) }
   0x6   : > { %242 = sbr.rel (%p239_p2) target bundleno = 817 (0x331), region = 48  ;;  %455 = vmatprep.mubr.bf16.mxu0 (!%p239_p2), %v1090_v2  ;;  %423 = vmatprep.subr.bf16.mxu0 (!%p239_p2), %v1018_v0  ;;  %v1021_v3 = vld [vmem:[%s1330_s1 + $0x14] ss:$8 sps:$4 sm:$0xff] (!%p239_p2)   ;;  %v1023_v4 = vld [vmem:[%s1330_s1 + $0x10] ss:$8 sps:$4 sm:$0xff] (!%p239_p2)   ;;  %p271_p3 = scmp.lt.s32.totalorder (!%p239_p2), %s924_s17, 15 }
   0x7   : > { %424 = vmatpush1.bf16.msra.mxu0 (!%p239_p2), %v1020_v1  ;;  %v1024_v5 = vld [vmem:[%s1330_s1 + $0x24] ss:$8 sps:$4 sm:$0xff] (!%p239_p2)   ;;  %v1026_v6 = vld [vmem:[%s1330_s1 + $0x20] ss:$8 sps:$4 sm:$0xff] (!%p239_p2)   ;;  %v1027_v7 = vld [vmem:[%s1330_s1 + $0x34] ss:$8 sps:$4 sm:$0xff] (!%p239_p2)  }
   0x8   : > { %425 = vmatprep.subr.bf16.mxu0 (!%p239_p2), %v1021_v3  ;;  %v1029_v8 = vld [vmem:[%s1330_s1 + $0x30] ss:$8 sps:$4 sm:$0xff] (!%p239_p2)   ;;  %v1030_v9 = vld [vmem:[%s1330_s1 + $0x44] ss:$8 sps:$4 sm:$0xff] (!%p239_p2)   ;;  %v1032_v11 = vld [vmem:[%s1330_s1 + $0x40] ss:$8 sps:$4 sm:$0xff] (!%p239_p2)  }
   0x9   : > { %v1046_v10 = vld [vmem:[%s1332_s3 + $0x40] sm:$0xff] (!%p239_p2)   ;;  %v1033_v13 = vld [vmem:[%s1330_s1 + $0x54] ss:$8 sps:$4 sm:$0xff] (!%p239_p2)   ;;  %v1048_v14 = vld [vmem:[%s1332_s3 + $0x48] sm:$0xff] (!%p239_p2)   ;;  %v310_v38 = vshrl.u32 (!%p239_p2), %v309_v37, 7 }
   0xa   : > { %v1047_v12 = vld [vmem:[%s1332_s3] sm:$0xff] (!%p239_p2)   ;;  %969 = vmatprep.subr.bf16.mxu1 (!%p239_p2), %v1046_v10  ;;  %v1049_v15 = vld [vmem:[%s1332_s3 + $0x8] sm:$0xff] (!%p239_p2)   ;;  %v1050_v16 = vld [vmem:[%s1332_s3 + $0x50] sm:$0xff] (!%p239_p2)  }
   0xb   : > { %426 = vmatpush1.bf16.msra.mxu0 (!%p239_p2), %v1023_v4  ;;  %970 = vmatpush3.bf16.msra.mxu1 (!%p239_p2), %v1047_v12  ;;  %v1035_v17 = vld [vmem:[%s1330_s1 + $0x50] ss:$8 sps:$4 sm:$0xff] (!%p239_p2)   ;;  %v1036_v18 = vld [vmem:[%s1330_s1 + $0x64] ss:$8 sps:$4 sm:$0xff] (!%p239_p2)   ;;  %v1038_v21 = vld [vmem:[%s1330_s1 + $0x60] ss:$8 sps:$4 sm:$0xff] (!%p239_p2)  }
   0xc   : > { %427 = vmatprep.subr.bf16.mxu0 (!%p239_p2), %v1024_v5  ;;  %971 = vmatprep.subr.bf16.mxu1 (!%p239_p2), %v1048_v14  ;;  %v1051_v19 = vld [vmem:[%s1332_s3 + $0x10] sm:$0xff] (!%p239_p2)   ;;  %v1052_v20 = vld [vmem:[%s1332_s3 + $0x58] sm:$0xff] (!%p239_p2)   ;;  %v1054_v24 = vld [vmem:[%s1332_s3 + $0x60] sm:$0xff] (!%p239_p2)   ;;  %v311_v39 = vsub.s32 (!%p239_p2), 0, %v310_v38  ;;  %v315_v41 = vsub.s32 (!%p239_p2), 1, %v310_v38 }
   0xd   : > { %s1338_s17 = smov (!%p271_p3, %s924_s17), 15  ;;  %v1039_v22 = vld [vmem:[%s1330_s1 + $0x74] ss:$8 sps:$4 sm:$0xff]   ;;  %v1041_v25 = vld [vmem:[%s1330_s1 + $0x70] ss:$8 sps:$4 sm:$0xff]   ;;  %v1055_v27 = vld [vmem:[%s1332_s3 + $0x20] sm:$0xff]  }
   0xe   : > { %s925_s21 = sshll.u32 %s1338_s17, 2  ;;  %v1053_v23 = vld [vmem:[%s1332_s3 + $0x18] sm:$0xff]   ;;  %v1056_v28 = vld [vmem:[%s1332_s3 + $0x68] sm:$0xff]   ;;  %v1058_v33 = vld [vmem:[%s1332_s3 + $0x70] sm:$0xff]   ;;  %s927_s14 = sshll.u32 %s1338_s17, 3 }
   0xf   : > { %428 = vmatpush1.bf16.msra.mxu0 %v1026_v6  ;;  %972 = vmatpush3.bf16.msra.mxu1 %v1049_v15  ;;  %s274_s12 = scalar_lea.vmem %s1329_s0, %s925_s21  ;;  %v1057_v32 = vld [vmem:[%s1332_s3 + $0x28] sm:$0xff]   ;;  %v1059_v34 = vld [vmem:[%s1332_s3 + $0x30] sm:$0xff]   ;;  %v1060_v35 = vld [vmem:[%s1332_s3 + $0x78] sm:$0xff]   ;;  %s1309_s20 = scalar_lea.vmem %s1336_s7, %s927_s14 }
  0x10   : > { %429 = vmatprep.subr.bf16.mxu0 %v1027_v7  ;;  %973 = vmatprep.subr.bf16.mxu1 %v1050_v16  ;;  %v1221_v26 = vld [vmem:[%s274_s12] sm:$0xff]   ;;  %v1231_v29 = vld [vmem:[%s274_s12 + $0x8] sm:$0xff]   ;;  %v1235_v30 = vld [vmem:[%s274_s12 + $0x10] sm:$0xff]  }
  0x11   : > { %v1239_v31 = vld [vmem:[%s274_s12 + $0x18] sm:$0xff]   ;;  %v307_v40 = vld [vmem:[%s1331_s2] sm:$0x3] }
  0x12   : > { %v1061_v36 = vld [vmem:[%s1332_s3 + $0x38] sm:$0xff]   ;;  %v312_v42 = vrot.slane %v307_v40, %v311_v39  ;;  %v316_v43 = vrot.slane %v307_v40, %v315_v41  ;;  %v948_v41 = vld [vmem:[%s1333_s4] ss:$0 sm:$0xff] }
  0x13   : > { %430 = vmatpush1.bf16.msra.mxu0 %v1029_v8  ;;  %974 = vmatpush3.bf16.msra.mxu1 %v1051_v19 }
  0x14   : > { %431 = vmatprep.subr.bf16.mxu0 %v1030_v9  ;;  %975 = vmatprep.subr.bf16.mxu1 %v1052_v20 }
  0x17   : > { %432 = vmatpush1.bf16.msra.mxu0 %v1032_v11  ;;  %976 = vmatpush3.bf16.msra.mxu1 %v1053_v23 }
  0x18   : > { %433 = vmatprep.subr.bf16.mxu0 %v1033_v13  ;;  %977 = vmatprep.subr.bf16.mxu1 %v1054_v24 }
  0x1b   : > { %434 = vmatpush1.bf16.msra.mxu0 %v1035_v17  ;;  %978 = vmatpush3.bf16.msra.mxu1 %v1055_v27 }
  0x1c   : > { %435 = vmatprep.subr.bf16.mxu0 %v1036_v18  ;;  %979 = vmatprep.subr.bf16.mxu1 %v1056_v28 }
  0x1f   : > { %436 = vmatpush1.bf16.msra.mxu0 %v1038_v21  ;;  %980 = vmatpush3.bf16.msra.mxu1 %v1057_v32 }
  0x20   : > { %437 = vmatprep.subr.bf16.mxu0 %v1039_v22  ;;  %981 = vmatprep.subr.bf16.mxu1 %v1058_v33 }
  0x23   : > { %438 = vmatpush1.bf16.msra.mxu0 %v1041_v25  ;;  %982 = vmatpush3.bf16.msra.mxu1 %v1059_v34 }
  0x24   : > { %983 = vmatprep.subr.bf16.mxu1 %v1060_v35 }
  0x26   : > { %456 = vmatmul.mubr.bf16.vlgmr.msra.gmra.mrb[0].mxu0 %v1221_v26 }
  0x27   : > { %465 = vmatprep.mubr.bf16.mxu0 %v1090_v2  ;;  %984 = vmatpush3.bf16.msra.mxu1 %v1061_v36 }
  0x2e   : > { %466 = vmatmul.mubr.bf16.gmra.mrb[4].mxu0 %v1231_v29 }
  0x2f   : > { %475 = vmatprep.mubr.bf16.mxu0 %v1090_v2 }
  0x36   : > { %476 = vmatmul.mubr.bf16.gmra.mrb[8].mxu0 %v1235_v30 }
  0x37   : > { %485 = vmatprep.mubr.bf16.mxu0 %v1090_v2 }
  0x3e   : > { %486 = vmatmul.mubr.bf16.gmra.mrb[12].mxu0 %v1239_v31 }
  0xf9   : > { %v457_v44 = vpop.f32.mrb[0].mxu0 }
  0xfa   : > { %v458_v45 = vadd.f32 %v457_v44, %v312_v42  ;;  %v459_v46 = vpop.f32.mrb[1].mxu0 }
  0xfb   : > { %v460_v47 = vadd.f32 %v459_v46, %v316_v43  ;;  %v461_v48 = vpop.f32.mrb[2].mxu0 }
  0xfc   : > { %v462_v49 = vadd.f32 %v461_v48, %v312_v42  ;;  %v463_v50 = vpop.f32.mrb[3].mxu0  ;;  %v496_v52 = vmax.f32 %v458_v45, 0.0 }
  0xfd   : > { %v464_v51 = vadd.f32 %v463_v50, %v316_v43  ;;  %v497_v54 = vmax.f32 %v460_v47, 0.0 }
  0xfe   : > { %v498_v53 = vmax.f32 %v462_v49, 0.0 }
  0xff   : > { %v499_v55 = vmax.f32 %v464_v51, 0.0  ;;  %v721_v51 = vunpack.c.h.bf16 %v1221_v26 }
 0x100   : > { %v512_v56 = vpack.c.bf16 %v498_v53, %v496_v52 }
 0x101   : > { %v467_v57 = vpop.f32.mrb[4].mxu0  ;;  %v513_v58 = vpack.c.bf16 %v499_v55, %v497_v54 }
 0x102   : > { %v468_v59 = vadd.f32 %v467_v57, %v312_v42  ;;  %v469_v60 = vpop.f32.mrb[5].mxu0  ;;  %v722_v57 = vunpack.c.l.bf16 %v1231_v29 }
 0x103   : > { %v470_v61 = vadd.f32 %v469_v60, %v316_v43  ;;  %v471_v62 = vpop.f32.mrb[6].mxu0  ;;  %687 = vmatprep.mubr.bf16.mxu1 %v513_v58 }
 0x104   : > { %v472_v63 = vadd.f32 %v471_v62, %v312_v42  ;;  %v473_v0 = vpop.f32.mrb[7].mxu0  ;;  %688 = vmatmul.mubr.bf16.vlgmr.msra.gmra.mrb[0].mxu1 %v512_v56  ;;  %v500_v2 = vmax.f32 %v468_v59, 0.0 }
 0x105   : > { %v474_v1 = vadd.f32 %v473_v0, %v316_v43  ;;  %v501_v4 = vmax.f32 %v470_v61, 0.0 }
 0x106   : > { %v502_v3 = vmax.f32 %v472_v63, 0.0  ;;  %v723_v63 = vunpack.c.h.bf16 %v1231_v29 }
 0x107   : > { %v503_v5 = vmax.f32 %v474_v1, 0.0 }
 0x108   : > { %v514_v6 = vpack.c.bf16 %v502_v3, %v500_v2 }
 0x109   : > { %v515_v7 = vpack.c.bf16 %v503_v5, %v501_v4  ;;  %v477_v8 = vpop.f32.mrb[8].mxu0  ;;  %v724_v4 = vunpack.c.l.bf16 %v1235_v30 }
 0x10a   : > { %v478_v9 = vadd.f32 %v477_v8, %v312_v42  ;;  %v479_v10 = vpop.f32.mrb[9].mxu0  ;;  %v725_v8 = vunpack.c.h.bf16 %v1235_v30 }
 0x10b   : > { %v480_v11 = vadd.f32 %v479_v10, %v316_v43  ;;  %v481_v12 = vpop.f32.mrb[10].mxu0  ;;  %695 = vmatprep.mubr.bf16.mxu1 %v515_v7 }
 0x10c   : > { %v482_v13 = vadd.f32 %v481_v12, %v312_v42  ;;  %v483_v14 = vpop.f32.mrb[11].mxu0  ;;  %696 = vmatmul.mubr.bf16.gmra.mrb[4].mxu1 %v514_v6  ;;  %v504_v16 = vmax.f32 %v478_v9, 0.0 }
 0x10d   : > { %v484_v15 = vadd.f32 %v483_v14, %v316_v43  ;;  %v505_v18 = vmax.f32 %v480_v11, 0.0 }
 0x10e   : > { %v506_v17 = vmax.f32 %v482_v13, 0.0 }
 0x10f   : > { %v507_v19 = vmax.f32 %v484_v15, 0.0  ;;  %v726_v15 = vunpack.c.l.bf16 %v1239_v31 }
 0x110   : > { %v516_v20 = vpack.c.bf16 %v506_v17, %v504_v16 }
 0x111   : > { %v517_v21 = vpack.c.bf16 %v507_v19, %v505_v18  ;;  %v487_v22 = vpop.f32.mrb[12].mxu0  ;;  %v727_v19 = vunpack.c.h.bf16 %v1239_v31 }
 0x112   : > { %v488_v23 = vadd.f32 %v487_v22, %v312_v42  ;;  %v489_v24 = vpop.f32.mrb[13].mxu0 }
 0x113   : > { %v490_v25 = vadd.f32 %v489_v24, %v316_v43  ;;  %v491_v27 = vpop.f32.mrb[14].mxu0  ;;  %703 = vmatprep.mubr.bf16.mxu1 %v517_v21 }
 0x114   : > { %v492_v28 = vadd.f32 %v491_v27, %v312_v42  ;;  %v493_v32 = vpop.f32.mrb[15].mxu0  ;;  %704 = vmatmul.mubr.bf16.gmra.mrb[8].mxu1 %v516_v20  ;;  %v508_v34 = vmax.f32 %v488_v23, 0.0  ;;  %v720_v42 = vunpack.c.l.bf16 %v1221_v26 }
 0x115   : > { %v494_v33 = vadd.f32 %v493_v32, %v316_v43  ;;  %v509_v36 = vmax.f32 %v490_v25, 0.0 }
 0x116   : > { %v510_v35 = vmax.f32 %v492_v28, 0.0 }
 0x117   : > { %v511_v37 = vmax.f32 %v494_v33, 0.0 }
 0x118   : > { %v518_v38 = vpack.c.bf16 %v510_v35, %v508_v34 }
 0x119   : > { %v519_v39 = vpack.c.bf16 %v511_v37, %v509_v36 }
 0x11b   : > { %711 = vmatprep.mubr.bf16.mxu1 %v519_v39 }
 0x11c   : > { %712 = vmatmul.mubr.bf16.gmra.mrb[12].mxu1 %v518_v38 }
 0x1d7   : > { %v985_v40 = vpop.f32.mrb[0].mxu1 }
 0x1d8   : > { %v986_v44 = vpop.f32.mrb[1].mxu1 }
 0x1d9   : > { %v987_v45 = vadd.f32 %v986_v44, %v985_v40  ;;  %v988_v46 = vpop.f32.mrb[2].mxu1 }
 0x1da   : > { %v989_v47 = vpop.f32.mrb[3].mxu1 }
 0x1db   : > { %v690_v43 = vadd.f32 %v987_v45, %v948_v41  ;;  %v990_v48 = vadd.f32 %v989_v47, %v988_v46 }
 0x1dd   : > { %v693_v49 = vadd.f32 %v990_v48, %v948_v41  ;;  %v728_v50 = vadd.f32 %v720_v42, %v690_v43 }
 0x1df   : > { %v991_v52 = vpop.f32.mrb[4].mxu1  ;;  %738 = vadd.xlane.f32.xlu0 %v728_v50  ;;  %v729_v56 = vadd.f32 %v721_v51, %v693_v49 }
 0x1e0   : > { %v992_v53 = vpop.f32.mrb[5].mxu1 }
 0x1e1   : > { %v993_v54 = vadd.f32 %v992_v53, %v991_v52  ;;  %v994_v55 = vpop.f32.mrb[6].mxu1 }
 0x1e2   : > { %v995_v58 = vpop.f32.mrb[7].mxu1 }
 0x1e3   : > { %v698_v59 = vadd.f32 %v993_v54, %v948_v41  ;;  %v996_v60 = vadd.f32 %v995_v58, %v994_v55  ;;  %740 = vadd.xlane.f32.xlu0 %v729_v56 }
 0x1e5   : > { %v701_v61 = vadd.f32 %v996_v60, %v948_v41  ;;  %v730_v62 = vadd.f32 %v722_v57, %v698_v59 }
 0x1e7   : > { %v997_v0 = vpop.f32.mrb[8].mxu1  ;;  %742 = vadd.xlane.f32.xlu1 %v730_v62  ;;  %v731_v3 = vadd.f32 %v723_v63, %v701_v61 }
 0x1e8   : > { %v998_v1 = vpop.f32.mrb[9].mxu1 }
 0x1e9   : > { %v999_v26 = vadd.f32 %v998_v1, %v997_v0  ;;  %v1000_v2 = vpop.f32.mrb[10].mxu1 }
 0x1ea   : > { %v1001_v5 = vpop.f32.mrb[11].mxu1 }
 0x1eb   : > { %v706_v6 = vadd.f32 %v999_v26, %v948_v41  ;;  %v1002_v7 = vadd.f32 %v1001_v5, %v1000_v2  ;;  %744 = vadd.xlane.f32.xlu1 %v731_v3 }
 0x1ed   : > { %v709_v9 = vadd.f32 %v1002_v7, %v948_v41  ;;  %v732_v10 = vadd.f32 %v724_v4, %v706_v6  ;;  %v965_v4 = vld [vmem:[%s1334_s5] ss:$0 sm:$0xff] }
 0x1ef   : > { %v1003_v11 = vpop.f32.mrb[12].mxu1  ;;  %746 = vadd.xlane.f32.xlu0 %v732_v10  ;;  %v733_v12 = vadd.f32 %v725_v8, %v709_v9  ;;  %v966_v8 = vld [vmem:[%s1335_s6] ss:$0 sm:$0xff] }
 0x1f0   : > { %v1004_v29 = vpop.f32.mrb[13].mxu1 }
 0x1f1   : > { %v1005_v13 = vadd.f32 %v1004_v29, %v1003_v11  ;;  %v1006_v14 = vpop.f32.mrb[14].mxu1  ;;  %748 = vadd.xlane.f32.xlu1 %v733_v12 }
 0x1f2   : > { %v1007_v16 = vpop.f32.mrb[15].mxu1 }
 0x1f3   : > { %v714_v17 = vadd.f32 %v1005_v13, %v948_v41  ;;  %v1008_v18 = vadd.f32 %v1007_v16, %v1006_v14 }
 0x1f5   : > { %v717_v20 = vadd.f32 %v1008_v18, %v948_v41  ;;  %v734_v21 = vadd.f32 %v726_v15, %v714_v17 }
 0x1f7   : > { %750 = vadd.xlane.f32.xlu0 %v734_v21  ;;  %v735_v30 = vadd.f32 %v727_v19, %v717_v20 }
 0x1f9   : > { %752 = vadd.xlane.f32.xlu1 %v735_v30 }
 0x26c   : > { %v739_v22 = vpop.xlane.xlu0 %738 }
 0x26d   : > { %v755_v23 = vmul.f32 0.0078125, %v739_v22 }
 0x26f   : > { %v763_v24 = vsub.f32 %v728_v50, %v755_v23 }
 0x270   : > { %v741_v25 = vpop.xlane.xlu0 %740 }
 0x271   : > { %v756_v27 = vmul.f32 0.0078125, %v741_v25  ;;  %v771_v28 = vmul.f32 %v763_v24, %v763_v24 }
 0x273   : > { %v1271_v32 = vsub.f32 %v729_v56, %v756_v27  ;;  %779 = vadd.xlane.f32.xlu0 %v771_v28 }
 0x274   : > { %v743_v33 = vpop.xlane.xlu1 %742 }
 0x275   : > { %v757_v34 = vmul.f32 0.0078125, %v743_v33  ;;  %v772_v35 = vmul.f32 %v1271_v32, %v1271_v32 }
 0x277   : > { %v1275_v31 = vsub.f32 %v730_v62, %v757_v34  ;;  %781 = vadd.xlane.f32.xlu1 %v772_v35 }
 0x278   : > { %v745_v36 = vpop.xlane.xlu1 %744 }
 0x279   : > { %v758_v37 = vmul.f32 0.0078125, %v745_v36  ;;  %v773_v38 = vmul.f32 %v1275_v31, %v1275_v31 }
 0x27b   : > { %v1279_v39 = vsub.f32 %v731_v3, %v758_v37  ;;  %783 = vadd.xlane.f32.xlu0 %v773_v38 }
 0x27c   : > { %v747_v40 = vpop.xlane.xlu0 %746 }
 0x27d   : > { %v759_v41 = vmul.f32 0.0078125, %v747_v40  ;;  %v774_v44 = vmul.f32 %v1279_v39, %v1279_v39 }
 0x27e   : > { %v749_v45 = vpop.xlane.xlu1 %748 }
 0x27f   : > { %v1283_v46 = vsub.f32 %v732_v10, %v759_v41  ;;  %v760_v42 = vmul.f32 0.0078125, %v749_v45  ;;  %785 = vadd.xlane.f32.xlu1 %v774_v44 }
 0x281   : > { %v1285_v47 = vsub.f32 %v733_v12, %v760_v42  ;;  %v775_v43 = vmul.f32 %v1283_v46, %v1283_v46 }
 0x283   : > { %787 = vadd.xlane.f32.xlu0 %v775_v43  ;;  %v776_v48 = vmul.f32 %v1285_v47, %v1285_v47 }
 0x284   : > { %v751_v49 = vpop.xlane.xlu0 %750 }
 0x285   : > { %v761_v50 = vmul.f32 0.0078125, %v751_v49  ;;  %789 = vadd.xlane.f32.xlu1 %v776_v48 }
 0x286   : > { %v753_v51 = vpop.xlane.xlu1 %752 }
 0x287   : > { %v1291_v52 = vsub.f32 %v734_v21, %v761_v50  ;;  %v762_v53 = vmul.f32 0.0078125, %v753_v51 }
 0x289   : > { %v1293_v54 = vsub.f32 %v735_v30, %v762_v53  ;;  %v777_v55 = vmul.f32 %v1291_v52, %v1291_v52 }
 0x28b   : > { %791 = vadd.xlane.f32.xlu0 %v777_v55  ;;  %v778_v56 = vmul.f32 %v1293_v54, %v1293_v54 }
 0x28d   : > { %793 = vadd.xlane.f32.xlu1 %v778_v56 }
 0x300   : > { %v780_v57 = vpop.xlane.xlu0 %779 }
 0x301   : > { %v795_v58 = vmul.f32 0.0078125, %v780_v57 }
 0x303   : > { %v803_v59 = vadd.f32 1e-05, %v795_v58 }
 0x304   : > { %v782_v60 = vpop.xlane.xlu1 %781 }
 0x305   : > { %1066 = vrsqrt.f32 %v803_v59  ;;  %v796_v61 = vmul.f32 0.0078125, %v782_v60 }
 0x307   : > { %v804_v62 = vadd.f32 1e-05, %v796_v61 }
 0x308   : > { %v784_v63 = vpop.xlane.xlu0 %783 }
 0x309   : > { %1068 = vrsqrt.f32 %v804_v62  ;;  %v797_v0 = vmul.f32 0.0078125, %v784_v63 }
 0x30b   : > { %v805_v1 = vadd.f32 1e-05, %v797_v0 }
 0x30c   : > { %v786_v26 = vpop.xlane.xlu1 %785 }
 0x30d   : > { %1070 = vrsqrt.f32 %v805_v1  ;;  %v798_v2 = vmul.f32 0.0078125, %v786_v26 }
 0x30f   : > { %v1067_v3 = vpop.eup %1066  ;;  %v806_v5 = vadd.f32 1e-05, %v798_v2 }
 0x310   : > { %v819_v6 = vmul.f32 %v1067_v3, %v763_v24  ;;  %v788_v7 = vpop.xlane.xlu0 %787 }
 0x311   : > { %1072 = vrsqrt.f32 %v806_v5  ;;  %v799_v9 = vmul.f32 0.0078125, %v788_v7 }
 0x312   : > { %v833_v10 = vmul.f32 %v965_v4, %v819_v6  ;;  %v790_v11 = vpop.xlane.xlu1 %789 }
 0x313   : > { %v1069_v12 = vpop.eup %1068  ;;  %v807_v29 = vadd.f32 1e-05, %v799_v9  ;;  %v800_v13 = vmul.f32 0.0078125, %v790_v11 }
 0x314   : > { %v847_v14 = vadd.f32 %v966_v8, %v833_v10  ;;  %v820_v15 = vmul.f32 %v1069_v12, %v1271_v32 }
 0x315   : > { %1074 = vrsqrt.f32 %v807_v29  ;;  %v808_v16 = vadd.f32 1e-05, %v800_v13 }
 0x316   : > { %855 = vst [vmem:[%s1309_s20] sm:$0xff] %v847_v14  ;;  %v834_v17 = vmul.f32 %v965_v4, %v820_v15 }
 0x317   : > { %v1071_v18 = vpop.eup %1070  ;;  %1076 = vrsqrt.f32 %v808_v16 }
 0x318   : > { %v848_v19 = vadd.f32 %v966_v8, %v834_v17  ;;  %v821_v20 = vmul.f32 %v1071_v18, %v1275_v31  ;;  %v792_v21 = vpop.xlane.xlu0 %791 }
 0x319   : > { %v801_v30 = vmul.f32 0.0078125, %v792_v21 }
 0x31a   : > { %856 = vst [vmem:[%s1309_s20 + $0x8] sm:$0xff] %v848_v19  ;;  %v835_v22 = vmul.f32 %v965_v4, %v821_v20  ;;  %v794_v23 = vpop.xlane.xlu1 %793 }
 0x31b   : > { %v1073_v24 = vpop.eup %1072  ;;  %v809_v25 = vadd.f32 1e-05, %v801_v30  ;;  %v802_v27 = vmul.f32 0.0078125, %v794_v23 }
 0x31c   : > { %v849_v28 = vadd.f32 %v966_v8, %v835_v22  ;;  %v822_v32 = vmul.f32 %v1073_v24, %v1279_v39 }
 0x31d   : > { %1078 = vrsqrt.f32 %v809_v25  ;;  %v810_v33 = vadd.f32 1e-05, %v802_v27 }
 0x31e   : > { %857 = vst [vmem:[%s1309_s20 + $0x10] sm:$0xff] %v849_v28  ;;  %v836_v34 = vmul.f32 %v965_v4, %v822_v32 }
 0x31f   : > { %v1075_v35 = vpop.eup %1074  ;;  %1080 = vrsqrt.f32 %v810_v33 }
 0x320   : > { %v850_v31 = vadd.f32 %v966_v8, %v836_v34  ;;  %v823_v36 = vmul.f32 %v1075_v35, %v1283_v46 }
 0x321   : > { %v1077_v37 = vpop.eup %1076 }
 0x322   : > { %858 = vst [vmem:[%s1309_s20 + $0x18] sm:$0xff] %v850_v31  ;;  %v837_v38 = vmul.f32 %v965_v4, %v823_v36  ;;  %v824_v40 = vmul.f32 %v1077_v37, %v1285_v47 }
 0x324   : > { %v851_v41 = vadd.f32 %v966_v8, %v837_v38  ;;  %v838_v44 = vmul.f32 %v965_v4, %v824_v40 }
 0x326   : > { %859 = vst [vmem:[%s1309_s20 + $0x20] sm:$0xff] %v851_v41  ;;  %v852_v39 = vadd.f32 %v966_v8, %v838_v44 }
 0x327   : > { %v1079_v45 = vpop.eup %1078 }
 0x328   : > { %860 = vst [vmem:[%s1309_s20 + $0x28] sm:$0xff] %v852_v39  ;;  %v825_v42 = vmul.f32 %v1079_v45, %v1291_v52 }
 0x329   : > { %v1081_v43 = vpop.eup %1080 }
 0x32a   : > { %v839_v48 = vmul.f32 %v965_v4, %v825_v42  ;;  %v826_v49 = vmul.f32 %v1081_v43, %v1293_v54 }
 0x32c   : > { %v853_v46 = vadd.f32 %v966_v8, %v839_v48  ;;  %v840_v50 = vmul.f32 %v965_v4, %v826_v49 }
 0x32e   : > { %861 = vst [vmem:[%s1309_s20 + $0x30] sm:$0xff] %v853_v46  ;;  %v854_v51 = vadd.f32 %v966_v8, %v840_v50 }
 0x330   : > { %862 = vst [vmem:[%s1309_s20 + $0x38] sm:$0xff] %v854_v51 }
 0x331 PF: > { %s17_s24 = sadd.s32 1, %s1088_s24  }
 0x332   : > { %p14_p4 = scmp.ge.s32.totalorder %s17_s24, 4  }
 0x334   :  { %16 = sbr.rel (!%p14_p4) target bundleno = 1 (0x1), region = 78 }

// kernel: mesh_decoder_layer_forward.3
= control target key start
LH: loop header
LB: loop body
LE: loop exit
PB: predicated region body
PF: predicated region fallthrough
CT: control target
= control target key end

     0   :  { %12 = vsyncpa [#allocation3], 0  ;;  %s4842_s0 = inlined_call_operand.vmem [shape: f32[8,16,128], index: 0, kind: input, shape index: {}]   ;;  %s4843_s1 = inlined_call_operand.vmem [shape: bf16[128,384], index: 1, kind: input, shape index: {}]   ;;  %s4844_s2 = inlined_call_operand.vmem [shape: f32[1,384], index: 2, kind: input, shape index: {}]   ;;  %s4845_s3 = inlined_call_operand.vmem [shape: bf16[128,128], index: 3, kind: input, shape index: {}]   ;;  %s4846_s4 = inlined_call_operand.hbm [shape: f32[1,128], index: 4, kind: input, shape index: {}]   ;;  %s4847_s5 = inlined_call_operand.hbm [shape: f32[1,128], index: 5, kind: input, shape index: {}]   ;;  %s4848_s6 = inlined_call_operand.hbm [shape: f32[1,128], index: 6, kind: input, shape index: {}]   ;;  %s4849_s7 = inlined_call_operand.vmem [shape: bf16[8,16,128], index: 7, kind: output, shape index: {}]  }
   0x1   :  { %13 = vsyncpa [#allocation5], 0  ;;  %s4038_s24 = smov 0  }
   0x2 LB: > { %s3137_s25 = sadd.s32 4294967295, %s3987_s24   ;;  %p3139_p0 = scmp.ge.s32.totalorder %s3987_s24, 1  ;;  %s3987_s24 = sphi %s4038_s24, %s19_s24  }
   0x3   : > { %p202_p1 = scmp.lt.s32.totalorder %s3987_s24, 3  ;;  %p4048_p2 = scmp.eq.s32.totalorder %s3137_s25, 0 }
   0x4   : > { %s3989_s28 = smov [#allocation4]   ;;  %s3990_s30 = smov [#allocation2]  }
   0x5   : > { %s4853_s26 = scalar_select %p4048_p2, 1, 0 }
   0x6   : > { %p4052_p3 = pnand %p3139_p0, %p202_p1  ;;  %s235_s29 = sshll.u32 %s3989_s28, 4  ;;  %s236_s29 = int_to_ptr.vmem [resolvable:$true] %s235_s29 }
   0x7   : > { %s224_s8 = sshll.u32 %s3990_s30, 4  ;;  %s3991_s9 = smov [#allocation6]   ;;  %s4064_s8 = int_to_ptr.vmem [resolvable:$true] %s224_s8 }
   0x8   : > { %s4854_s27 = scalar_select %p4052_p3, 1, 0 }
   0x9   : > { %p3604_p4 = pneg %p4052_p3  ;;  %s246_s10 = sshll.u32 %s3991_s9, 4  ;;  %s4066_s10 = int_to_ptr.vmem [resolvable:$true] %s246_s10 }
   0xa   : > { %s3889_s14 = scalar_lea.hbm %s4847_s5, 16 }
   0xb   : > { %p4060_p5 = pnand %p4048_p2, %p3604_p4  ;;  %p3890_p6 = scmp.ne.s32.totalorder %s4847_s5, %s3889_s14 }
   0xc   : > { %p3896_p10 = scmp.lt.u32.totalorder %s3889_s14, %s4847_s5 }
   0xd   : > { %p4076_p7 = pneg %p4060_p5 }
   0xf   : > { %p3892_p8 = pnand %p4076_p7, %p3890_p6 }
  0x11   : > { %p3893_p9 = pneg %p3892_p8 }
  0x13   : > { %p3898_p11 = pnand %p3896_p10, %p3893_p9 }
  0x15   : > { %3901 = shalt.err (!%p3898_p11)
}
  0x16   : > { %s3902_s20 = scalar_lea.vmem %s236_s29, 16  ;;  %s3909_s21 = scalar_lea.vmem %s236_s29, 32 }
  0x17   : > { %p3903_p12 = scmp.ne.s32.totalorder %s236_s29, %s3902_s20  ;;  %p3910_p1 = scmp.lt.s32.totalorder %s236_s29, %s236_s29 }
  0x18   : > { %p3911_p4 = scmp.lt.s32.totalorder %s3909_s21, %s3902_s20 }
  0x19   : > { %p3905_p13 = pnand %p3903_p12, %p4076_p7 }
  0x1a   : > { %p3912_p2 = por %p3911_p4, %p3910_p1 }
  0x1b   : > { %p3906_p0 = pneg %p3905_p13 }
  0x1d   : > { %p3913_p3 = pnand %p3912_p2, %p3906_p0 }
  0x1f   : > { %3916 = shalt.err (!%p3913_p3)
}
  0x20   : > { %3610 = dma.hbm_to_vmem [thread:$0]  (!%p4060_p5), %s4847_s5, 16, %s236_s29, [#allocation5]  }
  0x21   : > { %s3917_s9 = scalar_lea.hbm %s4846_s4, 16 }
  0x22   : > { %p3918_p6 = scmp.ne.s32.totalorder %s4846_s4, %s3917_s9  ;;  %p3924_p2 = scmp.lt.u32.totalorder %s3917_s9, %s4846_s4 }
  0x24   : > { %p3920_p8 = pnand %p3918_p6, %p4076_p7 }
  0x26   : > { %p3921_p9 = pneg %p3920_p8 }
  0x28   : > { %p3926_p3 = pnand %p3924_p2, %p3921_p9 }
  0x2a   : > { %3929 = shalt.err (!%p3926_p3)
}
  0x2b   : > { %s3930_s29 = scalar_lea.vmem %s4064_s8, 16  ;;  %s3937_s16 = scalar_lea.vmem %s4064_s8, 32 }
  0x2c   : > { %p3931_p10 = scmp.ne.s32.totalorder %s4064_s8, %s3930_s29  ;;  %p3938_p13 = scmp.lt.s32.totalorder %s4064_s8, %s4064_s8 }
  0x2d   : > { %p3939_p0 = scmp.lt.s32.totalorder %s3937_s16, %s3930_s29 }
  0x2e   : > { %p3933_p11 = pnand %p3931_p10, %p4076_p7 }
  0x2f   : > { %p3940_p1 = por %p3939_p0, %p3938_p13 }
  0x30   : > { %p3934_p12 = pneg %p3933_p11 }
  0x32   : > { %p3941_p4 = pnand %p3940_p1, %p3934_p12 }
  0x34   : > { %3944 = shalt.err (!%p3941_p4)
}
  0x35   : > { %3607 = dma.hbm_to_vmem [thread:$0]  (!%p4060_p5), %s4846_s4, 16, %s4064_s8, [#allocation3]  }
  0x36   : > { %s3945_s22 = scalar_lea.hbm %s4848_s6, 16 }
  0x37   : > { %p3946_p6 = scmp.ne.s32.totalorder %s4848_s6, %s3945_s22  ;;  %p3952_p2 = scmp.lt.u32.totalorder %s3945_s22, %s4848_s6 }
  0x39   : > { %p3948_p8 = pnand %p3946_p6, %p4076_p7 }
  0x3b   : > { %p3949_p9 = pneg %p3948_p8 }
  0x3d   : > { %p3954_p3 = pnand %p3952_p2, %p3949_p9 }
  0x3f   : > { %3957 = shalt.err (!%p3954_p3)
}
  0x40   : > { %s3958_s8 = scalar_lea.vmem %s4066_s10, 16  ;;  %s3965_s12 = scalar_lea.vmem %s4066_s10, 32 }
  0x41   : > { %p3959_p10 = scmp.ne.s32.totalorder %s4066_s10, %s3958_s8  ;;  %p3966_p13 = scmp.lt.s32.totalorder %s4066_s10, %s4066_s10 }
  0x42   : > { %p3967_p0 = scmp.lt.s32.totalorder %s3965_s12, %s3958_s8 }
  0x43   : > { %p3961_p11 = pnand %p3959_p10, %p4076_p7 }
  0x44   : > { %p3968_p1 = por %p3967_p0, %p3966_p13 }
  0x45   : > { %p3962_p12 = pneg %p3961_p11 }
  0x47   : > { %p3969_p4 = pnand %p3968_p1, %p3962_p12 }
  0x49   : > { %3972 = shalt.err (!%p3969_p4)
}
  0x4a   : > { %3613 = dma.hbm_to_vmem [thread:$0]  (!%p4060_p5), %s4848_s6, 16, %s4066_s10, [#allocation5]  }
  0x4b   : > { %p4857_p6 = scmp.ne.s32.totalorder %s4854_s27, 0 }
  0x4c   : > { %p4858_p7 = scmp.ne.s32.totalorder (!%p4857_p6), %s4853_s26, 0 }
  0x4d   : > { %269 = sbr.rel (%p4857_p6) target bundleno = 3626 (0xe2a), region = 48 }
  0x54   : > { %3978 = dma.done.wait (%p4858_p7), [#allocation3], 16  }
  0x55   : > { %3980 = vsyncadd (%p4858_p7), [#allocation3], 4294967280 }
  0x56   : > { %3982 = dma.done.wait (%p4858_p7), [#allocation5], 32  }
  0x57   : > { %3984 = vsyncadd (%p4858_p7), [#allocation5], 4294967264  ;;  %s3148_s11 = sshll.u32 %s3137_s25, 2  ;;  %v3992_v0 = vmov 0   ;;  %v3697_v1 = vld [vmem:[%s4843_s1 + $0x4] ss:$12 sps:$4 sm:$0xff]   ;;  %v372_v38 = vlaneseq }
  0x58   : > { %547 = vmatprep.mubr.bf16.mxu1 %v3992_v0  ;;  %p312_p5 = scmp.lt.s32.totalorder %s3148_s11, 7  ;;  %v3699_v2 = vld [vmem:[%s4843_s1] ss:$12 sps:$4 sm:$0xff]   ;;  %515 = vmatprep.subr.bf16.mxu1 %v3697_v1  ;;  %v3700_v3 = vld [vmem:[%s4843_s1 + $0x1c] ss:$12 sps:$4 sm:$0xff]   ;;  %v3993_v37 = vmov 0.0  }
  0x59   : > { %516 = vmatpush1.bf16.msra.mxu1 %v3699_v2  ;;  %v3702_v4 = vld [vmem:[%s4843_s1 + $0x18] ss:$12 sps:$4 sm:$0xff]   ;;  %v3703_v5 = vld [vmem:[%s4843_s1 + $0x34] ss:$12 sps:$4 sm:$0xff]   ;;  %v3705_v6 = vld [vmem:[%s4843_s1 + $0x30] ss:$12 sps:$4 sm:$0xff]  }
  0x5a   : > { %s4860_s11 = smov (!%p312_p5, %s3148_s11), 7  ;;  %517 = vmatprep.subr.bf16.mxu1 %v3700_v3  ;;  %v3706_v7 = vld [vmem:[%s4843_s1 + $0x4c] ss:$12 sps:$4 sm:$0xff]   ;;  %v3708_v9 = vld [vmem:[%s4843_s1 + $0x48] ss:$12 sps:$4 sm:$0xff]   ;;  %vm3994_vm0 = vmmov 0  }
  0x5b   : > { %s3231_s20 = sshll.u32 %s4860_s11, 4  ;;  %v3709_v11 = vld [vmem:[%s4843_s1 + $0x64] ss:$12 sps:$4 sm:$0xff]   ;;  %v3711_v13 = vld [vmem:[%s4843_s1 + $0x60] ss:$12 sps:$4 sm:$0xff]   ;;  %v4250_v39 = vshrl.u32 %v372_v38, 7 }
  0x5c   : > { %s4177_s30 = scalar_lea.vmem %s4842_s0, %s3231_s20  ;;  %v3721_v14 = vld [vmem:[%s4843_s1 + $0x8] ss:$12 sps:$4 sm:$0xff]   ;;  %v3722_v15 = vld [vmem:[%s4843_s1 + $0x20] ss:$12 sps:$4 sm:$0xff]   ;;  %v3714_v17 = vld [vmem:[%s4843_s1 + $0x78] ss:$12 sps:$4 sm:$0xff]  }
  0x5d   : > { %518 = vmatpush1.bf16.msra.mxu1 %v3702_v4  ;;  %v326_v8 = vld [vmem:[%s4177_s30] sm:$0xff]  ;;  %v327_v10 = vld [vmem:[%s4177_s30 + $0x8] sm:$0xff]  ;;  %3352 = vmatprep.subr.bf16.mxu0 %v3721_v14  ;;  %v3724_v20 = vld [vmem:[%s4843_s1 + $0x50] ss:$12 sps:$4 sm:$0xff]   ;;  %v374_v40 = vsub.s32 0, %v4250_v39  ;;  %v378_v42 = vsub.s32 1, %v4250_v39 }
  0x5e   : > { %519 = vmatprep.subr.bf16.mxu1 %v3703_v5  ;;  %v334_v12 = vpack.c.bf16 %v327_v10, %v326_v8  ;;  %v3712_v16 = vld [vmem:[%s4843_s1 + $0x7c] ss:$12 sps:$4 sm:$0xff]   ;;  %3353 = vmatpush3.bf16.msra.mxu0 %v3721_v14  ;;  %v3723_v18 = vld [vmem:[%s4843_s1 + $0x38] ss:$12 sps:$4 sm:$0xff]   ;;  %v3715_v19 = vld [vmem:[%s4843_s1 + $0x94] ss:$12 sps:$4 sm:$0xff]  }
  0x5f   : > { %3354 = vmatprep.subr.bf16.mxu0 %v3722_v15  ;;  %v3717_v21 = vld [vmem:[%s4843_s1 + $0x90] ss:$12 sps:$4 sm:$0xff]   ;;  %v3718_v22 = vld [vmem:[%s4843_s1 + $0xac] ss:$12 sps:$4 sm:$0xff]   ;;  %v3720_v23 = vld [vmem:[%s4843_s1 + $0xa8] ss:$12 sps:$4 sm:$0xff]  }
  0x60   : > { %3368 = vmatprep.mubr.bf16.mxu0 %v334_v12  ;;  %v328_v24 = vld [vmem:[%s4177_s30 + $0x10] sm:$0xff]  ;;  %v329_v25 = vld [vmem:[%s4177_s30 + $0x18] sm:$0xff]  ;;  %v330_v27 = vld [vmem:[%s4177_s30 + $0x20] sm:$0xff]  ;;  %vm665_vm1 = vcmask 261120   ;;  %vm862_vm2 = vcmask 130048   ;;  %s3995_s23 = smov 96  }
  0x61   : > { %520 = vmatpush1.bf16.msra.mxu1 %v3705_v6  ;;  %v335_v26 = vpack.c.bf16 %v329_v25, %v328_v24  ;;  %v331_v28 = vld [vmem:[%s4177_s30 + $0x28] sm:$0xff]  ;;  %v332_v30 = vld [vmem:[%s4177_s30 + $0x30] sm:$0xff]  ;;  %v333_v31 = vld [vmem:[%s4177_s30 + $0x38] sm:$0xff]  ;;  %v382_v25 = vsub.s32 2, %v4250_v39  ;;  %s3996_s28 = smov 64   ;;  %s3997_s9 = smov 32  }
  0x62   : > { %521 = vmatprep.subr.bf16.mxu1 %v3706_v7  ;;  %3355 = vmatpush3.bf16.msra.mxu0 %v3722_v15  ;;  %v336_v29 = vpack.c.bf16 %v331_v28, %v330_v27  ;;  %v337_v32 = vpack.c.bf16 %v333_v31, %v332_v30  ;;  %v3725_v33 = vld [vmem:[%s4843_s1 + $0x68] ss:$12 sps:$4 sm:$0xff]   ;;  %v3726_v34 = vld [vmem:[%s4843_s1 + $0x80] ss:$12 sps:$4 sm:$0xff]   ;;  %v3727_v35 = vld [vmem:[%s4843_s1 + $0x98] ss:$12 sps:$4 sm:$0xff]  }
  0x63   : > { %3356 = vmatprep.subr.bf16.mxu0 %v3723_v18  ;;  %v3728_v36 = vld [vmem:[%s4843_s1 + $0xb0] ss:$12 sps:$4 sm:$0xff]   ;;  %v4256_v41 = vld [vmem:[%s4844_s2] sm:$0x7]  ;;  %vm2723_vm3 = vcmask 523264   ;;  %vm2732_vm4 = vcmask 785408  }
  0x64   : > { %v375_v43 = vrot.slane %v4256_v41, %v374_v40  ;;  %v379_v45 = vrot.slane %v4256_v41, %v378_v42  ;;  %v383_v28 = vrot.slane %v4256_v41, %v382_v25 }
  0x65   : > { %522 = vmatpush1.bf16.msra.mxu1 %v3708_v9 }
  0x66   : > { %523 = vmatprep.subr.bf16.mxu1 %v3709_v11  ;;  %3357 = vmatpush3.bf16.msra.mxu0 %v3723_v18 }
  0x67   : > { %3358 = vmatprep.subr.bf16.mxu0 %v3724_v20 }
  0x69   : > { %524 = vmatpush1.bf16.msra.mxu1 %v3711_v13 }
  0x6a   : > { %525 = vmatprep.subr.bf16.mxu1 %v3712_v16  ;;  %3359 = vmatpush3.bf16.msra.mxu0 %v3724_v20 }
  0x6b   : > { %3360 = vmatprep.subr.bf16.mxu0 %v3725_v33 }
  0x6d   : > { %526 = vmatpush1.bf16.msra.mxu1 %v3714_v17 }
  0x6e   : > { %527 = vmatprep.subr.bf16.mxu1 %v3715_v19  ;;  %3361 = vmatpush3.bf16.msra.mxu0 %v3725_v33 }
  0x6f   : > { %3362 = vmatprep.subr.bf16.mxu0 %v3726_v34 }
  0x71   : > { %528 = vmatpush1.bf16.msra.mxu1 %v3717_v21 }
  0x72   : > { %529 = vmatprep.subr.bf16.mxu1 %v3718_v22  ;;  %3363 = vmatpush3.bf16.msra.mxu0 %v3726_v34 }
  0x73   : > { %3364 = vmatprep.subr.bf16.mxu0 %v3727_v35 }
  0x75   : > { %530 = vmatpush1.bf16.msra.mxu1 %v3720_v23 }
  0x76   : > { %3365 = vmatpush3.bf16.msra.mxu0 %v3727_v35  ;;  %3376 = vmatprep.subr.bf16.mxu1 %v3993_v37 }
  0x77   : > { %3366 = vmatprep.subr.bf16.mxu0 %v3728_v36 }
  0x78   : > { %548 = vmatmul.mubr.bf16.vlgmr.msra.gmra.mrb[0].mxu1 %v334_v12 }
  0x79   : > { %557 = vmatprep.mubr.bf16.mxu1 %v3992_v0 }
  0x7a   : > { %3367 = vmatpush3.bf16.msra.mxu0 %v3728_v36 }
  0x7b   : > { %3388 = vmatprep.subr.bf16.mxu0 %v3993_v37 }
  0x7d   : > { %3369 = vmatmul.mubr.bf16.vlgmr.msra.gmra.mrb[0].mxu0 %v335_v26 }
  0x7e   : > { %3372 = vmatprep.mubr.bf16.mxu0 %v336_v29 }
  0x80   : > { %558 = vmatmul.mubr.bf16.gmra.mrb[4].mxu1 %v335_v26 }
  0x81   : > { %567 = vmatprep.mubr.bf16.mxu1 %v3992_v0 }
  0x85   : > { %3373 = vmatmul.mubr.bf16.gmra.mrb[4].mxu0 %v337_v32 }
  0x86   : > { %3390 = vmatprep.mubr.msk.bf16.mxu0 %vm3994_vm0, %v3993_v37 }
  0x88   : > { %568 = vmatmul.mubr.bf16.gmra.mrb[8].mxu1 %v336_v29 }
  0x89   : > { %577 = vmatprep.mubr.bf16.mxu1 %v3992_v0 }
  0x90   : > { %578 = vmatmul.mubr.bf16.gmra.mrb[12].mxu1 %v337_v32 }
  0x91   : > { %3378 = vmatprep.mubr.msk.bf16.mxu1 %vm3994_vm0, %v3993_v37 }
 0x14b   : > { %v549_v44 = vpop.f32.mrb[0].mxu1 }
 0x14c   : > { %v551_v46 = vpop.f32.mrb[1].mxu1  ;;  %v550_v48 = vadd.f32 %v549_v44, %v375_v43 }
 0x14d   : > { %v553_v47 = vpop.f32.mrb[2].mxu1  ;;  %v552_v51 = vadd.f32 %v551_v46, %v379_v45 }
 0x14e   : > { %v554_v49 = vadd.f32 %v553_v47, %v375_v43  ;;  %v555_v50 = vpop.f32.mrb[3].mxu1 }
 0x14f   : > { %v556_v52 = vadd.f32 %v555_v50, %v379_v45 }
 0x150   : > { %v4261_v53 = vpack.c.bf16 %v554_v49, %v550_v48  ;;  %v3370_v26 = vpop.f32.mrb[0].mxu0 }
 0x151   : > { %v4263_v54 = vpack.c.bf16 %v556_v52, %v552_v51  ;;  %v622_v27 = vpop.f32.mrb[1].mxu0  ;;  %v631_v31 = vadd.f32 %v3370_v26, %v383_v28 }
 0x152   : > { %v3371_v29 = vpop.f32.mrb[2].mxu0  ;;  %v623_v32 = vadd.f32 %v622_v27, %v383_v28 }
 0x153   : > { %v559_v55 = vpop.f32.mrb[4].mxu1  ;;  %v670_v56 = vsel %vm665_vm1, %v4263_v54, 0  ;;  %v625_v30 = vpop.f32.mrb[3].mxu0  ;;  %v634_v33 = vadd.f32 %v3371_v29, %v383_v28 }
 0x154   : > { %v561_v57 = vpop.f32.mrb[5].mxu1  ;;  %3377 = vmatpush3.bf16.xpose.msra.mxu1 %v670_v56  ;;  %v560_v59 = vadd.f32 %v559_v55, %v375_v43  ;;  %v626_v34 = vadd.f32 %v625_v30, %v383_v28 }
 0x155   : > { %v563_v58 = vpop.f32.mrb[6].mxu1  ;;  %3382 = vmatprep.subr.bf16.mxu1 %v3993_v37  ;;  %v562_v62 = vadd.f32 %v561_v57, %v379_v45  ;;  %v4307_v35 = vpack.c.bf16 %v634_v33, %v631_v31 }
 0x156   : > { %v564_v60 = vadd.f32 %v563_v58, %v375_v43  ;;  %v565_v61 = vpop.f32.mrb[7].mxu1  ;;  %v4309_v36 = vpack.c.bf16 %v626_v34, %v623_v32 }
 0x157   : > { %v566_v63 = vadd.f32 %v565_v61, %v379_v45 }
 0x158   : > { %v4268_v0 = vpack.c.bf16 %v564_v60, %v560_v59  ;;  %v3374_v38 = vpop.f32.mrb[4].mxu0 }
 0x159   : > { %v4270_v1 = vpack.c.bf16 %v566_v63, %v562_v62  ;;  %v638_v39 = vpop.f32.mrb[5].mxu0  ;;  %v647_v42 = vadd.f32 %v3374_v38, %v383_v28 }
 0x15a   : > { %v3375_v40 = vpop.f32.mrb[6].mxu0 }
 0x15b   : > { %v569_v2 = vpop.f32.mrb[8].mxu1  ;;  %3379 = vmatmul.mubr.msk.bf16.vlgmr.msra.gmra.mrb[16].mxu1 %vm665_vm1, %v4261_v53  ;;  %v717_v3 = vsel %vm665_vm1, %v4270_v1, 0  ;;  %v641_v41 = vpop.f32.mrb[7].mxu0  ;;  %v650_v44 = vadd.f32 %v3375_v40, %v383_v28 }
 0x15c   : > { %v571_v4 = vpop.f32.mrb[9].mxu1  ;;  %3383 = vmatpush3.bf16.xpose.msra.mxu1 %v717_v3  ;;  %3384 = vmatprep.mubr.msk.bf16.mxu1 %vm3994_vm0, %v3993_v37  ;;  %v570_v6 = vadd.f32 %v569_v2, %v375_v43 }
 0x15d   : > { %v573_v5 = vpop.f32.mrb[10].mxu1  ;;  %3394 = vmatprep.subr.bf16.mxu1 %v3993_v37  ;;  %v572_v9 = vadd.f32 %v571_v4, %v379_v45  ;;  %v4315_v46 = vpack.c.bf16 %v650_v44, %v647_v42 }
 0x15e   : > { %v574_v7 = vadd.f32 %v573_v5, %v375_v43  ;;  %v575_v8 = vpop.f32.mrb[11].mxu1 }
 0x15f   : > { %v576_v10 = vadd.f32 %v575_v8, %v379_v45 }
 0x160   : > { %v4279_v11 = vpack.c.bf16 %v574_v7, %v570_v6 }
 0x161   : > { %v4281_v12 = vpack.c.bf16 %v576_v10, %v572_v9 }
 0x163   : > { %v579_v13 = vpop.f32.mrb[12].mxu1  ;;  %3385 = vmatmul.mubr.msk.bf16.vlgmr.msra.gmra.mrb[20].mxu1 %vm665_vm1, %v4268_v0  ;;  %v764_v14 = vsel %vm665_vm1, %v4281_v12, 0 }
 0x164   : > { %v580_v15 = vadd.f32 %v579_v13, %v375_v43  ;;  %v581_v16 = vpop.f32.mrb[13].mxu1  ;;  %3389 = vmatpush3.bf16.xpose.msra.mxu0 %v764_v14  ;;  %3396 = vmatprep.mubr.msk.bf16.mxu1 %vm3994_vm0, %v3993_v37 }
 0x165   : > { %v582_v17 = vadd.f32 %v581_v16, %v379_v45  ;;  %v583_v18 = vpop.f32.mrb[14].mxu1  ;;  %3400 = vmatprep.subr.bf16.mxu0 %v3993_v37 }
 0x166   : > { %v584_v19 = vadd.f32 %v583_v18, %v375_v43  ;;  %v585_v20 = vpop.f32.mrb[15].mxu1  ;;  %v639_v43 = vadd.f32 %v638_v39, %v383_v28 }
 0x167   : > { %v586_v21 = vadd.f32 %v585_v20, %v379_v45  ;;  %v642_v45 = vadd.f32 %v641_v41, %v383_v28 }
 0x168   : > { %v4290_v22 = vpack.c.bf16 %v584_v19, %v580_v15 }
 0x169   : > { %v4292_v23 = vpack.c.bf16 %v586_v21, %v582_v17  ;;  %v4317_v47 = vpack.c.bf16 %v642_v45, %v639_v43 }
 0x16b   : > { %3391 = vmatmul.mubr.msk.bf16.vlgmr.msra.gmra.mrb[8].mxu0 %vm665_vm1, %v4279_v11  ;;  %v811_v24 = vsel %vm665_vm1, %v4292_v23, 0 }
 0x16c   : > { %3395 = vmatpush3.bf16.xpose.msra.mxu1 %v811_v24  ;;  %3402 = vmatprep.mubr.msk.bf16.mxu0 %vm3994_vm0, %v3993_v37 }
 0x16d   : > { %3406 = vmatprep.subr.bf16.mxu1 %v3993_v37  ;;  %3401 = vmatpush3.bf16.msra.mxu0 %v4309_v36 }
 0x16e   : > { %3412 = vmatprep.subr.bf16.mxu0 %v3993_v37 }
 0x173   : > { %3397 = vmatmul.mubr.msk.bf16.vlgmr.msra.gmra.mrb[24].mxu1 %vm665_vm1, %v4290_v22 }
 0x174   : > { %3408 = vmatprep.mubr.msk.bf16.mxu1 %vm3994_vm0, %v3993_v37  ;;  %3407 = vmatpush3.bf16.msra.mxu1 %v4307_v35 }
 0x175   : > { %3418 = vmatprep.subr.bf16.mxu1 %v3993_v37 }
 0x22e   : > { %v706_v48 = vpop.f32.mrb[16].mxu1 }
 0x22f   : > { %v854_v49 = vmul.f32 0.17677669, %v706_v48  ;;  %v3380_v50 = vpop.f32.mrb[17].mxu1 }
 0x230   : > { %v709_v51 = vpop.f32.mrb[18].mxu1 }
 0x231   : > { %v855_v52 = vmul.f32 0.17677669, %v709_v51  ;;  %v3381_v55 = vpop.f32.mrb[19].mxu1  ;;  %v863_v56 = vsel %vm862_vm2, %v854_v49, -inf }
 0x232   : > { %864 = vmax.xlane.f32.xlu0 %v863_v56 }
 0x233   : > { %v866_v57 = vsel %vm862_vm2, %v855_v52, -inf }
 0x236   : > { %867 = vmax.xlane.f32.xlu0 %v866_v57  ;;  %v753_v58 = vpop.f32.mrb[20].mxu1 }
 0x237   : > { %v856_v59 = vmul.f32 0.17677669, %v753_v58  ;;  %v3386_v60 = vpop.f32.mrb[21].mxu1 }
 0x238   : > { %v756_v61 = vpop.f32.mrb[22].mxu1 }
 0x239   : > { %v857_v62 = vmul.f32 0.17677669, %v756_v61  ;;  %v3387_v63 = vpop.f32.mrb[23].mxu1  ;;  %v869_v2 = vsel %vm862_vm2, %v856_v59, -inf }
 0x23a   : > { %870 = vmax.xlane.f32.xlu1 %v869_v2 }
 0x23b   : > { %v872_v3 = vsel %vm862_vm2, %v857_v62, -inf }
 0x23e   : > { %v800_v4 = vpop.f32.mrb[8].mxu0  ;;  %873 = vmax.xlane.f32.xlu1 %v872_v3 }
 0x23f   : > { %v858_v5 = vmul.f32 0.17677669, %v800_v4  ;;  %v3392_v6 = vpop.f32.mrb[9].mxu0 }
 0x240   : > { %v803_v7 = vpop.f32.mrb[10].mxu0 }
 0x241   : > { %v859_v8 = vmul.f32 0.17677669, %v803_v7  ;;  %v3393_v9 = vpop.f32.mrb[11].mxu0  ;;  %v875_v10 = vsel %vm862_vm2, %v858_v5, -inf }
 0x242   : > { %876 = vmax.xlane.f32.xlu0 %v875_v10 }
 0x243   : > { %v878_v13 = vsel %vm862_vm2, %v859_v8, -inf }
 0x244   : > { %879 = vmax.xlane.f32.xlu1 %v878_v13 }
 0x246   : > { %v847_v14 = vpop.f32.mrb[24].mxu1 }
 0x247   : > { %v860_v15 = vmul.f32 0.17677669, %v847_v14  ;;  %v3398_v16 = vpop.f32.mrb[25].mxu1 }
 0x248   : > { %v850_v17 = vpop.f32.mrb[26].mxu1 }
 0x249   : > { %v4325_v18 = vmul.f32 0.17677669, %v850_v17  ;;  %v881_v19 = vsel %vm862_vm2, %v860_v15, -inf  ;;  %v3399_v20 = vpop.f32.mrb[27].mxu1 }
 0x24a   : > { %882 = vmax.xlane.f32.xlu0 %v881_v19 }
 0x24b   : > { %v884_v21 = vsel %vm862_vm2, %v4325_v18, -inf }
 0x24c   : > { %885 = vmax.xlane.f32.xlu1 %v884_v21 }
 0x2bf   : > { %v865_v24 = vpop.xlane.xlu0 %864 }
 0x2c0   : > { %v887_v25 = vsub.f32 %v854_v49, %v865_v24 }
 0x2c2   : > { %v895_v26 = vmul.f32 1.442695, %v887_v25 }
 0x2c3   : > { %v868_v27 = vpop.xlane.xlu0 %867 }
 0x2c4   : > { %3737 = vpow2.f32 %v895_v26  ;;  %v888_v28 = vsub.f32 %v855_v52, %v868_v27 }
 0x2c6   : > { %v897_v29 = vmul.f32 1.442695, %v888_v28 }
 0x2c7   : > { %v871_v30 = vpop.xlane.xlu1 %870 }
 0x2c8   : > { %3739 = vpow2.f32 %v897_v29  ;;  %v889_v31 = vsub.f32 %v856_v59, %v871_v30 }
 0x2ca   : > { %v899_v32 = vmul.f32 1.442695, %v889_v31 }
 0x2cb   : > { %v874_v33 = vpop.xlane.xlu1 %873 }
 0x2cc   : > { %3741 = vpow2.f32 %v899_v32  ;;  %v890_v34 = vsub.f32 %v857_v62, %v874_v33 }
 0x2ce   : > { %v3738_v38 = vpop.eup %3737  ;;  %v901_v39 = vmul.f32 1.442695, %v890_v34 }
 0x2cf   : > { %v877_v40 = vpop.xlane.xlu0 %876  ;;  %v911_v41 = vsel %vm862_vm2, %v3738_v38, 0.0 }
 0x2d0   : > { %3743 = vpow2.f32 %v901_v39  ;;  %v891_v42 = vsub.f32 %v858_v5, %v877_v40  ;;  %912 = vadd.xlane.f32.xlu0 %v911_v41 }
 0x2d1   : > { %v880_v43 = vpop.xlane.xlu1 %879 }
 0x2d2   : > { %v3740_v44 = vpop.eup %3739  ;;  %v903_v45 = vmul.f32 1.442695, %v891_v42  ;;  %v892_v48 = vsub.f32 %v859_v8, %v880_v43 }
 0x2d3   : > { %v914_v49 = vsel %vm862_vm2, %v3740_v44, 0.0 }
 0x2d4   : > { %3745 = vpow2.f32 %v903_v45  ;;  %v905_v50 = vmul.f32 1.442695, %v892_v48  ;;  %915 = vadd.xlane.f32.xlu1 %v914_v49 }
 0x2d6   : > { %v3742_v51 = vpop.eup %3741  ;;  %3747 = vpow2.f32 %v905_v50 }
 0x2d7   : > { %v883_v52 = vpop.xlane.xlu0 %882  ;;  %v917_v55 = vsel %vm862_vm2, %v3742_v51, 0.0 }
 0x2d8   : > { %v893_v56 = vsub.f32 %v860_v15, %v883_v52  ;;  %918 = vadd.xlane.f32.xlu0 %v917_v55 }
 0x2d9   : > { %v886_v4 = vpop.xlane.xlu1 %885 }
 0x2da   : > { %v3744_v57 = vpop.eup %3743  ;;  %v907_v58 = vmul.f32 1.442695, %v893_v56  ;;  %v894_v5 = vsub.f32 %v4325_v18, %v886_v4 }
 0x2db   : > { %v920_v59 = vsel %vm862_vm2, %v3744_v57, 0.0 }
 0x2dc   : > { %3749 = vpow2.f32 %v907_v58  ;;  %921 = vadd.xlane.f32.xlu1 %v920_v59  ;;  %v909_v6 = vmul.f32 1.442695, %v894_v5 }
 0x2de   : > { %v3746_v60 = vpop.eup %3745  ;;  %3751 = vpow2.f32 %v909_v6 }
 0x2df   : > { %v923_v61 = vsel %vm862_vm2, %v3746_v60, 0.0 }
 0x2e0   : > { %v3748_v62 = vpop.eup %3747  ;;  %924 = vadd.xlane.f32.xlu0 %v923_v61 }
 0x2e1   : > { %v926_v63 = vsel %vm862_vm2, %v3748_v62, 0.0 }
 0x2e2   : > { %927 = vadd.xlane.f32.xlu1 %v926_v63 }
 0x2e6   : > { %v4336_v2 = vpop.eup %3749 }
 0x2e7   : > { %v929_v3 = vsel %vm862_vm2, %v4336_v2, 0.0 }
 0x2e8   : > { %930 = vadd.xlane.f32.xlu0 %v929_v3  ;;  %v4351_v7 = vpop.eup %3751 }
 0x2e9   : > { %v932_v8 = vsel %vm862_vm2, %v4351_v7, 0.0 }
 0x2f3   : > { %1188 = vrot.lane.b32.xlu1 %v4270_v1, %s3995_s23 }
 0x2f7   : > { %1132 = vrot.lane.b32.xlu1 %v4261_v53, %s3995_s23 }
 0x2fe   : > { %1135 = vrot.lane.b32.xlu0 %v4263_v54, %s3995_s23 }
 0x302   : > { %1185 = vrot.lane.b32.xlu0 %v4268_v0, %s3995_s23 }
 0x306   : > { %1238 = vrot.lane.b32.xlu0 %v4279_v11, %s3995_s23 }
 0x31b   : > { %933 = vadd.xlane.f32.xlu1 %v932_v8 }
 0x32c   : > { %1241 = vrot.lane.b32.xlu1 %v4281_v12, %s3995_s23 }
 0x330   : > { %1294 = vrot.lane.b32.xlu1 %v4292_v23, %s3995_s23 }
 0x334   : > { %1291 = vrot.lane.b32.xlu1 %v4290_v22, %s3995_s23 }
 0x35d   : > { %v913_v9 = vpop.xlane.xlu0 %912 }
 0x35e   : > { %3753 = vrcp.f32 %v913_v9 }
 0x361   : > { %v916_v10 = vpop.xlane.xlu1 %915 }
 0x362   : > { %3755 = vrcp.f32 %v916_v10 }
 0x365   : > { %v919_v13 = vpop.xlane.xlu0 %918 }
 0x366   : > { %3757 = vrcp.f32 %v919_v13 }
 0x368   : > { %v3754_v15 = vpop.eup %3753 }
 0x369   : > { %v922_v14 = vpop.xlane.xlu1 %921  ;;  %v943_v17 = vmul.f32 %v3754_v15, %v3738_v38 }
 0x36a   : > { %3759 = vrcp.f32 %v922_v14 }
 0x36c   : > { %v3756_v16 = vpop.eup %3755 }
 0x36d   : > { %v944_v18 = vmul.f32 %v3756_v16, %v3740_v44  ;;  %v925_v19 = vpop.xlane.xlu0 %924 }
 0x36e   : > { %3761 = vrcp.f32 %v925_v19 }
 0x36f   : > { %v928_v20 = vpop.xlane.xlu1 %927  ;;  %v951_v21 = vpack.c.bf16 %v944_v18, %v943_v17 }
 0x370   : > { %3763 = vrcp.f32 %v928_v20  ;;  %v3758_v24 = vpop.eup %3757 }
 0x371   : > { %3403 = vmatmul.mubr.msk.bf16.vlgmr.msra.gmra.mrb[12].mxu0 %vm862_vm2, %v951_v21  ;;  %v945_v26 = vmul.f32 %v3758_v24, %v3742_v51 }
 0x372   : > { %3413 = vmatpush3.bf16.msra.mxu0 %v4317_v47  ;;  %3414 = vmatprep.mubr.msk.bf16.mxu0 %vm3994_vm0, %v3993_v37 }
 0x373   : > { %3424 = vmatprep.subr.bf16.mxu0 %v3993_v37  ;;  %v1189_v40 = vpop.permute.xlu1 %1188 }
 0x374   : > { %v3760_v25 = vpop.eup %3759  ;;  %v1194_v56 = vsel %vm665_vm1, %v1189_v40, 0 }
 0x375   : > { %v946_v27 = vmul.f32 %v3760_v25, %v3744_v57  ;;  %v931_v28 = vpop.xlane.xlu0 %930 }
 0x376   : > { %3765 = vrcp.f32 %v931_v28 }
 0x377   : > { %v952_v29 = vpack.c.bf16 %v946_v27, %v945_v26  ;;  %v1133_v41 = vpop.permute.xlu1 %1132 }
 0x378   : > { %v3762_v30 = vpop.eup %3761 }
 0x379   : > { %3409 = vmatmul.mubr.msk.bf16.vlgmr.msra.gmra.mrb[28].mxu1 %vm862_vm2, %v952_v29  ;;  %v947_v32 = vmul.f32 %v3762_v30, %v3746_v60  ;;  %v1136_v34 = vpop.permute.xlu0 %1135 }
 0x37a   : > { %v3764_v31 = vpop.eup %3763  ;;  %3419 = vmatpush3.bf16.msra.mxu1 %v4315_v46  ;;  %3420 = vmatprep.mubr.msk.bf16.mxu1 %vm3994_vm0, %v3993_v37  ;;  %v1141_v39 = vsel %vm665_vm1, %v1136_v34, 0 }
 0x37b   : > { %v948_v33 = vmul.f32 %v3764_v31, %v3748_v62  ;;  %3430 = vmatprep.subr.bf16.mxu1 %v3993_v37 }
 0x37d   : > { %v953_v38 = vpack.c.bf16 %v948_v33, %v947_v32  ;;  %v1186_v45 = vpop.permute.xlu0 %1185 }
 0x37f   : > { %3415 = vmatmul.mubr.msk.bf16.vlgmr.msra.gmra.mrb[16].mxu0 %vm862_vm2, %v953_v38 }
 0x380   : > { %3425 = vmatpush3.bf16.xpose.msra.mxu0 %v1141_v39  ;;  %3426 = vmatprep.mubr.msk.bf16.mxu0 %vm3994_vm0, %v3993_v37  ;;  %v3766_v48 = vpop.eup %3765 }
 0x381   : > { %3436 = vmatprep.subr.bf16.mxu0 %v3993_v37  ;;  %v949_v50 = vmul.f32 %v3766_v48, %v4336_v2  ;;  %v1239_v51 = vpop.permute.xlu0 %1238 }
 0x387   : > { %3427 = vmatmul.mubr.msk.bf16.vlgmr.msra.gmra.mrb[20].mxu0 %vm665_vm1, %v1133_v41 }
 0x388   : > { %3438 = vmatprep.mubr.msk.bf16.mxu0 %vm3994_vm0, %v3993_v37 }
 0x3a8   : > { %v934_v42 = vpop.xlane.xlu1 %933 }
 0x3a9   : > { %3767 = vrcp.f32 %v934_v42 }
 0x3ac   : > { %v1242_v43 = vpop.permute.xlu1 %1241 }
 0x3ad   : > { %v1247_v44 = vsel %vm665_vm1, %v1242_v43, 0 }
 0x3ae   : > { %3437 = vmatpush3.bf16.xpose.msra.mxu0 %v1247_v44 }
 0x3af   : > { %3448 = vmatprep.subr.bf16.mxu0 %v3993_v37 }
 0x3b0   : > { %v1295_v57 = vpop.permute.xlu1 %1294 }
 0x3b1   : > { %v1300_v58 = vsel %vm665_vm1, %v1295_v57, 0 }
 0x3b3   : > { %v3768_v49 = vpop.eup %3767 }
 0x3b4   : > { %v950_v52 = vmul.f32 %v3768_v49, %v4351_v7  ;;  %v1292_v59 = vpop.permute.xlu1 %1291 }
 0x3b5   : > { %3439 = vmatmul.mubr.msk.bf16.vlgmr.msra.gmra.mrb[24].mxu0 %vm665_vm1, %v1239_v51 }
 0x3b6   : > { %v954_v55 = vpack.c.bf16 %v950_v52, %v949_v50  ;;  %3450 = vmatprep.mubr.msk.bf16.mxu0 %vm3994_vm0, %v3993_v37 }
 0x3b8   : > { %3421 = vmatmul.mubr.msk.bf16.vlgmr.msra.gmra.mrb[32].mxu1 %vm862_vm2, %v954_v55 }
 0x3b9   : > { %3431 = vmatpush3.bf16.xpose.msra.mxu1 %v1194_v56  ;;  %3432 = vmatprep.mubr.msk.bf16.mxu1 %vm3994_vm0, %v3993_v37 }
 0x3ba   : > { %3442 = vmatprep.subr.bf16.mxu1 %v3993_v37 }
 0x3c0   : > { %3433 = vmatmul.mubr.msk.bf16.vlgmr.msra.gmra.mrb[36].mxu1 %vm665_vm1, %v1186_v45 }
 0x3c1   : > { %3443 = vmatpush3.bf16.xpose.msra.mxu1 %v1300_v58  ;;  %3444 = vmatprep.mubr.msk.bf16.mxu1 %vm3994_vm0, %v3993_v37 }
 0x3c2   : > { %3454 = vmatprep.subr.bf16.mxu1 %v3993_v37 }
 0x3c8   : > { %3445 = vmatmul.mubr.msk.bf16.vlgmr.msra.gmra.mrb[40].mxu1 %vm665_vm1, %v1292_v59 }
 0x3c9   : > { %3456 = vmatprep.mubr.msk.bf16.mxu1 %vm3994_vm0, %v3993_v37 }
 0x444   : > { %v4399_v60 = vpop.f32.mrb[12].mxu0 }
 0x445   : > { %v3404_v61 = vpop.f32.mrb[13].mxu0 }
 0x446   : > { %v4401_v62 = vpop.f32.mrb[14].mxu0 }
 0x447   : > { %v3405_v63 = vpop.f32.mrb[15].mxu0 }
 0x44c   : > { %v4403_v2 = vpop.f32.mrb[28].mxu1 }
 0x44d   : > { %v3410_v3 = vpop.f32.mrb[29].mxu1 }
 0x44e   : > { %v4405_v4 = vpop.f32.mrb[30].mxu1 }
 0x44f   : > { %v3411_v5 = vpop.f32.mrb[31].mxu1 }
 0x452   : > { %v4407_v6 = vpop.f32.mrb[16].mxu0 }
 0x453   : > { %v3416_v7 = vpop.f32.mrb[17].mxu0 }
 0x454   : > { %v4409_v8 = vpop.f32.mrb[18].mxu0 }
 0x455   : > { %v3417_v9 = vpop.f32.mrb[19].mxu0 }
 0x45a   : > { %v1177_v10 = vpop.f32.mrb[20].mxu0 }
 0x45b   : > { %v1343_v13 = vmul.f32 0.17677669, %v1177_v10  ;;  %v3428_v14 = vpop.f32.mrb[21].mxu0 }
 0x45c   : > { %v1180_v15 = vpop.f32.mrb[22].mxu0 }
 0x45d   : > { %v1344_v16 = vmul.f32 0.17677669, %v1180_v15  ;;  %v3429_v17 = vpop.f32.mrb[23].mxu0  ;;  %v1351_v18 = vsel %vm862_vm2, %v1343_v13, -inf }
 0x45e   : > { %1352 = vmax.xlane.f32.xlu0 %v1351_v18 }
 0x45f   : > { %v1354_v19 = vsel %vm862_vm2, %v1344_v16, -inf }
 0x460   : > { %1355 = vmax.xlane.f32.xlu1 %v1354_v19 }
 0x488   : > { %v1283_v20 = vpop.f32.mrb[24].mxu0 }
 0x489   : > { %v3440_v21 = vpop.f32.mrb[25].mxu0  ;;  %v1347_v42 = vmul.f32 0.17677669, %v1283_v20 }
 0x48a   : > { %v1286_v24 = vpop.f32.mrb[26].mxu0 }
 0x48b   : > { %v1348_v25 = vmul.f32 0.17677669, %v1286_v24  ;;  %v4413_v26 = vpop.f32.mrb[32].mxu1  ;;  %v3441_v27 = vpop.f32.mrb[27].mxu0  ;;  %v1363_v51 = vsel %vm862_vm2, %v1347_v42, -inf }
 0x48c   : > { %v3422_v28 = vpop.f32.mrb[33].mxu1 }
 0x48d   : > { %v4415_v29 = vpop.f32.mrb[34].mxu1  ;;  %v1366_v30 = vsel %vm862_vm2, %v1348_v25, -inf }
 0x48e   : > { %1367 = vmax.xlane.f32.xlu1 %v1366_v30  ;;  %v3423_v31 = vpop.f32.mrb[35].mxu1 }
 0x493   : > { %v1230_v32 = vpop.f32.mrb[36].mxu1 }
 0x494   : > { %v1345_v33 = vmul.f32 0.17677669, %v1230_v32  ;;  %v3434_v34 = vpop.f32.mrb[37].mxu1 }
 0x495   : > { %v1233_v38 = vpop.f32.mrb[38].mxu1 }
 0x496   : > { %v1346_v39 = vmul.f32 0.17677669, %v1233_v38  ;;  %v3435_v40 = vpop.f32.mrb[39].mxu1  ;;  %v1357_v41 = vsel %vm862_vm2, %v1345_v33, -inf }
 0x497   : > { %1358 = vmax.xlane.f32.xlu0 %v1357_v41 }
 0x498   : > { %v1360_v43 = vsel %vm862_vm2, %v1346_v39, -inf }
 0x49b   : > { %1361 = vmax.xlane.f32.xlu0 %v1360_v43  ;;  %v1336_v44 = vpop.f32.mrb[40].mxu1 }
 0x49c   : > { %v3446_v45 = vpop.f32.mrb[41].mxu1  ;;  %v1349_v49 = vmul.f32 0.17677669, %v1336_v44 }
 0x49d   : > { %v1339_v48 = vpop.f32.mrb[42].mxu1 }
 0x49e   : > { %v3447_v50 = vpop.f32.mrb[43].mxu1  ;;  %v1369_v52 = vsel %vm862_vm2, %v1349_v49, -inf  ;;  %v4428_v55 = vmul.f32 0.17677669, %v1339_v48 }
 0x49f   : > { %1492 = vrot.lane.b32.xlu1 %v4307_v35, %s3995_s23  ;;  %1364 = vmax.xlane.f32.xlu0 %v1363_v51 }
 0x4a0   : > { %v1372_v56 = vsel %vm862_vm2, %v4428_v55, -inf }
 0x4a3   : > { %1540 = vrot.lane.b32.xlu1 %v4317_v47, %s3995_s23  ;;  %1370 = vmax.xlane.f32.xlu0 %v1369_v52 }
 0x4b9   : > { %1444 = vrot.lane.b32.xlu0 %v4309_v36, %s3995_s23 }
 0x4c7   : > { %1373 = vmax.xlane.f32.xlu1 %v1372_v56 }
 0x4d8   : > { %1588 = vrot.lane.b32.xlu1 %v4315_v46, %s3995_s23 }
 0x4eb   : > { %v1353_v57 = vpop.xlane.xlu0 %1352 }
 0x4ec   : > { %v1375_v58 = vsub.f32 %v1343_v13, %v1353_v57 }
 0x4ed   : > { %v1356_v59 = vpop.xlane.xlu1 %1355 }
 0x4ee   : > { %v1383_v61 = vmul.f32 1.442695, %v1375_v58  ;;  %v1376_v63 = vsub.f32 %v1344_v16, %v1356_v59 }
 0x4f0   : > { %3769 = vpow2.f32 %v1383_v61  ;;  %v1385_v3 = vmul.f32 1.442695, %v1376_v63 }
 0x4f2   : > { %3771 = vpow2.f32 %v1385_v3 }
 0x4fa   : > { %v4434_v5 = vpop.eup %3769 }
 0x4fb   : > { %v1399_v7 = vsel %vm862_vm2, %v4434_v5, 0.0 }
 0x4fc   : > { %v4438_v9 = vpop.eup %3771  ;;  %1400 = vadd.xlane.f32.xlu0 %v1399_v7 }
 0x4fd   : > { %v1402_v10 = vsel %vm862_vm2, %v4438_v9, 0.0 }
 0x4fe   : > { %1403 = vadd.xlane.f32.xlu1 %v1402_v10 }
 0x51b   : > { %v1368_v14 = vpop.xlane.xlu1 %1367 }
 0x51c   : > { %v1380_v17 = vsub.f32 %v1348_v25, %v1368_v14 }
 0x51e   : > { %v1393_v21 = vmul.f32 1.442695, %v1380_v17 }
 0x51f   : > { %v1493_v13 = vpop.permute.xlu1 %1492 }
 0x520   : > { %3455 = vmatpush3.bf16.msra.mxu1 %v1493_v13 }
 0x521   : > { %3466 = vmatprep.subr.bf16.mxu1 %v3993_v37 }
 0x524   : > { %v1359_v15 = vpop.xlane.xlu0 %1358 }
 0x525   : > { %v1377_v16 = vsub.f32 %v1345_v33, %v1359_v15 }
 0x527   : > { %v1387_v18 = vmul.f32 1.442695, %v1377_v16 }
 0x528   : > { %v1362_v19 = vpop.xlane.xlu0 %1361 }
 0x529   : > { %3773 = vpow2.f32 %v1387_v18  ;;  %v1378_v20 = vsub.f32 %v1346_v39, %v1362_v19 }
 0x52b   : > { %v1389_v24 = vmul.f32 1.442695, %v1378_v20 }
 0x52c   : > { %v1365_v27 = vpop.xlane.xlu0 %1364 }
 0x52d   : > { %3775 = vpow2.f32 %v1389_v24  ;;  %v1379_v28 = vsub.f32 %v1347_v42, %v1365_v27 }
 0x52e   : > { %3777 = vpow2.f32 %v1393_v21 }
 0x52f   : > { %v1391_v30 = vmul.f32 1.442695, %v1379_v28 }
 0x530   : > { %v1371_v31 = vpop.xlane.xlu0 %1370 }
 0x531   : > { %3779 = vpow2.f32 %v1391_v30  ;;  %v1381_v32 = vsub.f32 %v1349_v49, %v1371_v31  ;;  %v1541_v49 = vpop.permute.xlu1 %1540 }
 0x533   : > { %v3774_v34 = vpop.eup %3773  ;;  %v1395_v38 = vmul.f32 1.442695, %v1381_v32 }
 0x534   : > { %v1445_v40 = vpop.permute.xlu0 %1444  ;;  %v1405_v33 = vsel %vm862_vm2, %v3774_v34, 0.0 }
 0x535   : > { %3781 = vpow2.f32 %v1395_v38  ;;  %1406 = vadd.xlane.f32.xlu0 %v1405_v33  ;;  %3449 = vmatpush3.bf16.msra.mxu0 %v1445_v40 }
 0x536   : > { %3460 = vmatprep.subr.bf16.mxu0 %v3993_v37 }
 0x537   : > { %v3776_v25 = vpop.eup %3775 }
 0x538   : > { %v1408_v39 = vsel %vm862_vm2, %v3776_v25, 0.0  ;;  %v3778_v41 = vpop.eup %3777 }
 0x539   : > { %1409 = vadd.xlane.f32.xlu1 %v1408_v39  ;;  %v1414_v44 = vsel %vm862_vm2, %v3778_v41, 0.0 }
 0x53b   : > { %v3780_v42 = vpop.eup %3779 }
 0x53c   : > { %v1411_v43 = vsel %vm862_vm2, %v3780_v42, 0.0 }
 0x53d   : > { %1412 = vadd.xlane.f32.xlu0 %v1411_v43  ;;  %1415 = vadd.xlane.f32.xlu1 %v1414_v44 }
 0x53f   : > { %v4448_v45 = vpop.eup %3781 }
 0x540   : > { %v1417_v48 = vsel %vm862_vm2, %v4448_v45, 0.0 }
 0x541   : > { %1418 = vadd.xlane.f32.xlu0 %v1417_v48 }
 0x54e   : > { %1688 = vrot.lane.b32.xlu1 %v4270_v1, %s3996_s28 }
 0x554   : > { %v1374_v50 = vpop.xlane.xlu1 %1373 }
 0x555   : > { %v1382_v51 = vsub.f32 %v4428_v55, %v1374_v50 }
 0x557   : > { %1637 = vrot.lane.b32.xlu0 %v4263_v54, %s3996_s28  ;;  %v1397_v52 = vmul.f32 1.442695, %v1382_v51 }
 0x558   : > { %v1589_v58 = vpop.permute.xlu1 %1588 }
 0x559   : > { %3783 = vpow2.f32 %v1397_v52 }
 0x55b   : > { %1635 = vrot.lane.b32.xlu0 %v4261_v53, %s3996_s28 }
 0x55f   : > { %1686 = vrot.lane.b32.xlu0 %v4268_v0, %s3996_s28 }
 0x563   : > { %1737 = vrot.lane.b32.xlu0 %v4279_v11, %s3996_s28  ;;  %v4463_v56 = vpop.eup %3783 }
 0x564   : > { %v1420_v57 = vsel %vm862_vm2, %v4463_v56, 0.0 }
 0x572   : > { %1421 = vadd.xlane.f32.xlu1 %v1420_v57 }
 0x583   : > { %1739 = vrot.lane.b32.xlu1 %v4281_v12, %s3996_s28 }
 0x587   : > { %1790 = vrot.lane.b32.xlu1 %v4292_v23, %s3996_s28 }
 0x589   : > { %v1401_v55 = vpop.xlane.xlu0 %1400 }
 0x58a   : > { %3785 = vrcp.f32 %v1401_v55 }
 0x58b   : > { %1788 = vrot.lane.b32.xlu1 %v4290_v22, %s3996_s28  ;;  %v1404_v59 = vpop.xlane.xlu1 %1403 }
 0x58c   : > { %3787 = vrcp.f32 %v1404_v59 }
 0x594   : > { %v3786_v61 = vpop.eup %3785 }
 0x595   : > { %v1431_v3 = vmul.f32 %v3786_v61, %v4434_v5 }
 0x596   : > { %v3788_v63 = vpop.eup %3787 }
 0x597   : > { %v1432_v7 = vmul.f32 %v3788_v63, %v4438_v9 }
 0x599   : > { %v1439_v10 = vpack.c.bf16 %v1432_v7, %v1431_v3 }
 0x59b   : > { %3451 = vmatmul.mubr.msk.bf16.vlgmr.msra.gmra.mrb[28].mxu0 %vm862_vm2, %v1439_v10 }
 0x59c   : > { %3461 = vmatpush3.bf16.msra.mxu0 %v1541_v49  ;;  %3462 = vmatprep.mubr.msk.bf16.mxu0 %vm3994_vm0, %v3993_v37 }
 0x59d   : > { %3472 = vmatprep.subr.bf16.mxu0 %v3993_v37 }
 0x5c2   : > { %v1407_v14 = vpop.xlane.xlu0 %1406 }
 0x5c3   : > { %3789 = vrcp.f32 %v1407_v14 }
 0x5c6   : > { %v1410_v13 = vpop.xlane.xlu1 %1409 }
 0x5c7   : > { %3791 = vrcp.f32 %v1410_v13 }
 0x5ca   : > { %v1413_v15 = vpop.xlane.xlu0 %1412  ;;  %v1416_v16 = vpop.xlane.xlu1 %1415 }
 0x5cb   : > { %3793 = vrcp.f32 %v1413_v15 }
 0x5cc   : > { %3795 = vrcp.f32 %v1416_v16 }
 0x5cd   : > { %v3790_v5 = vpop.eup %3789 }
 0x5ce   : > { %v1433_v9 = vmul.f32 %v3790_v5, %v3774_v34  ;;  %v1419_v19 = vpop.xlane.xlu0 %1418  ;;  %v1689_v38 = vpop.permute.xlu1 %1688 }
 0x5cf   : > { %3797 = vrcp.f32 %v1419_v19  ;;  %v1694_v50 = vsel %vm665_vm1, %v1689_v38, 0 }
 0x5d1   : > { %v3792_v17 = vpop.eup %3791 }
 0x5d2   : > { %v1434_v18 = vmul.f32 %v3792_v17, %v3776_v25  ;;  %v1638_v30 = vpop.permute.xlu0 %1637 }
 0x5d3   : > { %v1643_v32 = vsel %vm665_vm1, %v1638_v30, 0 }
 0x5d4   : > { %v1440_v20 = vpack.c.bf16 %v1434_v18, %v1433_v9 }
 0x5d5   : > { %v3794_v21 = vpop.eup %3793 }
 0x5d6   : > { %v3796_v24 = vpop.eup %3795  ;;  %v1435_v27 = vmul.f32 %v3794_v21, %v3780_v42  ;;  %3457 = vmatmul.mubr.msk.bf16.vlgmr.msra.gmra.mrb[44].mxu1 %vm862_vm2, %v1440_v20  ;;  %v1636_v34 = vpop.permute.xlu0 %1635 }
 0x5d7   : > { %v1436_v28 = vmul.f32 %v3796_v24, %v3778_v41  ;;  %3467 = vmatpush3.bf16.msra.mxu1 %v1589_v58  ;;  %3468 = vmatprep.mubr.msk.bf16.mxu1 %vm3994_vm0, %v3993_v37 }
 0x5d8   : > { %3478 = vmatprep.subr.bf16.mxu1 %v3993_v37 }
 0x5d9   : > { %v1441_v31 = vpack.c.bf16 %v1436_v28, %v1435_v27  ;;  %v3798_v41 = vpop.eup %3797 }
 0x5da   : > { %v1687_v39 = vpop.permute.xlu0 %1686  ;;  %v1437_v43 = vmul.f32 %v3798_v41, %v4448_v45 }
 0x5db   : > { %3463 = vmatmul.mubr.msk.bf16.vlgmr.msra.gmra.mrb[32].mxu0 %vm862_vm2, %v1441_v31 }
 0x5dc   : > { %3473 = vmatpush3.bf16.xpose.msra.mxu0 %v1643_v32  ;;  %3474 = vmatprep.mubr.msk.bf16.mxu0 %vm3994_vm0, %v3993_v37 }
 0x5dd   : > { %3484 = vmatprep.subr.bf16.mxu0 %v3993_v37 }
 0x5de   : > { %v1738_v44 = vpop.permute.xlu0 %1737 }
 0x5e3   : > { %3475 = vmatmul.mubr.msk.bf16.vlgmr.msra.gmra.mrb[36].mxu0 %vm665_vm1, %v1636_v34 }
 0x5e4   : > { %3486 = vmatprep.mubr.msk.bf16.mxu0 %vm3994_vm0, %v3993_v37 }
 0x5ff   : > { %v1422_v40 = vpop.xlane.xlu1 %1421 }
 0x600   : > { %3799 = vrcp.f32 %v1422_v40 }
 0x603   : > { %v1740_v33 = vpop.permute.xlu1 %1739 }
 0x604   : > { %v1745_v25 = vsel %vm665_vm1, %v1740_v33, 0 }
 0x605   : > { %3485 = vmatpush3.bf16.xpose.msra.mxu0 %v1745_v25 }
 0x606   : > { %3496 = vmatprep.subr.bf16.mxu0 %v3993_v37 }
 0x607   : > { %v1791_v45 = vpop.permute.xlu1 %1790 }
 0x608   : > { %v1796_v51 = vsel %vm665_vm1, %v1791_v45, 0 }
 0x60a   : > { %v3800_v42 = vpop.eup %3799 }
 0x60b   : > { %v1438_v48 = vmul.f32 %v3800_v42, %v4463_v56  ;;  %v1789_v52 = vpop.permute.xlu1 %1788 }
 0x60c   : > { %3487 = vmatmul.mubr.msk.bf16.vlgmr.msra.gmra.mrb[40].mxu0 %vm665_vm1, %v1738_v44 }
 0x60d   : > { %v1442_v49 = vpack.c.bf16 %v1438_v48, %v1437_v43  ;;  %3498 = vmatprep.mubr.msk.bf16.mxu0 %vm3994_vm0, %v3993_v37 }
 0x60f   : > { %3469 = vmatmul.mubr.msk.bf16.vlgmr.msra.gmra.mrb[48].mxu1 %vm862_vm2, %v1442_v49 }
 0x610   : > { %3479 = vmatpush3.bf16.xpose.msra.mxu1 %v1694_v50  ;;  %3480 = vmatprep.mubr.msk.bf16.mxu1 %vm3994_vm0, %v3993_v37 }
 0x611   : > { %3490 = vmatprep.subr.bf16.mxu1 %v3993_v37 }
 0x617   : > { %3481 = vmatmul.mubr.msk.bf16.vlgmr.msra.gmra.mrb[52].mxu1 %vm665_vm1, %v1687_v39 }
 0x618   : > { %3491 = vmatpush3.bf16.xpose.msra.mxu1 %v1796_v51  ;;  %3492 = vmatprep.mubr.msk.bf16.mxu1 %vm3994_vm0, %v3993_v37 }
 0x619   : > { %3502 = vmatprep.subr.bf16.mxu1 %v3993_v37 }
 0x61f   : > { %3493 = vmatmul.mubr.msk.bf16.vlgmr.msra.gmra.mrb[56].mxu1 %vm665_vm1, %v1789_v52 }
 0x620   : > { %3504 = vmatprep.mubr.msk.bf16.mxu1 %vm3994_vm0, %v3993_v37 }
 0x66e   : > { %v4511_v56 = vpop.f32.mrb[28].mxu0 }
 0x66f   : > { %v3452_v57 = vpop.f32.mrb[29].mxu0 }
 0x670   : > { %v4513_v58 = vpop.f32.mrb[30].mxu0 }
 0x671   : > { %v3637_v55 = vpack.i.bf16 %v4513_v58, %v4511_v56  ;;  %v3453_v59 = vpop.f32.mrb[31].mxu0 }
 0x6a9   : > { %v4517_v61 = vpop.f32.mrb[44].mxu1 }
 0x6aa   : > { %v3458_v63 = vpop.f32.mrb[45].mxu1 }
 0x6ab   : > { %v4519_v3 = vpop.f32.mrb[46].mxu1 }
 0x6ac   : > { %v3642_v7 = vpack.i.bf16 %v4519_v3, %v4517_v61  ;;  %v3459_v10 = vpop.f32.mrb[47].mxu1 }
 0x6ae   : > { %v4523_v14 = vpop.f32.mrb[32].mxu0 }
 0x6af   : > { %v3464_v13 = vpop.f32.mrb[33].mxu0 }
 0x6b0   : > { %v4525_v15 = vpop.f32.mrb[34].mxu0 }
 0x6b1   : > { %v3657_v16 = vpack.i.bf16 %v4525_v15, %v4523_v14  ;;  %v3465_v5 = vpop.f32.mrb[35].mxu0 }
 0x6b6   : > { %v1679_v17 = vpop.f32.mrb[36].mxu0 }
 0x6b7   : > { %v1839_v9 = vmul.f32 0.17677669, %v1679_v17  ;;  %v3476_v18 = vpop.f32.mrb[37].mxu0 }
 0x6b8   : > { %v1682_v19 = vpop.f32.mrb[38].mxu0 }
 0x6b9   : > { %v1840_v20 = vmul.f32 0.17677669, %v1682_v19  ;;  %v3477_v21 = vpop.f32.mrb[39].mxu0  ;;  %v1847_v24 = vsel %vm862_vm2, %v1839_v9, -inf }
 0x6ba   : > { %1848 = vmax.xlane.f32.xlu0 %v1847_v24 }
 0x6bb   : > { %v1850_v27 = vsel %vm862_vm2, %v1840_v20, -inf }
 0x6bc   : > { %1851 = vmax.xlane.f32.xlu1 %v1850_v27 }
 0x6df   : > { %v1781_v28 = vpop.f32.mrb[40].mxu0 }
 0x6e0   : > { %v3488_v30 = vpop.f32.mrb[41].mxu0  ;;  %v1843_v51 = vmul.f32 0.17677669, %v1781_v28 }
 0x6e1   : > { %v1784_v31 = vpop.f32.mrb[42].mxu0 }
 0x6e2   : > { %v1844_v32 = vmul.f32 0.17677669, %v1784_v31  ;;  %v4531_v34 = vpop.f32.mrb[48].mxu1  ;;  %v3489_v38 = vpop.f32.mrb[43].mxu0  ;;  %v1859_v5 = vsel %vm862_vm2, %v1843_v51, -inf }
 0x6e3   : > { %v3470_v40 = vpop.f32.mrb[49].mxu1 }
 0x6e4   : > { %v4533_v33 = vpop.f32.mrb[50].mxu1  ;;  %v1862_v25 = vsel %vm862_vm2, %v1844_v32, -inf }
 0x6e5   : > { %v3662_v39 = vpack.i.bf16 %v4533_v33, %v4531_v34  ;;  %1863 = vmax.xlane.f32.xlu1 %v1862_v25  ;;  %v3471_v41 = vpop.f32.mrb[51].mxu1 }
 0x6ea   : > { %v1730_v42 = vpop.f32.mrb[52].mxu1 }
 0x6eb   : > { %v1841_v43 = vmul.f32 0.17677669, %v1730_v42  ;;  %v3482_v44 = vpop.f32.mrb[53].mxu1 }
 0x6ec   : > { %v1733_v48 = vpop.f32.mrb[54].mxu1 }
 0x6ed   : > { %v1842_v49 = vmul.f32 0.17677669, %v1733_v48  ;;  %v3483_v50 = vpop.f32.mrb[55].mxu1  ;;  %v1853_v45 = vsel %vm862_vm2, %v1841_v43, -inf }
 0x6ee   : > { %1854 = vmax.xlane.f32.xlu0 %v1853_v45 }
 0x6ef   : > { %v1856_v52 = vsel %vm862_vm2, %v1842_v49, -inf }
 0x6f2   : > { %1857 = vmax.xlane.f32.xlu0 %v1856_v52  ;;  %v1832_v57 = vpop.f32.mrb[56].mxu1 }
 0x6f3   : > { %v3494_v59 = vpop.f32.mrb[57].mxu1  ;;  %v1845_v10 = vmul.f32 0.17677669, %v1832_v57 }
 0x6f4   : > { %v1835_v63 = vpop.f32.mrb[58].mxu1 }
 0x6f5   : > { %v3495_v13 = vpop.f32.mrb[59].mxu1  ;;  %v1865_v17 = vsel %vm862_vm2, %v1845_v10, -inf  ;;  %v4548_v18 = vmul.f32 0.17677669, %v1835_v63 }
 0x6f6   : > { %1986 = vrot.lane.b32.xlu1 %v4307_v35, %s3996_s28  ;;  %1860 = vmax.xlane.f32.xlu0 %v1859_v5 }
 0x6f7   : > { %v1868_v19 = vsel %vm862_vm2, %v4548_v18, -inf }
 0x6fa   : > { %2033 = vrot.lane.b32.xlu1 %v4317_v47, %s3996_s28  ;;  %1866 = vmax.xlane.f32.xlu0 %v1865_v17 }
 0x710   : > { %1939 = vrot.lane.b32.xlu0 %v4309_v36, %s3996_s28 }
 0x71e   : > { %1869 = vmax.xlane.f32.xlu1 %v1868_v19 }
 0x72f   : > { %2080 = vrot.lane.b32.xlu1 %v4315_v46, %s3996_s28 }
 0x747   : > { %v1849_v21 = vpop.xlane.xlu0 %1848 }
 0x748   : > { %v1871_v24 = vsub.f32 %v1839_v9, %v1849_v21 }
 0x749   : > { %v1852_v27 = vpop.xlane.xlu1 %1851 }
 0x74a   : > { %v1879_v28 = vmul.f32 1.442695, %v1871_v24  ;;  %v1872_v30 = vsub.f32 %v1840_v20, %v1852_v27 }
 0x74c   : > { %3801 = vpow2.f32 %v1879_v28  ;;  %v1881_v31 = vmul.f32 1.442695, %v1872_v30 }
 0x74e   : > { %3803 = vpow2.f32 %v1881_v31 }
 0x756   : > { %v4554_v38 = vpop.eup %3801 }
 0x757   : > { %v1895_v40 = vsel %vm862_vm2, %v4554_v38, 0.0 }
 0x758   : > { %v4558_v25 = vpop.eup %3803  ;;  %1896 = vadd.xlane.f32.xlu0 %v1895_v40 }
 0x759   : > { %v1898_v41 = vsel %vm862_vm2, %v4558_v25, 0.0 }
 0x75a   : > { %1899 = vadd.xlane.f32.xlu1 %v1898_v41 }
 0x772   : > { %v1864_v42 = vpop.xlane.xlu1 %1863 }
 0x773   : > { %v1876_v48 = vsub.f32 %v1844_v32, %v1864_v42 }
 0x775   : > { %v1889_v57 = vmul.f32 1.442695, %v1876_v48 }
 0x776   : > { %v1987_v9 = vpop.permute.xlu1 %1986 }
 0x777   : > { %3503 = vmatpush3.bf16.msra.mxu1 %v1987_v9 }
 0x778   : > { %3514 = vmatprep.subr.bf16.mxu1 %v3993_v37 }
 0x77a   : > { %v2034_v41 = vpop.permute.xlu1 %2033 }
 0x77b   : > { %v1855_v20 = vpop.xlane.xlu0 %1854 }
 0x77c   : > { %v1873_v44 = vsub.f32 %v1841_v43, %v1855_v20 }
 0x77e   : > { %v1883_v50 = vmul.f32 1.442695, %v1873_v44 }
 0x77f   : > { %v1858_v45 = vpop.xlane.xlu0 %1857 }
 0x780   : > { %3805 = vpow2.f32 %v1883_v50  ;;  %v1874_v52 = vsub.f32 %v1842_v49, %v1858_v45 }
 0x782   : > { %v1885_v59 = vmul.f32 1.442695, %v1874_v52 }
 0x783   : > { %v1861_v63 = vpop.xlane.xlu0 %1860 }
 0x784   : > { %3807 = vpow2.f32 %v1885_v59  ;;  %v1875_v13 = vsub.f32 %v1843_v51, %v1861_v63 }
 0x785   : > { %3809 = vpow2.f32 %v1889_v57 }
 0x786   : > { %v1887_v5 = vmul.f32 1.442695, %v1875_v13 }
 0x787   : > { %v1867_v17 = vpop.xlane.xlu0 %1866 }
 0x788   : > { %3811 = vpow2.f32 %v1887_v5  ;;  %v1877_v19 = vsub.f32 %v1845_v10, %v1867_v17 }
 0x78a   : > { %v3806_v21 = vpop.eup %3805  ;;  %v1891_v24 = vmul.f32 1.442695, %v1877_v19 }
 0x78b   : > { %v1940_v27 = vpop.permute.xlu0 %1939  ;;  %v1901_v43 = vsel %vm862_vm2, %v3806_v21, 0.0 }
 0x78c   : > { %3813 = vpow2.f32 %v1891_v24  ;;  %1902 = vadd.xlane.f32.xlu0 %v1901_v43  ;;  %3497 = vmatpush3.bf16.msra.mxu0 %v1940_v27 }
 0x78d   : > { %3508 = vmatprep.subr.bf16.mxu0 %v3993_v37 }
 0x78e   : > { %v3808_v32 = vpop.eup %3807 }
 0x78f   : > { %v1904_v49 = vsel %vm862_vm2, %v3808_v32, 0.0  ;;  %v3810_v28 = vpop.eup %3809 }
 0x790   : > { %1905 = vadd.xlane.f32.xlu1 %v1904_v49  ;;  %v1910_v10 = vsel %vm862_vm2, %v3810_v28, 0.0 }
 0x792   : > { %v3812_v51 = vpop.eup %3811 }
 0x793   : > { %v1907_v30 = vsel %vm862_vm2, %v3812_v51, 0.0 }
 0x794   : > { %1908 = vadd.xlane.f32.xlu0 %v1907_v30  ;;  %1911 = vadd.xlane.f32.xlu1 %v1910_v10 }
 0x796   : > { %v4568_v31 = vpop.eup %3813 }
 0x797   : > { %v1913_v40 = vsel %vm862_vm2, %v4568_v31, 0.0 }
 0x798   : > { %1914 = vadd.xlane.f32.xlu0 %v1913_v40 }
 0x7a5   : > { %2180 = vrot.lane.b32.xlu1 %v4270_v1, %s3997_s9 }
 0x7ab   : > { %v1870_v42 = vpop.xlane.xlu1 %1869 }
 0x7ac   : > { %v1878_v9 = vsub.f32 %v4548_v18, %v1870_v42 }
 0x7ae   : > { %2129 = vrot.lane.b32.xlu0 %v4263_v54, %s3997_s9  ;;  %v1893_v20 = vmul.f32 1.442695, %v1878_v9 }
 0x7b0   : > { %3815 = vpow2.f32 %v1893_v20 }
 0x7b2   : > { %2127 = vrot.lane.b32.xlu0 %v4261_v53, %s3997_s9  ;;  %v2081_v53 = vpop.permute.xlu1 %2080 }
 0x7b6   : > { %2178 = vrot.lane.b32.xlu0 %v4268_v0, %s3997_s9 }
 0x7ba   : > { %2229 = vrot.lane.b32.xlu0 %v4279_v11, %s3997_s9  ;;  %v4583_v44 = vpop.eup %3815 }
 0x7bb   : > { %v1916_v1 = vsel %vm862_vm2, %v4583_v44, 0.0 }
 0x7c9   : > { %1917 = vadd.xlane.f32.xlu1 %v1916_v1 }
 0x7da   : > { %2231 = vrot.lane.b32.xlu1 %v4281_v12, %s3997_s9 }
 0x7de   : > { %2282 = vrot.lane.b32.xlu1 %v4292_v23, %s3997_s9 }
 0x7e2   : > { %2280 = vrot.lane.b32.xlu1 %v4290_v22, %s3997_s9 }
 0x7e5   : > { %v1897_v54 = vpop.xlane.xlu0 %1896 }
 0x7e6   : > { %3817 = vrcp.f32 %v1897_v54 }
 0x7e7   : > { %v1900_v0 = vpop.xlane.xlu1 %1899 }
 0x7e8   : > { %3819 = vrcp.f32 %v1900_v0 }
 0x7f0   : > { %v3818_v11 = vpop.eup %3817 }
 0x7f1   : > { %v1927_v48 = vmul.f32 %v3818_v11, %v4554_v38 }
 0x7f2   : > { %v3820_v18 = vpop.eup %3819 }
 0x7f3   : > { %v1928_v50 = vmul.f32 %v3820_v18, %v4558_v25 }
 0x7f5   : > { %v1935_v45 = vpack.c.bf16 %v1928_v50, %v1927_v48 }
 0x7f7   : > { %3499 = vmatmul.mubr.msk.bf16.vlgmr.msra.gmra.mrb[44].mxu0 %vm862_vm2, %v1935_v45 }
 0x7f8   : > { %3509 = vmatpush3.bf16.msra.mxu0 %v2034_v41  ;;  %3510 = vmatprep.mubr.msk.bf16.mxu0 %vm3994_vm0, %v3993_v37 }
 0x7f9   : > { %3520 = vmatprep.subr.bf16.mxu0 %v3993_v37 }
 0x819   : > { %v1903_v12 = vpop.xlane.xlu0 %1902 }
 0x81a   : > { %3821 = vrcp.f32 %v1903_v12 }
 0x81d   : > { %v1906_v22 = vpop.xlane.xlu1 %1905 }
 0x81e   : > { %3823 = vrcp.f32 %v1906_v22 }
 0x821   : > { %v1909_v23 = vpop.xlane.xlu0 %1908  ;;  %v1912_v52 = vpop.xlane.xlu1 %1911 }
 0x822   : > { %3825 = vrcp.f32 %v1909_v23 }
 0x823   : > { %3827 = vrcp.f32 %v1912_v52 }
 0x824   : > { %v3822_v38 = vpop.eup %3821 }
 0x825   : > { %v1929_v25 = vmul.f32 %v3822_v38, %v3806_v21  ;;  %v1915_v63 = vpop.xlane.xlu0 %1914 }
 0x826   : > { %3829 = vrcp.f32 %v1915_v63 }
 0x828   : > { %v3824_v57 = vpop.eup %3823 }
 0x829   : > { %v1930_v59 = vmul.f32 %v3824_v57, %v3808_v32  ;;  %v2130_v27 = vpop.permute.xlu0 %2129  ;;  %v2181_v32 = vpop.permute.xlu1 %2180 }
 0x82a   : > { %v2135_v49 = vsel %vm665_vm1, %v2130_v27, 0 }
 0x82b   : > { %v1936_v13 = vpack.c.bf16 %v1930_v59, %v1929_v25 }
 0x82c   : > { %v3826_v5 = vpop.eup %3825 }
 0x82d   : > { %v3828_v17 = vpop.eup %3827  ;;  %v1931_v19 = vmul.f32 %v3826_v5, %v3812_v51  ;;  %3505 = vmatmul.mubr.msk.bf16.vlgmr.msra.gmra.mrb[60].mxu1 %vm862_vm2, %v1936_v13  ;;  %v2128_v21 = vpop.permute.xlu0 %2127 }
 0x82e   : > { %v1932_v24 = vmul.f32 %v3828_v17, %v3810_v28  ;;  %3515 = vmatpush3.bf16.msra.mxu1 %v2081_v53  ;;  %3516 = vmatprep.mubr.msk.bf16.mxu1 %vm3994_vm0, %v3993_v37  ;;  %v2186_v53 = vsel %vm665_vm1, %v2181_v32, 0 }
 0x82f   : > { %3526 = vmatprep.subr.bf16.mxu1 %v3993_v37 }
 0x830   : > { %v1937_v43 = vpack.c.bf16 %v1932_v24, %v1931_v19  ;;  %v3830_v40 = vpop.eup %3829 }
 0x831   : > { %v2179_v10 = vpop.permute.xlu0 %2178  ;;  %v1933_v42 = vmul.f32 %v3830_v40, %v4568_v31 }
 0x832   : > { %3511 = vmatmul.mubr.msk.bf16.vlgmr.msra.gmra.mrb[48].mxu0 %vm862_vm2, %v1937_v43 }
 0x833   : > { %3521 = vmatpush3.bf16.xpose.msra.mxu0 %v2135_v49  ;;  %3522 = vmatprep.mubr.msk.bf16.mxu0 %vm3994_vm0, %v3993_v37 }
 0x834   : > { %3532 = vmatprep.subr.bf16.mxu0 %v3993_v37 }
 0x835   : > { %v2230_v9 = vpop.permute.xlu0 %2229 }
 0x83a   : > { %3523 = vmatmul.mubr.msk.bf16.vlgmr.msra.gmra.mrb[52].mxu0 %vm665_vm1, %v2128_v21 }
 0x83b   : > { %3534 = vmatprep.mubr.msk.bf16.mxu0 %vm3994_vm0, %v3993_v37 }
 0x856   : > { %v1918_v28 = vpop.xlane.xlu1 %1917 }
 0x857   : > { %3831 = vrcp.f32 %v1918_v28 }
 0x85a   : > { %v2232_v51 = vpop.permute.xlu1 %2231 }
 0x85b   : > { %v2237_v30 = vsel %vm665_vm1, %v2232_v51, 0 }
 0x85c   : > { %3533 = vmatpush3.bf16.xpose.msra.mxu0 %v2237_v30 }
 0x85d   : > { %3544 = vmatprep.subr.bf16.mxu0 %v3993_v37 }
 0x85e   : > { %v2283_v31 = vpop.permute.xlu1 %2282 }
 0x85f   : > { %v2288_v54 = vsel %vm665_vm1, %v2283_v31, 0 }
 0x861   : > { %v3832_v41 = vpop.eup %3831 }
 0x862   : > { %v1934_v20 = vmul.f32 %v3832_v41, %v4583_v44  ;;  %v2281_v44 = vpop.permute.xlu1 %2280 }
 0x863   : > { %3535 = vmatmul.mubr.msk.bf16.vlgmr.msra.gmra.mrb[56].mxu0 %vm665_vm1, %v2230_v9 }
 0x864   : > { %v1938_v1 = vpack.c.bf16 %v1934_v20, %v1933_v42  ;;  %3546 = vmatprep.mubr.msk.bf16.mxu0 %vm3994_vm0, %v3993_v37 }
 0x866   : > { %3517 = vmatmul.mubr.msk.bf16.vlgmr.msra.gmra.mrb[64].mxu1 %vm862_vm2, %v1938_v1 }
 0x867   : > { %3527 = vmatpush3.bf16.xpose.msra.mxu1 %v2186_v53  ;;  %3528 = vmatprep.mubr.msk.bf16.mxu1 %vm3994_vm0, %v3993_v37 }
 0x868   : > { %3538 = vmatprep.subr.bf16.mxu1 %v3993_v37 }
 0x86e   : > { %3529 = vmatmul.mubr.msk.bf16.vlgmr.msra.gmra.mrb[68].mxu1 %vm665_vm1, %v2179_v10 }
 0x86f   : > { %3539 = vmatpush3.bf16.xpose.msra.mxu1 %v2288_v54  ;;  %3540 = vmatprep.mubr.msk.bf16.mxu1 %vm3994_vm0, %v3993_v37 }
 0x870   : > { %3550 = vmatprep.subr.bf16.mxu1 %v3993_v37 }
 0x876   : > { %3541 = vmatmul.mubr.msk.bf16.vlgmr.msra.gmra.mrb[72].mxu1 %vm665_vm1, %v2281_v44 }
 0x877   : > { %3552 = vmatprep.mubr.msk.bf16.mxu1 %vm3994_vm0, %v3993_v37 }
 0x8ca   : > { %v4631_v0 = vpop.f32.mrb[44].mxu0 }
 0x8cb   : > { %v3500_v11 = vpop.f32.mrb[45].mxu0 }
 0x8cc   : > { %v4633_v18 = vpop.f32.mrb[46].mxu0 }
 0x8cd   : > { %v3647_v48 = vpack.i.bf16 %v4633_v18, %v4631_v0  ;;  %v3501_v50 = vpop.f32.mrb[47].mxu0 }
 0x900   : > { %v4637_v45 = vpop.f32.mrb[60].mxu1 }
 0x901   : > { %v3506_v12 = vpop.f32.mrb[61].mxu1 }
 0x902   : > { %v4639_v22 = vpop.f32.mrb[62].mxu1 }
 0x903   : > { %v3652_v23 = vpack.i.bf16 %v4639_v22, %v4637_v45  ;;  %v3507_v52 = vpop.f32.mrb[63].mxu1 }
 0x905   : > { %v4643_v38 = vpop.f32.mrb[48].mxu0 }
 0x906   : > { %v3512_v57 = vpop.f32.mrb[49].mxu0 }
 0x907   : > { %v4645_v25 = vpop.f32.mrb[50].mxu0 }
 0x908   : > { %v3672_v59 = vpack.i.bf16 %v4645_v25, %v4643_v38  ;;  %v3513_v63 = vpop.f32.mrb[51].mxu0 }
 0x90d   : > { %v2171_v13 = vpop.f32.mrb[52].mxu0 }
 0x90e   : > { %v2331_v5 = vmul.f32 0.17677669, %v2171_v13  ;;  %v3524_v17 = vpop.f32.mrb[53].mxu0 }
 0x90f   : > { %v2174_v19 = vpop.f32.mrb[54].mxu0 }
 0x910   : > { %v2332_v24 = vmul.f32 0.17677669, %v2174_v19  ;;  %v3525_v27 = vpop.f32.mrb[55].mxu0  ;;  %v2339_v43 = vsel %vm862_vm2, %v2331_v5, -inf }
 0x911   : > { %2340 = vmax.xlane.f32.xlu0 %v2339_v43 }
 0x912   : > { %v2342_v49 = vsel %vm862_vm2, %v2332_v24, -inf }
 0x913   : > { %2343 = vmax.xlane.f32.xlu1 %v2342_v49 }
 0x936   : > { %v2273_v21 = vpop.f32.mrb[56].mxu0 }
 0x937   : > { %v3536_v32 = vpop.f32.mrb[57].mxu0  ;;  %v2335_v12 = vmul.f32 0.17677669, %v2273_v21 }
 0x938   : > { %v2276_v28 = vpop.f32.mrb[58].mxu0 }
 0x939   : > { %v2336_v51 = vmul.f32 0.17677669, %v2276_v28  ;;  %v4651_v30 = vpop.f32.mrb[64].mxu1  ;;  %v3537_v10 = vpop.f32.mrb[59].mxu0  ;;  %v2351_v43 = vsel %vm862_vm2, %v2335_v12, -inf }
 0x93a   : > { %v3518_v40 = vpop.f32.mrb[65].mxu1 }
 0x93b   : > { %v4653_v41 = vpop.f32.mrb[66].mxu1  ;;  %v2354_v42 = vsel %vm862_vm2, %v2336_v51, -inf }
 0x93c   : > { %v3682_v9 = vpack.i.bf16 %v4653_v41, %v4651_v30  ;;  %2355 = vmax.xlane.f32.xlu1 %v2354_v42  ;;  %v3519_v20 = vpop.f32.mrb[67].mxu1 }
 0x941   : > { %v2222_v1 = vpop.f32.mrb[68].mxu1 }
 0x942   : > { %v2333_v53 = vmul.f32 0.17677669, %v2222_v1  ;;  %v3530_v31 = vpop.f32.mrb[69].mxu1 }
 0x943   : > { %v2225_v54 = vpop.f32.mrb[70].mxu1 }
 0x944   : > { %v2334_v44 = vmul.f32 0.17677669, %v2225_v54  ;;  %v3531_v11 = vpop.f32.mrb[71].mxu1  ;;  %v2345_v50 = vsel %vm862_vm2, %v2333_v53, -inf }
 0x945   : > { %2346 = vmax.xlane.f32.xlu0 %v2345_v50 }
 0x946   : > { %v2348_v52 = vsel %vm862_vm2, %v2334_v44, -inf }
 0x949   : > { %2349 = vmax.xlane.f32.xlu0 %v2348_v52  ;;  %v2324_v57 = vpop.f32.mrb[72].mxu1 }
 0x94a   : > { %v3542_v63 = vpop.f32.mrb[73].mxu1  ;;  %v2337_v17 = vmul.f32 0.17677669, %v2324_v57 }
 0x94b   : > { %v2327_v13 = vpop.f32.mrb[74].mxu1 }
 0x94c   : > { %v4660_v19 = vmul.f32 0.17677669, %v2327_v13  ;;  %v3543_v27 = vpop.f32.mrb[75].mxu1  ;;  %v2357_v32 = vsel %vm862_vm2, %v2337_v17, -inf }
 0x94d   : > { %2352 = vmax.xlane.f32.xlu0 %v2351_v43 }
 0x94e   : > { %v2360_v49 = vsel %vm862_vm2, %v4660_v19, -inf }
 0x94f   : > { %2361 = vmax.xlane.f32.xlu1 %v2360_v49 }
 0x951   : > { %2358 = vmax.xlane.f32.xlu0 %v2357_v32 }
 0x99e   : > { %v2341_v21 = vpop.xlane.xlu0 %2340 }
 0x99f   : > { %v2363_v28 = vsub.f32 %v2331_v5, %v2341_v21 }
 0x9a0   : > { %v2344_v10 = vpop.xlane.xlu1 %2343 }
 0x9a1   : > { %v2371_v40 = vmul.f32 1.442695, %v2363_v28  ;;  %v2364_v42 = vsub.f32 %v2332_v24, %v2344_v10 }
 0x9a3   : > { %3833 = vpow2.f32 %v2371_v40  ;;  %v2373_v20 = vmul.f32 1.442695, %v2364_v42 }
 0x9a5   : > { %3835 = vpow2.f32 %v2373_v20 }
 0x9ad   : > { %v4666_v1 = vpop.eup %3833 }
 0x9ae   : > { %v2387_v31 = vsel %vm862_vm2, %v4666_v1, 0.0 }
 0x9af   : > { %v4670_v54 = vpop.eup %3835  ;;  %2388 = vadd.xlane.f32.xlu0 %v2387_v31 }
 0x9b0   : > { %v2390_v11 = vsel %vm862_vm2, %v4670_v54, 0.0 }
 0x9b1   : > { %2391 = vadd.xlane.f32.xlu1 %v2390_v11 }
 0x9c9   : > { %v2356_v50 = vpop.xlane.xlu1 %2355 }
 0x9ca   : > { %v2368_v57 = vsub.f32 %v2336_v51, %v2356_v50 }
 0x9cc   : > { %v2381_v27 = vmul.f32 1.442695, %v2368_v57 }
 0x9d2   : > { %v2347_v5 = vpop.xlane.xlu0 %2346 }
 0x9d3   : > { %v2365_v52 = vsub.f32 %v2333_v53, %v2347_v5 }
 0x9d5   : > { %v2375_v24 = vmul.f32 1.442695, %v2365_v52 }
 0x9d6   : > { %v2350_v63 = vpop.xlane.xlu0 %2349 }
 0x9d7   : > { %3837 = vpow2.f32 %v2375_v24  ;;  %v2366_v13 = vsub.f32 %v2334_v44, %v2350_v63 }
 0x9d9   : > { %v2377_v43 = vmul.f32 1.442695, %v2366_v13 }
 0x9da   : > { %v2353_v49 = vpop.xlane.xlu0 %2352 }
 0x9db   : > { %3839 = vpow2.f32 %v2377_v43  ;;  %v2367_v32 = vsub.f32 %v2335_v12, %v2353_v49 }
 0x9dc   : > { %3841 = vpow2.f32 %v2381_v27  ;;  %v2362_v5 = vpop.xlane.xlu1 %2361 }
 0x9dd   : > { %v2379_v21 = vmul.f32 1.442695, %v2367_v32  ;;  %v2370_v52 = vsub.f32 %v4660_v19, %v2362_v5 }
 0x9de   : > { %v2359_v28 = vpop.xlane.xlu0 %2358 }
 0x9df   : > { %3843 = vpow2.f32 %v2379_v21  ;;  %v2369_v10 = vsub.f32 %v2337_v17, %v2359_v28 }
 0x9e1   : > { %v3838_v40 = vpop.eup %3837  ;;  %v2383_v42 = vmul.f32 1.442695, %v2369_v10  ;;  %v3730_v10 = vld [vmem:[%s4845_s3 + $0x8] sm:$0xff]  }
 0x9e2   : > { %v2393_v20 = vsel %vm862_vm2, %v3838_v40, 0.0 }
 0x9e3   : > { %3845 = vpow2.f32 %v2383_v42  ;;  %2394 = vadd.xlane.f32.xlu0 %v2393_v20  ;;  %v3732_v42 = vld [vmem:[%s4845_s3 + $0x18] sm:$0xff]   ;;  %v3733_v20 = vld [vmem:[%s4845_s3 + $0x20] sm:$0xff]  }
 0x9e5   : > { %v3840_v51 = vpop.eup %3839 }
 0x9e6   : > { %v2396_v53 = vsel %vm862_vm2, %v3840_v51, 0.0  ;;  %v4676_v44 = vpop.eup %3841 }
 0x9e7   : > { %2397 = vadd.xlane.f32.xlu1 %v2396_v53  ;;  %v2402_v11 = vsel %vm862_vm2, %v4676_v44, 0.0  ;;  %v3735_v53 = vld [vmem:[%s4845_s3 + $0x30] sm:$0xff]  }
 0x9e9   : > { %v3844_v31 = vpop.eup %3843 }
 0x9ea   : > { %v2399_v12 = vsel %vm862_vm2, %v3844_v31, 0.0 }
 0x9eb   : > { %2400 = vadd.xlane.f32.xlu0 %v2399_v12  ;;  %2403 = vadd.xlane.f32.xlu1 %v2402_v11 }
 0x9ed   : > { %v4681_v17 = vpop.eup %3845 }
 0x9ee   : > { %v2405_v50 = vsel %vm862_vm2, %v4681_v17, 0.0 }
 0x9ef   : > { %2406 = vadd.xlane.f32.xlu0 %v2405_v50 }
 0x9fc   : > { %2478 = vrot.lane.b32.xlu1 %v4307_v35, %s3997_s9  ;;  %v2385_v35 = vmul.f32 1.442695, %v2370_v52 }
 0x9fe   : > { %3847 = vpow2.f32 %v2385_v35 }
 0xa00   : > { %2525 = vrot.lane.b32.xlu1 %v4317_v47, %s3997_s9 }
 0xa05   : > { %2431 = vrot.lane.b32.xlu0 %v4309_v36, %s3997_s9 }
 0xa08   : > { %v3848_v36 = vpop.eup %3847 }
 0xa09   : > { %3638 = vrot.lane.b32.xlu0 %v3637_v55, %s3997_s9  ;;  %v2408_v47 = vsel %vm862_vm2, %v3848_v36, 0.0 }
 0xa0d   : > { %3648 = vrot.lane.b32.xlu0 %v3647_v48, %s3996_s28 }
 0xa11   : > { %3658 = vrot.lane.b32.xlu0 %v3657_v16, %s3997_s9 }
 0xa24   : > { %2409 = vadd.xlane.f32.xlu1 %v2408_v47 }
 0xa35   : > { %2572 = vrot.lane.b32.xlu1 %v4315_v46, %s3997_s9 }
 0xa39   : > { %3643 = vrot.lane.b32.xlu1 %v3642_v7, %s3997_s9 }
 0xa3c   : > { %v2389_v56 = vpop.xlane.xlu0 %2388 }
 0xa3d   : > { %3653 = vrot.lane.b32.xlu1 %v3652_v23, %s3996_s28 }
 0xa3e   : > { %v2392_v58 = vpop.xlane.xlu1 %2391 }
 0xa3f   : > { %3849 = vrcp.f32 %v2392_v58 }
 0xa40   : > { %3851 = vrcp.f32 %v2389_v56 }
 0xa41   : > { %3663 = vrot.lane.b32.xlu1 %v3662_v39, %s3997_s9 }
 0xa49   : > { %v3850_v7 = vpop.eup %3849 }
 0xa4a   : > { %v3852_v14 = vpop.eup %3851  ;;  %v2420_v34 = vmul.f32 %v3850_v7, %v4670_v54 }
 0xa4b   : > { %v2419_v39 = vmul.f32 %v3852_v14, %v4666_v1 }
 0xa4d   : > { %v2427_v22 = vpack.c.bf16 %v2420_v34, %v2419_v39 }
 0xa70   : > { %v2395_v55 = vpop.xlane.xlu0 %2394 }
 0xa71   : > { %3853 = vrcp.f32 %v2395_v55 }
 0xa74   : > { %v2398_v46 = vpop.xlane.xlu1 %2397 }
 0xa75   : > { %3855 = vrcp.f32 %v2398_v46 }
 0xa78   : > { %v2401_v61 = vpop.xlane.xlu0 %2400  ;;  %v2404_v3 = vpop.xlane.xlu1 %2403 }
 0xa79   : > { %3857 = vrcp.f32 %v2401_v61 }
 0xa7a   : > { %3859 = vrcp.f32 %v2404_v3 }
 0xa7b   : > { %v3854_v0 = vpop.eup %3853 }
 0xa7c   : > { %v2407_v15 = vpop.xlane.xlu0 %2406  ;;  %v2479_v16 = vpop.permute.xlu1 %2478  ;;  %v2421_v18 = vmul.f32 %v3854_v0, %v3838_v40  ;;  %v3731_v40 = vld [vmem:[%s4845_s3 + $0x10] sm:$0xff]  }
 0xa7d   : > { %3551 = vmatpush3.bf16.msra.mxu1 %v2479_v16  ;;  %3861 = vrcp.f32 %v2407_v15 }
 0xa7e   : > { %3562 = vmatprep.subr.bf16.mxu1 %v3993_v37 }
 0xa7f   : > { %v3856_v33 = vpop.eup %3855 }
 0xa80   : > { %v2422_v48 = vmul.f32 %v3856_v33, %v3840_v51  ;;  %v2432_v45 = vpop.permute.xlu0 %2431  ;;  %v2526_v24 = vpop.permute.xlu1 %2525  ;;  %v3734_v51 = vld [vmem:[%s4845_s3 + $0x28] sm:$0xff]  }
 0xa81   : > { %3545 = vmatpush3.bf16.msra.mxu0 %v2432_v45 }
 0xa82   : > { %3556 = vmatprep.subr.bf16.mxu0 %v3993_v37  ;;  %v2428_v23 = vpack.c.bf16 %v2422_v48, %v2421_v18 }
 0xa83   : > { %v3858_v19 = vpop.eup %3857 }
 0xa84   : > { %v3860_v57 = vpop.eup %3859  ;;  %3547 = vmatmul.mubr.msk.bf16.vlgmr.msra.gmra.mrb[60].mxu0 %vm862_vm2, %v2427_v22  ;;  %3553 = vmatmul.mubr.msk.bf16.vlgmr.msra.gmra.mrb[76].mxu1 %vm862_vm2, %v2428_v23  ;;  %v2423_v1 = vmul.f32 %v3858_v19, %v3844_v31  ;;  %v3639_v38 = vpop.permute.xlu0 %3638 }
 0xa85   : > { %3557 = vmatpush3.bf16.msra.mxu0 %v2526_v24  ;;  %3558 = vmatprep.mubr.msk.bf16.mxu0 %vm3994_vm0, %v3993_v37  ;;  %v2424_v54 = vmul.f32 %v3860_v57, %v4676_v44  ;;  %v3736_v44 = vld [vmem:[%s4845_s3 + $0x38] sm:$0xff]   ;;  %v3641_v34 = vunpack.i.h.bf16 %v3639_v38  ;;  %v3640_v33 = vunpack.i.l.bf16 %v3639_v38 }
 0xa86   : > { %3564 = vmatprep.mubr.msk.bf16.mxu1 %vm3994_vm0, %v3993_v37  ;;  %v3729_v37 = vld [vmem:[%s4845_s3] sm:$0xff]  }
 0xa87   : > { %v2429_v63 = vpack.c.bf16 %v2424_v54, %v2423_v1  ;;  %v3862_v43 = vpop.eup %3861  ;;  %3568 = vmatprep.subr.bf16.mxu0 %v3729_v37  ;;  %v2716_v23 = vsel %vm665_vm1, %v4401_v62, %v3641_v34  ;;  %v2715_v19 = vsel %vm665_vm1, %v4399_v60, %v3640_v33  ;;  %v3881_v33 = vld [vmem:[%s4177_s30 + $0x10] sm:$0xff] }
 0xa88   : > { %v2425_v32 = vmul.f32 %v3862_v43, %v4681_v17 }
 0xa8c   : > { %3559 = vmatmul.mubr.msk.bf16.vlgmr.msra.gmra.mrb[64].mxu0 %vm862_vm2, %v2429_v63 }
 0xa8d   : > { %3569 = vmatpush3.bf16.msra.mxu0 %v3729_v37 }
 0xa8e   : > { %3570 = vmatprep.subr.bf16.mxu0 %v3730_v10 }
 0xa91   : > { %3571 = vmatpush3.bf16.msra.mxu0 %v3730_v10 }
 0xa92   : > { %3572 = vmatprep.subr.bf16.mxu0 %v3731_v40 }
 0xa95   : > { %3573 = vmatpush3.bf16.msra.mxu0 %v3731_v40 }
 0xa96   : > { %3574 = vmatprep.subr.bf16.mxu0 %v3732_v42 }
 0xa99   : > { %3575 = vmatpush3.bf16.msra.mxu0 %v3732_v42 }
 0xa9a   : > { %3576 = vmatprep.subr.bf16.mxu0 %v3733_v20 }
 0xa9d   : > { %3577 = vmatpush3.bf16.msra.mxu0 %v3733_v20 }
 0xa9e   : > { %3578 = vmatprep.subr.bf16.mxu0 %v3734_v51 }
 0xaa1   : > { %3579 = vmatpush3.bf16.msra.mxu0 %v3734_v51 }
 0xaa2   : > { %3580 = vmatprep.subr.bf16.mxu0 %v3735_v53 }
 0xaa5   : > { %3581 = vmatpush3.bf16.msra.mxu0 %v3735_v53 }
 0xaa6   : > { %3582 = vmatprep.subr.bf16.mxu0 %v3736_v44 }
 0xaa9   : > { %3583 = vmatpush3.bf16.msra.mxu0 %v3736_v44 }
 0xab1   : > { %v2410_v13 = vpop.xlane.xlu1 %2409 }
 0xab2   : > { %3863 = vrcp.f32 %v2410_v13 }
 0xab5   : > { %v2573_v27 = vpop.permute.xlu1 %2572 }
 0xab6   : > { %3563 = vmatpush3.bf16.msra.mxu1 %v2573_v27 }
 0xab9   : > { %v3644_v25 = vpop.permute.xlu1 %3643 }
 0xaba   : > { %v3646_v41 = vunpack.i.h.bf16 %v3644_v25 }
 0xabc   : > { %v3864_v49 = vpop.eup %3863  ;;  %v2718_v57 = vsel %vm665_vm1, %v4405_v4, %v3646_v41 }
 0xabd   : > { %v2426_v21 = vmul.f32 %v3864_v49, %v3848_v36  ;;  %v3654_v0 = vpop.permute.xlu1 %3653 }
 0xabe   : > { %v3656_v45 = vunpack.i.h.bf16 %v3654_v0  ;;  %v3655_v22 = vunpack.i.l.bf16 %v3654_v0 }
 0xabf   : > { %v2430_v28 = vpack.c.bf16 %v2426_v21, %v2425_v32 }
 0xac0   : > { %v2727_v60 = vsel %vm2723_vm3, %v2718_v57, %v3656_v45  ;;  %v3883_v45 = vld [vmem:[%s4177_s30] sm:$0xff] }
 0xac1   : > { %3565 = vmatmul.mubr.msk.bf16.vlgmr.msra.gmra.mrb[80].mxu1 %vm862_vm2, %v2430_v28  ;;  %v3664_v39 = vpop.permute.xlu1 %3663 }
 0xb57   : > { %v2471_v31 = vpop.f32.mrb[60].mxu0  ;;  %v2518_v12 = vpop.f32.mrb[76].mxu1 }
 0xb58   : > { %v3548_v11 = vpop.f32.mrb[61].mxu0  ;;  %v3554_v17 = vpop.f32.mrb[77].mxu1 }
 0xb59   : > { %v2474_v50 = vpop.f32.mrb[62].mxu0  ;;  %v2521_v5 = vpop.f32.mrb[78].mxu1 }
 0xb5a   : > { %v3667_v52 = vpack.i.bf16 %v2474_v50, %v2471_v31  ;;  %v3677_v35 = vpack.i.bf16 %v2521_v5, %v2518_v12  ;;  %v3549_v36 = vpop.f32.mrb[63].mxu0  ;;  %v3555_v47 = vpop.f32.mrb[79].mxu1 }
 0xb5c   : > { %3668 = vrot.lane.b32.xlu0 %v3667_v52, %s3995_s23  ;;  %3678 = vrot.lane.b32.xlu1 %v3677_v35, %s3995_s23 }
 0xb5f   : > { %v2565_v56 = vpop.f32.mrb[64].mxu0 }
 0xb60   : > { %3673 = vrot.lane.b32.xlu0 %v3672_v59, %s3996_s28  ;;  %v3560_v58 = vpop.f32.mrb[65].mxu0  ;;  %3683 = vrot.lane.b32.xlu1 %v3682_v9, %s3996_s28  ;;  %v3649_v59 = vpop.permute.xlu0 %3648  ;;  %v3645_v9 = vunpack.i.l.bf16 %v3644_v25 }
 0xb61   : > { %v2568_v55 = vpop.f32.mrb[66].mxu0  ;;  %v3651_v18 = vunpack.i.h.bf16 %v3649_v59  ;;  %v3650_v48 = vunpack.i.l.bf16 %v3649_v59  ;;  %v3665_v58 = vunpack.i.l.bf16 %v3664_v39  ;;  %v3210_v59 = vld [vmem:[#allocation2] ss:$0 sm:$0xff] }
 0xb62   : > { %v3687_v46 = vpack.i.bf16 %v2568_v55, %v2565_v56  ;;  %v3561_v61 = vpop.f32.mrb[67].mxu0  ;;  %v2717_v24 = vsel %vm665_vm1, %v4403_v2, %v3645_v9  ;;  %v3666_v56 = vunpack.i.h.bf16 %v3664_v39 }
 0xb63   : > { %v2724_v49 = vsel %vm2723_vm3, %v2715_v19, %v3650_v48  ;;  %v2725_v62 = vsel %vm2723_vm3, %v2716_v23, %v3651_v18  ;;  %v2726_v32 = vsel %vm2723_vm3, %v2717_v24, %v3655_v22  ;;  %v2721_v61 = vsel %vm665_vm1, %v4413_v26, %v3665_v58  ;;  %v3882_v18 = vld [vmem:[%s4177_s30 + $0x8] sm:$0xff]  ;;  %v3884_v19 = vld [vmem:[%s4177_s30 + $0x18] sm:$0xff] }
 0xb64   : > { %3688 = vrot.lane.b32.xlu0 %v3687_v46, %s3995_s23  ;;  %v3659_v30 = vpop.permute.xlu0 %3658 }
 0xb65   : > { %v3661_v42 = vunpack.i.h.bf16 %v3659_v30  ;;  %v3660_v20 = vunpack.i.l.bf16 %v3659_v30 }
 0xb67   : > { %v2720_v31 = vsel %vm665_vm1, %v4409_v8, %v3661_v42  ;;  %v2719_v12 = vsel %vm665_vm1, %v4407_v6, %v3660_v20  ;;  %v2722_v6 = vsel %vm665_vm1, %v4415_v29, %v3666_v56 }
 0xb94   : > { %v2612_v3 = vpop.f32.mrb[80].mxu1 }
 0xb95   : > { %v3566_v7 = vpop.f32.mrb[81].mxu1 }
 0xb96   : > { %v2615_v14 = vpop.f32.mrb[82].mxu1 }
 0xb97   : > { %v3692_v15 = vpack.i.bf16 %v2615_v14, %v2612_v3  ;;  %v3567_v16 = vpop.f32.mrb[83].mxu1 }
 0xb99   : > { %3693 = vrot.lane.b32.xlu1 %v3692_v15, %s3995_s23 }
 0xbce   : > { %v3669_v1 = vpop.permute.xlu0 %3668  ;;  %v3679_v54 = vpop.permute.xlu1 %3678 }
 0xbcf   : > { %v3671_v63 = vunpack.i.h.bf16 %v3669_v1  ;;  %v3670_v13 = vunpack.i.l.bf16 %v3669_v1  ;;  %v3681_v27 = vunpack.i.h.bf16 %v3679_v54  ;;  %v3680_v43 = vunpack.i.l.bf16 %v3679_v54 }
 0xbd1   : > { %v2736_v4 = vsel %vm2732_vm4, %v2727_v60, %v3681_v27  ;;  %v2735_v21 = vsel %vm2732_vm4, %v2726_v32, %v3680_v43  ;;  %v2733_v2 = vsel %vm2732_vm4, %v2724_v49, %v3670_v13  ;;  %v2734_v28 = vsel %vm2732_vm4, %v2725_v62, %v3671_v63  ;;  %v3885_v49 = vld [vmem:[%s4177_s30 + $0x20] sm:$0xff]  ;;  %v3886_v60 = vld [vmem:[%s4177_s30 + $0x28] sm:$0xff] }
 0xbd2   : > { %v2742_v37 = vpack.c.bf16 %v2736_v4, %v2735_v21  ;;  %v3674_v10 = vpop.permute.xlu0 %3673  ;;  %v2741_v40 = vpack.c.bf16 %v2734_v28, %v2733_v2  ;;  %v3684_v47 = vpop.permute.xlu1 %3683  ;;  %v3887_v21 = vld [vmem:[%s4177_s30 + $0x30] sm:$0xff]  ;;  %v3888_v28 = vld [vmem:[%s4177_s30 + $0x38] sm:$0xff]  ;;  %s3232_s30 = sshll.u32 %s4860_s11, 3 }
 0xbd3   : > { %v3676_v51 = vunpack.i.h.bf16 %v3674_v10  ;;  %v3675_v53 = vunpack.i.l.bf16 %v3674_v10  ;;  %v3686_v55 = vunpack.i.h.bf16 %v3684_v47  ;;  %v3685_v8 = vunpack.i.l.bf16 %v3684_v47  ;;  %s4829_s28 = scalar_lea.vmem %s4849_s7, %s3232_s30 }
 0xbd4   : > { %3584 = vmatprep.mubr.bf16.mxu0 %v2741_v40 }
 0xbd5   : > { %3585 = vmatmul.mubr.bf16.vlgmr.msra.gmra.mrb[68].mxu0 %v2742_v37  ;;  %v2729_v50 = vsel %vm2723_vm3, %v2720_v31, %v3676_v51  ;;  %v2728_v5 = vsel %vm2723_vm3, %v2719_v12, %v3675_v53  ;;  %v2731_v14 = vsel %vm2723_vm3, %v2722_v6, %v3686_v55  ;;  %v2730_v15 = vsel %vm2723_vm3, %v2721_v61, %v3685_v8 }
 0xbd6   : > { %v3689_v44 = vpop.permute.xlu0 %3688 }
 0xbd7   : > { %v3691_v11 = vunpack.i.h.bf16 %v3689_v44  ;;  %v3690_v17 = vunpack.i.l.bf16 %v3689_v44 }
 0xbd9   : > { %v2737_v52 = vsel %vm2732_vm4, %v2728_v5, %v3690_v17  ;;  %v2738_v35 = vsel %vm2732_vm4, %v2729_v50, %v3691_v11 }
 0xbda   : > { %v2743_v36 = vpack.c.bf16 %v2738_v35, %v2737_v52 }
 0xbdc   : > { %3588 = vmatprep.mubr.bf16.mxu0 %v2743_v36 }
 0xc0b   : > { %v3694_v46 = vpop.permute.xlu1 %3693 }
 0xc0c   : > { %v3696_v3 = vunpack.i.h.bf16 %v3694_v46  ;;  %v3695_v7 = vunpack.i.l.bf16 %v3694_v46 }
 0xc0e   : > { %v2739_v16 = vsel %vm2732_vm4, %v2730_v15, %v3695_v7  ;;  %v2740_v38 = vsel %vm2732_vm4, %v2731_v14, %v3696_v3 }
 0xc0f   : > { %v2744_v25 = vpack.c.bf16 %v2740_v38, %v2739_v16 }
 0xc11   : > { %3589 = vmatmul.mubr.bf16.gmra.mrb[72].mxu0 %v2744_v25 }
 0xca8   : > { %v3586_v0 = vpop.f32.mrb[68].mxu0 }
 0xca9   : > { %v2859_v29 = vadd.f32 %v3586_v0, %v3210_v59  ;;  %v2850_v34 = vpop.f32.mrb[69].mxu0 }
 0xcaa   : > { %v3587_v26 = vpop.f32.mrb[70].mxu0  ;;  %v2851_v41 = vadd.f32 %v3210_v59, %v2850_v34 }
 0xcab   : > { %v2883_v30 = vadd.f32 %v3881_v33, %v2859_v29  ;;  %v2853_v9 = vpop.f32.mrb[71].mxu0  ;;  %v2862_v23 = vadd.f32 %v3587_v26, %v3210_v59 }
 0xcac   : > { %v2854_v39 = vadd.f32 %v3210_v59, %v2853_v9  ;;  %v2881_v22 = vadd.f32 %v3883_v45, %v2851_v41 }
 0xcad   : > { %2895 = vadd.xlane.f32.xlu0 %v2883_v30  ;;  %v2884_v57 = vadd.f32 %v3884_v19, %v2862_v23 }
 0xcae   : > { %v2882_v48 = vadd.f32 %v3882_v18, %v2854_v39 }
 0xcb0   : > { %2893 = vadd.xlane.f32.xlu1 %v2882_v48 }
 0xcb1   : > { %2891 = vadd.xlane.f32.xlu0 %v2881_v22 }
 0xcb5   : > { %2897 = vadd.xlane.f32.xlu0 %v2884_v57 }
 0xce4   : > { %v3590_v24 = vpop.f32.mrb[72].mxu0 }
 0xce5   : > { %v2875_v1 = vadd.f32 %v3590_v24, %v3210_v59  ;;  %v2866_v54 = vpop.f32.mrb[73].mxu0 }
 0xce6   : > { %v2867_v63 = vadd.f32 %v3210_v59, %v2866_v54  ;;  %v3591_v13 = vpop.f32.mrb[74].mxu0  ;;  %v3219_v54 = vld [vmem:[#allocation4] ss:$0 sm:$0xff] }
 0xce7   : > { %v2878_v27 = vadd.f32 %v3591_v13, %v3210_v59  ;;  %v2869_v43 = vpop.f32.mrb[75].mxu0  ;;  %v2887_v2 = vadd.f32 %v3887_v21, %v2875_v1 }
 0xce8   : > { %v2885_v62 = vadd.f32 %v3885_v49, %v2867_v63  ;;  %v2870_v32 = vadd.f32 %v3210_v59, %v2869_v43 }
 0xce9   : > { %v2888_v37 = vadd.f32 %v3888_v28, %v2878_v27 }
 0xcea   : > { %v2886_v4 = vadd.f32 %v3886_v60, %v2870_v32  ;;  %2899 = vadd.xlane.f32.xlu0 %v2885_v62 }
 0xcec   : > { %2901 = vadd.xlane.f32.xlu1 %v2886_v4 }
 0xcee   : > { %2903 = vadd.xlane.f32.xlu0 %v2887_v2 }
 0xcf0   : > { %2905 = vadd.xlane.f32.xlu1 %v2888_v37 }
 0xd3a   : > { %v2896_v10 = vpop.xlane.xlu0 %2895 }
 0xd3b   : > { %v2910_v40 = vmul.f32 0.0078125, %v2896_v10 }
 0xd3d   : > { %v2918_v42 = vsub.f32 %v2883_v30, %v2910_v40  ;;  %v2894_v44 = vpop.xlane.xlu1 %2893 }
 0xd3e   : > { %v2892_v20 = vpop.xlane.xlu0 %2891  ;;  %v2909_v11 = vmul.f32 0.0078125, %v2894_v44 }
 0xd3f   : > { %v2908_v51 = vmul.f32 0.0078125, %v2892_v20  ;;  %v2926_v53 = vmul.f32 %v2918_v42, %v2918_v42 }
 0xd40   : > { %v2917_v52 = vsub.f32 %v2882_v48, %v2909_v11 }
 0xd41   : > { %v2916_v31 = vsub.f32 %v2881_v22, %v2908_v51  ;;  %2936 = vadd.xlane.f32.xlu0 %v2926_v53 }
 0xd42   : > { %v2898_v12 = vpop.xlane.xlu0 %2897  ;;  %v2925_v36 = vmul.f32 %v2917_v52, %v2917_v52 }
 0xd43   : > { %v2911_v17 = vmul.f32 0.0078125, %v2898_v12  ;;  %v2924_v50 = vmul.f32 %v2916_v31, %v2916_v31 }
 0xd45   : > { %v2919_v5 = vsub.f32 %v2884_v57, %v2911_v17  ;;  %2932 = vadd.xlane.f32.xlu0 %v2924_v50 }
 0xd47   : > { %v2927_v35 = vmul.f32 %v2919_v5, %v2919_v5 }
 0xd49   : > { %2938 = vadd.xlane.f32.xlu1 %v2927_v35 }
 0xd4d   : > { %2934 = vadd.xlane.f32.xlu1 %v2925_v36 }
 0xd77   : > { %v2900_v47 = vpop.xlane.xlu0 %2899 }
 0xd78   : > { %v2912_v56 = vmul.f32 0.0078125, %v2900_v47 }
 0xd79   : > { %v2902_v58 = vpop.xlane.xlu1 %2901 }
 0xd7a   : > { %v4809_v55 = vsub.f32 %v2885_v62, %v2912_v56  ;;  %v2913_v8 = vmul.f32 0.0078125, %v2902_v58  ;;  %v3220_v62 = vld [vmem:[#allocation6] ss:$0 sm:$0xff] }
 0xd7b   : > { %v2904_v46 = vpop.xlane.xlu0 %2903 }
 0xd7c   : > { %v4811_v6 = vsub.f32 %v2886_v4, %v2913_v8  ;;  %v2914_v61 = vmul.f32 0.0078125, %v2904_v46  ;;  %v2928_v3 = vmul.f32 %v4809_v55, %v4809_v55 }
 0xd7d   : > { %v2906_v7 = vpop.xlane.xlu1 %2905 }
 0xd7e   : > { %v4815_v14 = vsub.f32 %v2887_v2, %v2914_v61  ;;  %v2915_v15 = vmul.f32 0.0078125, %v2906_v7  ;;  %2940 = vadd.xlane.f32.xlu0 %v2928_v3  ;;  %v2929_v16 = vmul.f32 %v4811_v6, %v4811_v6 }
 0xd80   : > { %v4819_v38 = vsub.f32 %v2888_v37, %v2915_v15  ;;  %2942 = vadd.xlane.f32.xlu1 %v2929_v16  ;;  %v2930_v25 = vmul.f32 %v4815_v14, %v4815_v14 }
 0xd82   : > { %2944 = vadd.xlane.f32.xlu0 %v2930_v25  ;;  %v2931_v59 = vmul.f32 %v4819_v38, %v4819_v38 }
 0xd84   : > { %2946 = vadd.xlane.f32.xlu1 %v2931_v59 }
 0xdce   : > { %v2937_v0 = vpop.xlane.xlu0 %2936 }
 0xdcf   : > { %v2950_v29 = vmul.f32 0.0078125, %v2937_v0 }
 0xdd1   : > { %v2958_v30 = vadd.f32 1e-05, %v2950_v29 }
 0xdd2   : > { %v2933_v34 = vpop.xlane.xlu0 %2932 }
 0xdd3   : > { %v2948_v26 = vmul.f32 0.0078125, %v2933_v34 }
 0xdd5   : > { %v2956_v33 = vadd.f32 1e-05, %v2948_v26 }
 0xdd6   : > { %v2939_v41 = vpop.xlane.xlu1 %2938 }
 0xdd7   : > { %v2951_v9 = vmul.f32 0.0078125, %v2939_v41  ;;  %3865 = vrsqrt.f32 %v2956_v33 }
 0xdd8   : > { %3867 = vrsqrt.f32 %v2958_v30 }
 0xdd9   : > { %v2959_v39 = vadd.f32 1e-05, %v2951_v9 }
 0xdda   : > { %v2935_v18 = vpop.xlane.xlu1 %2934 }
 0xddb   : > { %3869 = vrsqrt.f32 %v2959_v39  ;;  %v2949_v48 = vmul.f32 0.0078125, %v2935_v18 }
 0xddd   : > { %v2957_v45 = vadd.f32 1e-05, %v2949_v48 }
 0xddf   : > { %3871 = vrsqrt.f32 %v2957_v45 }
 0xde1   : > { %v3866_v22 = vpop.eup %3865 }
 0xde2   : > { %v3868_v23 = vpop.eup %3867  ;;  %v2972_v57 = vmul.f32 %v3866_v22, %v2916_v31 }
 0xde3   : > { %v2974_v1 = vmul.f32 %v3868_v23, %v2918_v42 }
 0xde4   : > { %v2986_v27 = vmul.f32 %v3219_v54, %v2972_v57 }
 0xde5   : > { %v3870_v19 = vpop.eup %3869  ;;  %v2988_v49 = vmul.f32 %v3219_v54, %v2974_v1 }
 0xde6   : > { %v2975_v24 = vmul.f32 %v3870_v19, %v2919_v5  ;;  %v3000_v4 = vadd.f32 %v3220_v62, %v2986_v27 }
 0xde7   : > { %v3002_v2 = vadd.f32 %v3220_v62, %v2988_v49 }
 0xde8   : > { %v2989_v13 = vmul.f32 %v3219_v54, %v2975_v24 }
 0xde9   : > { %v3872_v63 = vpop.eup %3871 }
 0xdea   : > { %v2973_v43 = vmul.f32 %v3872_v63, %v2917_v52  ;;  %v3003_v60 = vadd.f32 %v3220_v62, %v2989_v13 }
 0xdec   : > { %v2987_v32 = vmul.f32 %v3219_v54, %v2973_v43  ;;  %v3249_v37 = vpack.c.bf16 %v3003_v60, %v3002_v2 }
 0xdee   : > { %v3001_v21 = vadd.f32 %v3220_v62, %v2987_v32  ;;  %3261 = vst [vmem:[%s4829_s28 + $0x8] sm:$0xff] %v3249_v37  }
 0xdf0   : > { %v3244_v28 = vpack.c.bf16 %v3001_v21, %v3000_v4 }
 0xdf2   : > { %3245 = vst [vmem:[%s4829_s28] sm:$0xff] %v3244_v28  }
 0xe0b   : > { %v2941_v10 = vpop.xlane.xlu0 %2940 }
 0xe0c   : > { %v2952_v40 = vmul.f32 0.0078125, %v2941_v10 }
 0xe0d   : > { %v2943_v42 = vpop.xlane.xlu1 %2942 }
 0xe0e   : > { %v2960_v20 = vadd.f32 1e-05, %v2952_v40  ;;  %v2953_v51 = vmul.f32 0.0078125, %v2943_v42 }
 0xe0f   : > { %v2945_v53 = vpop.xlane.xlu0 %2944 }
 0xe10   : > { %3873 = vrsqrt.f32 %v2960_v20  ;;  %v2961_v44 = vadd.f32 1e-05, %v2953_v51  ;;  %v2954_v31 = vmul.f32 0.0078125, %v2945_v53 }
 0xe11   : > { %v2947_v12 = vpop.xlane.xlu1 %2946 }
 0xe12   : > { %3875 = vrsqrt.f32 %v2961_v44  ;;  %v2962_v11 = vadd.f32 1e-05, %v2954_v31  ;;  %v2955_v17 = vmul.f32 0.0078125, %v2947_v12 }
 0xe14   : > { %3877 = vrsqrt.f32 %v2962_v11  ;;  %v2963_v50 = vadd.f32 1e-05, %v2955_v17 }
 0xe16   : > { %3879 = vrsqrt.f32 %v2963_v50 }
 0xe1a   : > { %v3874_v5 = vpop.eup %3873 }
 0xe1b   : > { %v2976_v52 = vmul.f32 %v3874_v5, %v4809_v55 }
 0xe1c   : > { %v3876_v35 = vpop.eup %3875 }
 0xe1d   : > { %v2990_v36 = vmul.f32 %v3219_v54, %v2976_v52  ;;  %v2977_v47 = vmul.f32 %v3876_v35, %v4811_v6 }
 0xe1e   : > { %v3878_v56 = vpop.eup %3877 }
 0xe1f   : > { %v2991_v58 = vmul.f32 %v3219_v54, %v2977_v47  ;;  %v2978_v8 = vmul.f32 %v3878_v56, %v4815_v14  ;;  %v3004_v61 = vadd.f32 %v3220_v62, %v2990_v36 }
 0xe20   : > { %v3880_v46 = vpop.eup %3879 }
 0xe21   : > { %v3005_v3 = vadd.f32 %v3220_v62, %v2991_v58  ;;  %v2992_v7 = vmul.f32 %v3219_v54, %v2978_v8  ;;  %v2979_v15 = vmul.f32 %v3880_v46, %v4819_v38 }
 0xe23   : > { %v3254_v16 = vpack.c.bf16 %v3005_v3, %v3004_v61  ;;  %v2993_v25 = vmul.f32 %v3219_v54, %v2979_v15  ;;  %v3006_v59 = vadd.f32 %v3220_v62, %v2992_v7 }
 0xe25   : > { %3262 = vst [vmem:[%s4829_s28 + $0x10] sm:$0xff] %v3254_v16   ;;  %v3007_v55 = vadd.f32 %v3220_v62, %v2993_v25 }
 0xe27   : > { %v3259_v0 = vpack.c.bf16 %v3007_v55, %v3006_v59 }
 0xe29   : > { %3263 = vst [vmem:[%s4829_s28 + $0x18] sm:$0xff] %v3259_v0  }
 0xe2a PF: > { %s19_s24 = sadd.s32 1, %s3987_s24  }
 0xe2b   : > { %p16_p8 = scmp.ge.s32.totalorder %s19_s24, 4  }
 0xe2d   :  { %18 = sbr.rel (!%p16_p8) target bundleno = 2 (0x2), region = 91 }
 0xe34   :  { %3072 = vsyncpa [#allocation3], 1 }
 0xe35   :  { %3074 = vsyncpa [#allocation3 + $0x1], 1 }
 0xe36   :  { %3075 = vsyncpa [#allocation5], 1 }

// kernel: mesh_decoder_layer_forward.4
= control target key start
LH: loop header
LB: loop body
LE: loop exit
PB: predicated region body
PF: predicated region fallthrough
CT: control target
= control target key end

     0   :  { %s4296_s13 = smov 0   ;;  %s5224_s0 = inlined_call_operand.vmem [shape: bf16[8,16,128], index: 0, kind: input, shape index: {}]   ;;  %s5225_s1 = inlined_call_operand.vmem [shape: f32[8,32,128], index: 1, kind: input, shape index: {}]   ;;  %s5226_s2 = inlined_call_operand.vmem [shape: bf16[128,128], index: 2, kind: input, shape index: {}]   ;;  %s5227_s3 = inlined_call_operand.vmem [shape: f32[1,128], index: 3, kind: input, shape index: {}]   ;;  %s5228_s4 = inlined_call_operand.vmem [shape: bf16[128,256], index: 4, kind: input, shape index: {}]   ;;  %s5229_s5 = inlined_call_operand.vmem [shape: f32[1,256], index: 5, kind: input, shape index: {}]   ;;  %s5230_s6 = inlined_call_operand.vmem [shape: bf16[128,128], index: 6, kind: input, shape index: {}]   ;;  %s5231_s7 = inlined_call_operand.vmem [shape: f32[1,128], index: 7, kind: input, shape index: {}]   ;;  %s5232_s8 = inlined_call_operand.vmem [shape: f32[1,128], index: 8, kind: input, shape index: {}]   ;;  %s5233_s9 = inlined_call_operand.vmem [shape: f32[1,128], index: 9, kind: input, shape index: {}]   ;;  %s5234_s10 = inlined_call_operand.vmem [shape: bf16[8,16,128], index: 10, kind: output, shape index: {}]  }
   0x1 LB: > { %s3403_s14 = sadd.s32 4294967295, %s4233_s13   ;;  %p3407_p0 = scmp.ge.s32.totalorder %s4233_s13, 1  ;;  %s4233_s13 = sphi %s4296_s13, %s20_s13  }
   0x2   : > { %p326_p1 = scmp.lt.s32.totalorder %s4233_s13, 3 }
   0x4   : > { %p327_p2 = pnand %p3407_p0, %p326_p1 }
   0x5   : > { %v4031_v0 = vld [vmem:[%s5228_s4 + $0x4] ss:$8 sps:$4 sm:$0xff] (!%p327_p2)   ;;  %v4033_v1 = vld [vmem:[%s5228_s4] ss:$8 sps:$4 sm:$0xff] (!%p327_p2)   ;;  %v4235_v2 = vmov (!%p327_p2), 0   ;;  %s3408_s23 = sshll.u32 (!%p327_p2), %s3403_s14, 2  ;;  %v612_v54 = vlaneseq (!%p327_p2) }
   0x6   : > { %330 = sbr.rel (%p327_p2) target bundleno = 3620 (0xe24), region = 60  ;;  %734 = vmatprep.mubr.bf16.mxu1 (!%p327_p2), %v4235_v2  ;;  %702 = vmatprep.subr.bf16.mxu1 (!%p327_p2), %v4031_v0  ;;  %v4034_v3 = vld [vmem:[%s5228_s4 + $0x14] ss:$8 sps:$4 sm:$0xff] (!%p327_p2)   ;;  %v4036_v4 = vld [vmem:[%s5228_s4 + $0x10] ss:$8 sps:$4 sm:$0xff] (!%p327_p2)   ;;  %v4042_v6 = vld [vmem:[%s5226_s2] sm:$0xff] (!%p327_p2)  }
   0x7   : > { %703 = vmatpush1.bf16.msra.mxu1 (!%p327_p2), %v4033_v1  ;;  %v4037_v5 = vld [vmem:[%s5228_s4 + $0x24] ss:$8 sps:$4 sm:$0xff] (!%p327_p2)   ;;  %p373_p3 = scmp.lt.s32.totalorder (!%p327_p2), %s3408_s23, 7  ;;  %v4039_v7 = vld [vmem:[%s5228_s4 + $0x20] ss:$8 sps:$4 sm:$0xff] (!%p327_p2)   ;;  %3653 = vmatprep.subr.bf16.mxu0 (!%p327_p2), %v4042_v6  ;;  %v4050_v10 = vld [vmem:[%s5226_s2 + $0x10] sm:$0xff] (!%p327_p2)  }
   0x8   : > { %704 = vmatprep.subr.bf16.mxu1 (!%p327_p2), %v4034_v3  ;;  %v4040_v8 = vld [vmem:[%s5228_s4 + $0x34] ss:$8 sps:$4 sm:$0xff] (!%p327_p2)   ;;  %3654 = vmatpush3.bf16.msra.mxu0 (!%p327_p2), %v4042_v6  ;;  %v4046_v9 = vld [vmem:[%s5226_s2 + $0x8] sm:$0xff] (!%p327_p2)   ;;  %v4043_v11 = vld [vmem:[%s5228_s4 + $0x30] ss:$8 sps:$4 sm:$0xff] (!%p327_p2)   ;;  %v4236_v53 = vmov (!%p327_p2), 0.0  }
   0x9   : > { %3655 = vmatprep.subr.bf16.mxu0 (!%p327_p2), %v4046_v9  ;;  %v4044_v12 = vld [vmem:[%s5228_s4 + $0x44] ss:$8 sps:$4 sm:$0xff] (!%p327_p2)   ;;  %v4054_v13 = vld [vmem:[%s5226_s2 + $0x18] sm:$0xff] (!%p327_p2)   ;;  %v4047_v14 = vld [vmem:[%s5228_s4 + $0x40] ss:$8 sps:$4 sm:$0xff] (!%p327_p2)   ;;  %vm4237_vm0 = vmmov (!%p327_p2), 0  }
   0xa   : > { %v4048_v15 = vld [vmem:[%s5228_s4 + $0x54] ss:$8 sps:$4 sm:$0xff] (!%p327_p2)   ;;  %v4058_v16 = vld [vmem:[%s5226_s2 + $0x20] sm:$0xff] (!%p327_p2)   ;;  %v4051_v17 = vld [vmem:[%s5228_s4 + $0x50] ss:$8 sps:$4 sm:$0xff] (!%p327_p2)   ;;  %v613_v55 = vshrl.u32 (!%p327_p2), %v612_v54, 7 }
   0xb   : > { %705 = vmatpush1.bf16.msra.mxu1 (!%p327_p2), %v4036_v4  ;;  %v4052_v18 = vld [vmem:[%s5228_s4 + $0x64] ss:$8 sps:$4 sm:$0xff] (!%p327_p2)   ;;  %v4055_v21 = vld [vmem:[%s5228_s4 + $0x60] ss:$8 sps:$4 sm:$0xff] (!%p327_p2)   ;;  %v4056_v22 = vld [vmem:[%s5228_s4 + $0x74] ss:$8 sps:$4 sm:$0xff] (!%p327_p2)  }
   0xc   : > { %706 = vmatprep.subr.bf16.mxu1 (!%p327_p2), %v4037_v5  ;;  %3656 = vmatpush3.bf16.msra.mxu0 (!%p327_p2), %v4046_v9  ;;  %v4060_v20 = vld [vmem:[%s5226_s2 + $0x28] sm:$0xff] (!%p327_p2)   ;;  %v4059_v23 = vld [vmem:[%s5228_s4 + $0x70] ss:$8 sps:$4 sm:$0xff] (!%p327_p2)   ;;  %v614_v56 = vsub.s32 (!%p327_p2), 0, %v613_v55  ;;  %v610_v57 = vld [vmem:[%s5229_s5] sm:$0x3] (!%p327_p2) }
   0xd   : > { %s5236_s23 = smov (!%p373_p3, %s3408_s23), 7  ;;  %3657 = vmatprep.subr.bf16.mxu0 %v4050_v10  ;;  %v4061_v26 = vld [vmem:[%s5226_s2 + $0x30] sm:$0xff]   ;;  %v4062_v27 = vld [vmem:[%s5226_s2 + $0x38] sm:$0xff]   ;;  %v618_v58 = vsub.s32 1, %v613_v55  ;;  %v3417_v3 = vld [vmem:[%s5227_s3] ss:$0 sm:$0xff] }
   0xe   : > { %s3499_s24 = sshll.u32 %s5236_s23, 3  ;;  %s3500_s15 = sshll.u32 %s5236_s23, 5  ;;  %v4429_v59 = vrot.slane %v610_v57, %v614_v56  ;;  %vm835_vm1 = vcmask 261120   ;;  %vm3008_vm2 = vcmask 523264   ;;  %vm3017_vm3 = vcmask 785408  }
   0xf   : > { %707 = vmatpush1.bf16.msra.mxu1 %v4039_v7  ;;  %s4361_s14 = scalar_lea.vmem %s5224_s0, %s3499_s24  ;;  %s4377_s26 = scalar_lea.vmem %s5225_s1, %s3500_s15  ;;  %v4431_v61 = vrot.slane %v610_v57, %v618_v58 }
  0x10   : > { %708 = vmatprep.subr.bf16.mxu1 %v4040_v8  ;;  %3658 = vmatpush3.bf16.msra.mxu0 %v4050_v10  ;;  %v394_v19 = vld [vmem:[%s4361_s14] sm:$0xff]   ;;  %v411_v25 = vld [vmem:[%s4377_s26 + $0x8] sm:$0xff]  ;;  %v398_v30 = vld [vmem:[%s4361_s14 + $0x10] sm:$0xff]   ;;  %s4238_s25 = smov 96   ;;  %s4240_s27 = smov 32  }
  0x11   : > { %3659 = vmatprep.subr.bf16.mxu0 %v4054_v13  ;;  %3669 = vmatprep.mubr.bf16.mxu0 %v394_v19  ;;  %v410_v24 = vld [vmem:[%s4377_s26] sm:$0xff]  ;;  %v396_v29 = vld [vmem:[%s4361_s14 + $0x8] sm:$0xff]   ;;  %v412_v31 = vld [vmem:[%s4377_s26 + $0x10] sm:$0xff]  ;;  %s391_s17 = scalar_lea.vmem %s5234_s10, %s3499_s24 }
  0x12   : > { %v586_v28 = vpack.c.bf16 %v411_v25, %v410_v24  ;;  %v413_v32 = vld [vmem:[%s4377_s26 + $0x18] sm:$0xff]  ;;  %v414_v35 = vld [vmem:[%s4377_s26 + $0x20] sm:$0xff]  ;;  %v415_v36 = vld [vmem:[%s4377_s26 + $0x28] sm:$0xff] }
  0x13   : > { %709 = vmatpush1.bf16.msra.mxu1 %v4043_v11  ;;  %v587_v33 = vpack.c.bf16 %v413_v32, %v412_v31  ;;  %v400_v34 = vld [vmem:[%s4361_s14 + $0x18] sm:$0xff]   ;;  %v588_v37 = vpack.c.bf16 %v415_v36, %v414_v35  ;;  %v416_v38 = vld [vmem:[%s4377_s26 + $0x30] sm:$0xff]  ;;  %v418_v41 = vld [vmem:[%s4377_s26 + $0x40] sm:$0xff] }
  0x14   : > { %710 = vmatprep.subr.bf16.mxu1 %v4044_v12  ;;  %3660 = vmatpush3.bf16.msra.mxu0 %v4054_v13  ;;  %v417_v39 = vld [vmem:[%s4377_s26 + $0x38] sm:$0xff]  ;;  %v419_v42 = vld [vmem:[%s4377_s26 + $0x48] sm:$0xff]  ;;  %v420_v44 = vld [vmem:[%s4377_s26 + $0x50] sm:$0xff] }
  0x15   : > { %3661 = vmatprep.subr.bf16.mxu0 %v4058_v16  ;;  %v589_v40 = vpack.c.bf16 %v417_v39, %v416_v38  ;;  %v590_v43 = vpack.c.bf16 %v419_v42, %v418_v41  ;;  %v421_v45 = vld [vmem:[%s4377_s26 + $0x58] sm:$0xff]  ;;  %v422_v47 = vld [vmem:[%s4377_s26 + $0x60] sm:$0xff]  ;;  %v423_v48 = vld [vmem:[%s4377_s26 + $0x68] sm:$0xff] }
  0x16   : > { %v591_v46 = vpack.c.bf16 %v421_v45, %v420_v44  ;;  %v592_v49 = vpack.c.bf16 %v423_v48, %v422_v47  ;;  %v424_v50 = vld [vmem:[%s4377_s26 + $0x70] sm:$0xff]  ;;  %v425_v51 = vld [vmem:[%s4377_s26 + $0x78] sm:$0xff]  ;;  %s4239_s26 = smov 64  }
  0x17   : > { %711 = vmatpush1.bf16.msra.mxu1 %v4047_v14  ;;  %v593_v52 = vpack.c.bf16 %v425_v51, %v424_v50 }
  0x18   : > { %712 = vmatprep.subr.bf16.mxu1 %v4048_v15  ;;  %3662 = vmatpush3.bf16.msra.mxu0 %v4058_v16 }
  0x19   : > { %3663 = vmatprep.subr.bf16.mxu0 %v4060_v20 }
  0x1b   : > { %713 = vmatpush1.bf16.msra.mxu1 %v4051_v17 }
  0x1c   : > { %714 = vmatprep.subr.bf16.mxu1 %v4052_v18  ;;  %3664 = vmatpush3.bf16.msra.mxu0 %v4060_v20 }
  0x1d   : > { %3665 = vmatprep.subr.bf16.mxu0 %v4061_v26 }
  0x1f   : > { %715 = vmatpush1.bf16.msra.mxu1 %v4055_v21 }
  0x20   : > { %716 = vmatprep.subr.bf16.mxu1 %v4056_v22  ;;  %3666 = vmatpush3.bf16.msra.mxu0 %v4061_v26 }
  0x21   : > { %3667 = vmatprep.subr.bf16.mxu0 %v4062_v27 }
  0x23   : > { %717 = vmatpush1.bf16.msra.mxu1 %v4059_v23 }
  0x24   : > { %3668 = vmatpush3.bf16.msra.mxu0 %v4062_v27  ;;  %3709 = vmatprep.subr.bf16.mxu1 %v4236_v53 }
  0x25   : > { %3677 = vmatprep.subr.bf16.mxu0 %v4236_v53 }
  0x26   : > { %735 = vmatmul.mubr.bf16.vlgmr.msra.gmra.mrb[0].mxu1 %v586_v28 }
  0x27   : > { %744 = vmatprep.mubr.bf16.mxu1 %v4235_v2  ;;  %3670 = vmatmul.mubr.bf16.vlgmr.msra.gmra.mrb[0].mxu0 %v396_v29 }
  0x28   : > { %3673 = vmatprep.mubr.bf16.mxu0 %v398_v30 }
  0x2e   : > { %745 = vmatmul.mubr.bf16.gmra.mrb[4].mxu1 %v587_v33 }
  0x2f   : > { %754 = vmatprep.mubr.bf16.mxu1 %v4235_v2  ;;  %3674 = vmatmul.mubr.bf16.gmra.mrb[4].mxu0 %v400_v34 }
  0x30   : > { %3681 = vmatprep.mubr.msk.bf16.mxu0 %vm4237_vm0, %v4236_v53 }
  0x36   : > { %755 = vmatmul.mubr.bf16.gmra.mrb[8].mxu1 %v588_v37 }
  0x37   : > { %764 = vmatprep.mubr.bf16.mxu1 %v4235_v2 }
  0x3e   : > { %765 = vmatmul.mubr.bf16.gmra.mrb[12].mxu1 %v589_v40 }
  0x3f   : > { %774 = vmatprep.mubr.bf16.mxu1 %v4235_v2 }
  0x46   : > { %775 = vmatmul.mubr.bf16.gmra.mrb[16].mxu1 %v590_v43 }
  0x47   : > { %784 = vmatprep.mubr.bf16.mxu1 %v4235_v2 }
  0x4e   : > { %785 = vmatmul.mubr.bf16.gmra.mrb[20].mxu1 %v591_v46 }
  0x4f   : > { %794 = vmatprep.mubr.bf16.mxu1 %v4235_v2 }
  0x56   : > { %795 = vmatmul.mubr.bf16.gmra.mrb[24].mxu1 %v592_v49 }
  0x57   : > { %804 = vmatprep.mubr.bf16.mxu1 %v4235_v2 }
  0x5e   : > { %805 = vmatmul.mubr.bf16.gmra.mrb[28].mxu1 %v593_v52 }
  0x5f   : > { %3713 = vmatprep.mubr.msk.bf16.mxu1 %vm4237_vm0, %v4236_v53 }
  0xf9   : > { %v736_v60 = vpop.f32.mrb[0].mxu1 }
  0xfa   : > { %v738_v62 = vpop.f32.mrb[1].mxu1  ;;  %v737_v0 = vadd.f32 %v736_v60, %v4429_v59  ;;  %v3671_v7 = vpop.f32.mrb[0].mxu0 }
  0xfb   : > { %v740_v63 = vpop.f32.mrb[2].mxu1  ;;  %v739_v4 = vadd.f32 %v738_v62, %v4431_v61  ;;  %v564_v9 = vadd.f32 %v3671_v7, %v3417_v3  ;;  %v555_v10 = vpop.f32.mrb[1].mxu0 }
  0xfc   : > { %v741_v1 = vadd.f32 %v740_v63, %v4429_v59  ;;  %v742_v2 = vpop.f32.mrb[3].mxu1  ;;  %v556_v12 = vadd.f32 %v3417_v3, %v555_v10  ;;  %v3672_v13 = vpop.f32.mrb[2].mxu0 }
  0xfd   : > { %v743_v5 = vadd.f32 %v742_v2, %v4431_v61  ;;  %v567_v15 = vadd.f32 %v3672_v13, %v3417_v3  ;;  %v558_v16 = vpop.f32.mrb[3].mxu0 }
  0xfe   : > { %v4440_v6 = vpack.c.bf16 %v741_v1, %v737_v0  ;;  %v559_v18 = vadd.f32 %v3417_v3, %v558_v16 }
  0xff   : > { %v4442_v8 = vpack.c.bf16 %v743_v5, %v739_v4  ;;  %v4449_v20 = vpack.c.bf16 %v567_v15, %v564_v9 }
 0x100   : > { %v840_v11 = vsel %vm835_vm1, %v4440_v6, 0  ;;  %v4453_v24 = vpack.c.bf16 %v559_v18, %v556_v12 }
 0x101   : > { %v746_v14 = vpop.f32.mrb[4].mxu1  ;;  %3678 = vmatpush3.bf16.xpose.msra.mxu0 %v840_v11  ;;  %3710 = vmatpush3.bf16.msra.mxu1 %v4442_v8 }
 0x102   : > { %v748_v17 = vpop.f32.mrb[5].mxu1  ;;  %3679 = vmatprep.subr.bf16.mxu0 %v4236_v53  ;;  %3711 = vmatprep.subr.bf16.mxu1 %v4236_v53  ;;  %v747_v21 = vadd.f32 %v746_v14, %v4429_v59  ;;  %v3675_v28 = vpop.f32.mrb[4].mxu0 }
 0x103   : > { %v750_v19 = vpop.f32.mrb[6].mxu1  ;;  %v749_v25 = vadd.f32 %v748_v17, %v4431_v61  ;;  %v580_v30 = vadd.f32 %v3675_v28, %v3417_v3  ;;  %v571_v31 = vpop.f32.mrb[5].mxu0 }
 0x104   : > { %v751_v22 = vadd.f32 %v750_v19, %v4429_v59  ;;  %v752_v23 = vpop.f32.mrb[7].mxu1  ;;  %v572_v33 = vadd.f32 %v3417_v3, %v571_v31  ;;  %v3676_v34 = vpop.f32.mrb[6].mxu0 }
 0x105   : > { %v753_v26 = vadd.f32 %v752_v23, %v4431_v61  ;;  %v583_v36 = vadd.f32 %v3676_v34, %v3417_v3  ;;  %v574_v37 = vpop.f32.mrb[7].mxu0 }
 0x106   : > { %v4457_v27 = vpack.c.bf16 %v751_v22, %v747_v21  ;;  %v575_v39 = vadd.f32 %v3417_v3, %v574_v37 }
 0x107   : > { %v4459_v29 = vpack.c.bf16 %v753_v26, %v749_v25  ;;  %v4467_v42 = vpack.c.bf16 %v583_v36, %v580_v30 }
 0x108   : > { %v843_v32 = vsel %vm835_vm1, %v4457_v27, 0  ;;  %v4471_v46 = vpack.c.bf16 %v575_v39, %v572_v33 }
 0x109   : > { %v756_v35 = vpop.f32.mrb[8].mxu1  ;;  %3680 = vmatpush3.bf16.xpose.msra.mxu0 %v843_v32  ;;  %3712 = vmatpush3.bf16.msra.mxu1 %v4459_v29 }
 0x10a   : > { %v758_v38 = vpop.f32.mrb[9].mxu1  ;;  %3685 = vmatprep.subr.bf16.mxu0 %v4236_v53  ;;  %3725 = vmatprep.subr.bf16.mxu1 %v4236_v53  ;;  %v757_v43 = vadd.f32 %v756_v35, %v4429_v59 }
 0x10b   : > { %v759_v40 = vadd.f32 %v758_v38, %v4431_v61  ;;  %v760_v41 = vpop.f32.mrb[10].mxu1 }
 0x10c   : > { %v761_v44 = vadd.f32 %v760_v41, %v4429_v59  ;;  %v762_v45 = vpop.f32.mrb[11].mxu1 }
 0x10d   : > { %v763_v47 = vadd.f32 %v762_v45, %v4431_v61 }
 0x10e   : > { %v4474_v48 = vpack.c.bf16 %v761_v44, %v757_v43 }
 0x10f   : > { %v4476_v49 = vpack.c.bf16 %v763_v47, %v759_v40 }
 0x110   : > { %3682 = vmatmul.mubr.msk.bf16.vlgmr.msra.gmra.mrb[8].mxu0 %vm835_vm1, %v4453_v24  ;;  %v890_v50 = vsel %vm835_vm1, %v4474_v48, 0 }
 0x111   : > { %v766_v51 = vpop.f32.mrb[12].mxu1  ;;  %3686 = vmatpush3.bf16.xpose.msra.mxu0 %v890_v50  ;;  %3689 = vmatprep.mubr.msk.bf16.mxu0 %vm4237_vm0, %v4236_v53 }
 0x112   : > { %v768_v52 = vpop.f32.mrb[13].mxu1  ;;  %3687 = vmatprep.subr.bf16.mxu0 %v4236_v53  ;;  %v767_v56 = vadd.f32 %v766_v51, %v4429_v59 }
 0x113   : > { %v769_v54 = vadd.f32 %v768_v52, %v4431_v61  ;;  %v770_v55 = vpop.f32.mrb[14].mxu1 }
 0x114   : > { %v771_v57 = vadd.f32 %v770_v55, %v4429_v59  ;;  %v772_v58 = vpop.f32.mrb[15].mxu1 }
 0x115   : > { %v773_v60 = vadd.f32 %v772_v58, %v4431_v61 }
 0x116   : > { %v4489_v62 = vpack.c.bf16 %v771_v57, %v767_v56 }
 0x117   : > { %v4491_v63 = vpack.c.bf16 %v773_v60, %v769_v54 }
 0x118   : > { %v893_v0 = vsel %vm835_vm1, %v4489_v62, 0 }
 0x119   : > { %v776_v1 = vpop.f32.mrb[16].mxu1  ;;  %3688 = vmatpush3.bf16.xpose.msra.mxu0 %v893_v0 }
 0x11a   : > { %v778_v2 = vpop.f32.mrb[17].mxu1  ;;  %3693 = vmatprep.subr.bf16.mxu0 %v4236_v53  ;;  %v777_v5 = vadd.f32 %v776_v1, %v4429_v59 }
 0x11b   : > { %v779_v3 = vadd.f32 %v778_v2, %v4431_v61  ;;  %v780_v4 = vpop.f32.mrb[18].mxu1 }
 0x11c   : > { %v781_v7 = vadd.f32 %v780_v4, %v4429_v59  ;;  %v782_v9 = vpop.f32.mrb[19].mxu1 }
 0x11d   : > { %v783_v10 = vadd.f32 %v782_v9, %v4431_v61 }
 0x11e   : > { %v4500_v11 = vpack.c.bf16 %v781_v7, %v777_v5 }
 0x11f   : > { %v4502_v12 = vpack.c.bf16 %v783_v10, %v779_v3 }
 0x120   : > { %3690 = vmatmul.mubr.msk.bf16.vlgmr.msra.gmra.mrb[12].mxu0 %vm835_vm1, %v4449_v20  ;;  %v940_v13 = vsel %vm835_vm1, %v4500_v11, 0 }
 0x121   : > { %v786_v14 = vpop.f32.mrb[20].mxu1  ;;  %3694 = vmatpush3.bf16.xpose.msra.mxu0 %v940_v13  ;;  %3697 = vmatprep.mubr.msk.bf16.mxu0 %vm4237_vm0, %v4236_v53 }
 0x122   : > { %v788_v15 = vpop.f32.mrb[21].mxu1  ;;  %3695 = vmatprep.subr.bf16.mxu0 %v4236_v53  ;;  %v787_v18 = vadd.f32 %v786_v14, %v4429_v59 }
 0x123   : > { %v789_v16 = vadd.f32 %v788_v15, %v4431_v61  ;;  %v790_v17 = vpop.f32.mrb[22].mxu1 }
 0x124   : > { %v791_v19 = vadd.f32 %v790_v17, %v4429_v59  ;;  %v792_v21 = vpop.f32.mrb[23].mxu1 }
 0x125   : > { %v793_v22 = vadd.f32 %v792_v21, %v4431_v61 }
 0x126   : > { %v4515_v23 = vpack.c.bf16 %v791_v19, %v787_v18 }
 0x127   : > { %v4517_v25 = vpack.c.bf16 %v793_v22, %v789_v16 }
 0x128   : > { %v943_v26 = vsel %vm835_vm1, %v4515_v23, 0 }
 0x129   : > { %v796_v28 = vpop.f32.mrb[24].mxu1  ;;  %3696 = vmatpush3.bf16.xpose.msra.mxu0 %v943_v26 }
 0x12a   : > { %v798_v30 = vpop.f32.mrb[25].mxu1  ;;  %3701 = vmatprep.subr.bf16.mxu0 %v4236_v53  ;;  %v797_v33 = vadd.f32 %v796_v28, %v4429_v59 }
 0x12b   : > { %v799_v31 = vadd.f32 %v798_v30, %v4431_v61  ;;  %v800_v32 = vpop.f32.mrb[26].mxu1 }
 0x12c   : > { %v801_v34 = vadd.f32 %v800_v32, %v4429_v59  ;;  %v802_v35 = vpop.f32.mrb[27].mxu1 }
 0x12d   : > { %v803_v36 = vadd.f32 %v802_v35, %v4431_v61 }
 0x12e   : > { %v4526_v37 = vpack.c.bf16 %v801_v34, %v797_v33 }
 0x12f   : > { %v4528_v38 = vpack.c.bf16 %v803_v36, %v799_v31 }
 0x130   : > { %3698 = vmatmul.mubr.msk.bf16.vlgmr.msra.gmra.mrb[16].mxu0 %vm835_vm1, %v4471_v46  ;;  %v990_v39 = vsel %vm835_vm1, %v4526_v37, 0 }
 0x131   : > { %v806_v40 = vpop.f32.mrb[28].mxu1  ;;  %3702 = vmatpush3.bf16.xpose.msra.mxu0 %v990_v39  ;;  %3705 = vmatprep.mubr.msk.bf16.mxu0 %vm4237_vm0, %v4236_v53 }
 0x132   : > { %v808_v41 = vpop.f32.mrb[29].mxu1  ;;  %3703 = vmatprep.subr.bf16.mxu0 %v4236_v53  ;;  %v807_v45 = vadd.f32 %v806_v40, %v4429_v59 }
 0x133   : > { %v809_v43 = vadd.f32 %v808_v41, %v4431_v61  ;;  %v810_v44 = vpop.f32.mrb[30].mxu1 }
 0x134   : > { %v811_v47 = vadd.f32 %v810_v44, %v4429_v59  ;;  %v812_v50 = vpop.f32.mrb[31].mxu1 }
 0x135   : > { %v813_v51 = vadd.f32 %v812_v50, %v4431_v61 }
 0x136   : > { %v4541_v52 = vpack.c.bf16 %v811_v47, %v807_v45 }
 0x137   : > { %v4543_v54 = vpack.c.bf16 %v813_v51, %v809_v43 }
 0x138   : > { %v993_v55 = vsel %vm835_vm1, %v4541_v52, 0 }
 0x139   : > { %3704 = vmatpush3.bf16.xpose.msra.mxu0 %v993_v55 }
 0x13a   : > { %3717 = vmatprep.subr.bf16.mxu0 %v4236_v53 }
 0x140   : > { %3706 = vmatmul.mubr.msk.bf16.vlgmr.msra.gmra.mrb[20].mxu0 %vm835_vm1, %v4467_v42 }
 0x141   : > { %3718 = vmatpush3.bf16.msra.mxu0 %v4476_v49  ;;  %3721 = vmatprep.mubr.msk.bf16.mxu0 %vm4237_vm0, %v4236_v53 }
 0x142   : > { %3719 = vmatprep.subr.bf16.mxu0 %v4236_v53 }
 0x145   : > { %3720 = vmatpush3.bf16.msra.mxu0 %v4491_v63 }
 0x146   : > { %3733 = vmatprep.subr.bf16.mxu0 %v4236_v53 }
 0x1e3   : > { %v879_v59 = vpop.f32.mrb[8].mxu0 }
 0x1e4   : > { %v3683_v61 = vpop.f32.mrb[9].mxu0  ;;  %v1036_v5 = vmul.f32 0.17677669, %v879_v59 }
 0x1e5   : > { %v882_v56 = vpop.f32.mrb[10].mxu0 }
 0x1e6   : > { %v3684_v57 = vpop.f32.mrb[11].mxu0  ;;  %v1044_v9 = vsel %vm835_vm1, %v1036_v5, -inf  ;;  %v1037_v31 = vmul.f32 0.17677669, %v882_v56 }
 0x1e8   : > { %v1047_v34 = vsel %vm835_vm1, %v1037_v31, -inf }
 0x1f3   : > { %v929_v58 = vpop.f32.mrb[12].mxu0 }
 0x1f4   : > { %v1038_v60 = vmul.f32 0.17677669, %v929_v58  ;;  %v3691_v0 = vpop.f32.mrb[13].mxu0 }
 0x1f5   : > { %v932_v1 = vpop.f32.mrb[14].mxu0 }
 0x1f6   : > { %v1039_v2 = vmul.f32 0.17677669, %v932_v1  ;;  %v3692_v3 = vpop.f32.mrb[15].mxu0  ;;  %v1050_v4 = vsel %vm835_vm1, %v1038_v60, -inf }
 0x1f7   : > { %1051 = vmax.xlane.f32.xlu0 %v1050_v4 }
 0x1f8   : > { %v1053_v7 = vsel %vm835_vm1, %v1039_v2, -inf }
 0x1fb   : > { %1054 = vmax.xlane.f32.xlu0 %v1053_v7 }
 0x1ff   : > { %1045 = vmax.xlane.f32.xlu0 %v1044_v9 }
 0x203   : > { %v979_v10 = vpop.f32.mrb[16].mxu0 }
 0x204   : > { %v1040_v13 = vmul.f32 0.17677669, %v979_v10  ;;  %v3699_v14 = vpop.f32.mrb[17].mxu0 }
 0x205   : > { %v982_v15 = vpop.f32.mrb[18].mxu0 }
 0x206   : > { %v3700_v16 = vpop.f32.mrb[19].mxu0  ;;  %v1056_v17 = vsel %vm835_vm1, %v1040_v13, -inf  ;;  %v1041_v33 = vmul.f32 0.17677669, %v982_v15 }
 0x207   : > { %1057 = vmax.xlane.f32.xlu0 %v1056_v17 }
 0x208   : > { %v1059_v35 = vsel %vm835_vm1, %v1041_v33, -inf }
 0x213   : > { %v1029_v18 = vpop.f32.mrb[20].mxu0 }
 0x214   : > { %v1042_v19 = vmul.f32 0.17677669, %v1029_v18  ;;  %v3707_v21 = vpop.f32.mrb[21].mxu0 }
 0x215   : > { %v1032_v22 = vpop.f32.mrb[22].mxu0 }
 0x216   : > { %v1043_v26 = vmul.f32 0.17677669, %v1032_v22  ;;  %v3708_v28 = vpop.f32.mrb[23].mxu0  ;;  %v1062_v30 = vsel %vm835_vm1, %v1042_v19, -inf }
 0x217   : > { %1063 = vmax.xlane.f32.xlu1 %v1062_v30 }
 0x218   : > { %v1065_v32 = vsel %vm835_vm1, %v1043_v26, -inf }
 0x21b   : > { %1066 = vmax.xlane.f32.xlu1 %v1065_v32 }
 0x21f   : > { %1048 = vmax.xlane.f32.xlu1 %v1047_v34 }
 0x223   : > { %1060 = vmax.xlane.f32.xlu1 %v1059_v35 }
 0x284   : > { %v1052_v36 = vpop.xlane.xlu0 %1051 }
 0x285   : > { %v1070_v39 = vsub.f32 %v1038_v60, %v1052_v36 }
 0x287   : > { %v1080_v40 = vmul.f32 1.442695, %v1070_v39 }
 0x288   : > { %v1055_v41 = vpop.xlane.xlu0 %1054 }
 0x289   : > { %4079 = vpow2.f32 %v1080_v40  ;;  %v1071_v43 = vsub.f32 %v1039_v2, %v1055_v41 }
 0x28b   : > { %v1082_v44 = vmul.f32 1.442695, %v1071_v43 }
 0x28c   : > { %v1046_v45 = vpop.xlane.xlu0 %1045 }
 0x28d   : > { %4081 = vpow2.f32 %v1082_v44  ;;  %v1068_v47 = vsub.f32 %v1036_v5, %v1046_v45 }
 0x28f   : > { %v1076_v50 = vmul.f32 1.442695, %v1068_v47 }
 0x291   : > { %4083 = vpow2.f32 %v1076_v50 }
 0x293   : > { %v4564_v51 = vpop.eup %4079 }
 0x294   : > { %v1098_v55 = vsel %vm835_vm1, %v4564_v51, 0.0  ;;  %v1058_v1 = vpop.xlane.xlu0 %1057 }
 0x295   : > { %1099 = vadd.xlane.f32.xlu0 %v1098_v55  ;;  %v1072_v3 = vsub.f32 %v1040_v13, %v1058_v1 }
 0x297   : > { %v4568_v59 = vpop.eup %4081  ;;  %v1084_v7 = vmul.f32 1.442695, %v1072_v3 }
 0x298   : > { %v1101_v61 = vsel %vm835_vm1, %v4568_v59, 0.0 }
 0x299   : > { %1102 = vadd.xlane.f32.xlu1 %v1101_v61 }
 0x29b   : > { %v4572_v56 = vpop.eup %4083 }
 0x29c   : > { %v1092_v57 = vsel %vm835_vm1, %v4572_v56, 0.0 }
 0x29d   : > { %1093 = vadd.xlane.f32.xlu0 %v1092_v57 }
 0x2a4   : > { %v1064_v58 = vpop.xlane.xlu1 %1063 }
 0x2a5   : > { %v1074_v60 = vsub.f32 %v1042_v19, %v1064_v58 }
 0x2a7   : > { %v1088_v0 = vmul.f32 1.442695, %v1074_v60 }
 0x2a8   : > { %v1067_v2 = vpop.xlane.xlu1 %1066 }
 0x2a9   : > { %4085 = vpow2.f32 %v1088_v0  ;;  %v1075_v16 = vsub.f32 %v1043_v26, %v1067_v2 }
 0x2ab   : > { %v1090_v19 = vmul.f32 1.442695, %v1075_v16 }
 0x2ac   : > { %v1049_v4 = vpop.xlane.xlu1 %1048 }
 0x2ad   : > { %v1069_v5 = vsub.f32 %v1037_v31, %v1049_v4 }
 0x2af   : > { %v1078_v9 = vmul.f32 1.442695, %v1069_v5 }
 0x2b0   : > { %v1061_v10 = vpop.xlane.xlu1 %1060 }
 0x2b1   : > { %4087 = vpow2.f32 %v1078_v9  ;;  %v1073_v14 = vsub.f32 %v1041_v33, %v1061_v10 }
 0x2b2   : > { %4089 = vpow2.f32 %v1084_v7 }
 0x2b3   : > { %v4576_v15 = vpop.eup %4085  ;;  %v1086_v17 = vmul.f32 1.442695, %v1073_v14 }
 0x2b4   : > { %v1110_v18 = vsel %vm835_vm1, %v4576_v15, 0.0 }
 0x2b5   : > { %1111 = vadd.xlane.f32.xlu0 %v1110_v18  ;;  %4091 = vpow2.f32 %v1086_v17 }
 0x2b6   : > { %4093 = vpow2.f32 %v1090_v19 }
 0x2bb   : > { %v4088_v21 = vpop.eup %4087 }
 0x2bc   : > { %v1095_v13 = vsel %vm835_vm1, %v4088_v21, 0.0  ;;  %v4581_v22 = vpop.eup %4089 }
 0x2bd   : > { %1096 = vadd.xlane.f32.xlu1 %v1095_v13  ;;  %v1104_v28 = vsel %vm835_vm1, %v4581_v22, 0.0 }
 0x2bf   : > { %v4585_v30 = vpop.eup %4091 }
 0x2c0   : > { %v1107_v26 = vsel %vm835_vm1, %v4585_v30, 0.0  ;;  %v4589_v31 = vpop.eup %4093 }
 0x2c1   : > { %1105 = vadd.xlane.f32.xlu1 %v1104_v28  ;;  %v1113_v32 = vsel %vm835_vm1, %v4589_v31, 0.0 }
 0x2c5   : > { %1108 = vadd.xlane.f32.xlu1 %v1107_v26 }
 0x2c9   : > { %1114 = vadd.xlane.f32.xlu1 %v1113_v32 }
 0x2cb   : > { %1317 = vrot.lane.b32.xlu0 %v4440_v6, %s4238_s25 }
 0x2cf   : > { %1376 = vrot.lane.b32.xlu0 %v4474_v48, %s4238_s25 }
 0x2d3   : > { %1378 = vrot.lane.b32.xlu0 %v4489_v62, %s4238_s25 }
 0x2d7   : > { %1494 = vrot.lane.b32.xlu0 %v4526_v37, %s4238_s25 }
 0x2da   : > { %1319 = vrot.lane.b32.xlu1 %v4457_v27, %s4238_s25 }
 0x2db   : > { %1437 = vrot.lane.b32.xlu0 %v4515_v23, %s4238_s25 }
 0x2de   : > { %1313 = vrot.lane.b32.xlu1 %v4453_v24, %s4238_s25 }
 0x2df   : > { %1431 = vrot.lane.b32.xlu0 %v4471_v46, %s4238_s25 }
 0x2e2   : > { %1435 = vrot.lane.b32.xlu1 %v4500_v11, %s4238_s25 }
 0x2e3   : > { %1650 = vrot.lane.b32.xlu0 %v4442_v8, %s4238_s25 }
 0x2e6   : > { %1372 = vrot.lane.b32.xlu1 %v4449_v20, %s4238_s25 }
 0x2ea   : > { %1496 = vrot.lane.b32.xlu1 %v4541_v52, %s4238_s25 }
 0x2ee   : > { %1490 = vrot.lane.b32.xlu1 %v4467_v42, %s4238_s25 }
 0x2f2   : > { %1702 = vrot.lane.b32.xlu1 %v4476_v49, %s4238_s25 }
 0x2f6   : > { %1652 = vrot.lane.b32.xlu1 %v4459_v29, %s4238_s25 }
 0x2fa   : > { %1704 = vrot.lane.b32.xlu1 %v4491_v63, %s4238_s25 }
 0x322   : > { %v1100_v33 = vpop.xlane.xlu0 %1099 }
 0x323   : > { %4095 = vrcp.f32 %v1100_v33 }
 0x326   : > { %v1103_v34 = vpop.xlane.xlu1 %1102 }
 0x327   : > { %4097 = vrcp.f32 %v1103_v34 }
 0x32a   : > { %v1094_v43 = vpop.xlane.xlu0 %1093 }
 0x32b   : > { %4099 = vrcp.f32 %v1094_v43 }
 0x32d   : > { %v4096_v35 = vpop.eup %4095 }
 0x32e   : > { %v1126_v39 = vmul.f32 %v4096_v35, %v4564_v51 }
 0x331   : > { %v4098_v36 = vpop.eup %4097 }
 0x332   : > { %v1127_v40 = vmul.f32 %v4098_v36, %v4568_v59 }
 0x334   : > { %v1133_v41 = vpack.c.bf16 %v1127_v40, %v1126_v39 }
 0x335   : > { %v4100_v51 = vpop.eup %4099 }
 0x336   : > { %3722 = vmatmul.mubr.msk.bf16.vlgmr.msra.gmra.mrb[24].mxu0 %vm835_vm1, %v1133_v41  ;;  %v1124_v61 = vmul.f32 %v4100_v51, %v4572_v56 }
 0x337   : > { %3734 = vmatpush3.bf16.msra.mxu0 %v4528_v38  ;;  %3737 = vmatprep.mubr.msk.bf16.mxu0 %vm4237_vm0, %v4236_v53 }
 0x338   : > { %3735 = vmatprep.subr.bf16.mxu0 %v4236_v53 }
 0x33b   : > { %3736 = vmatpush3.bf16.msra.mxu0 %v4543_v54 }
 0x33c   : > { %3741 = vmatprep.subr.bf16.mxu0 %v4236_v53 }
 0x342   : > { %v1112_v45 = vpop.xlane.xlu0 %1111 }
 0x346   : > { %v1318_v55 = vpop.permute.xlu0 %1317 }
 0x347   : > { %v1325_v13 = vsel %vm835_vm1, %v1318_v55, 0 }
 0x34a   : > { %v1097_v44 = vpop.xlane.xlu1 %1096  ;;  %v1377_v0 = vpop.permute.xlu0 %1376 }
 0x34b   : > { %4101 = vrcp.f32 %v1097_v44  ;;  %v1384_v35 = vsel %vm835_vm1, %v1377_v0, 0 }
 0x34e   : > { %v1106_v47 = vpop.xlane.xlu1 %1105  ;;  %v1379_v9 = vpop.permute.xlu0 %1378 }
 0x34f   : > { %4103 = vrcp.f32 %v1106_v47  ;;  %v1387_v40 = vsel %vm835_vm1, %v1379_v9, 0 }
 0x352   : > { %v1109_v50 = vpop.xlane.xlu1 %1108 }
 0x353   : > { %4105 = vrcp.f32 %v1109_v50 }
 0x354   : > { %4107 = vrcp.f32 %v1112_v45 }
 0x355   : > { %v4102_v59 = vpop.eup %4101 }
 0x356   : > { %v1125_v57 = vmul.f32 %v4102_v59, %v4088_v21  ;;  %v1115_v58 = vpop.xlane.xlu1 %1114  ;;  %v1495_v21 = vpop.permute.xlu0 %1494 }
 0x357   : > { %4109 = vrcp.f32 %v1115_v58  ;;  %v1502_v41 = vsel %vm835_vm1, %v1495_v21, 0 }
 0x358   : > { %v1132_v60 = vpack.c.bf16 %v1125_v57, %v1124_v61 }
 0x359   : > { %v4104_v2 = vpop.eup %4103 }
 0x35a   : > { %3714 = vmatmul.mubr.msk.bf16.vlgmr.msra.gmra.mrb[32].mxu1 %vm835_vm1, %v1132_v60  ;;  %v1320_v1 = vpop.permute.xlu1 %1319  ;;  %v1128_v4 = vmul.f32 %v4104_v2, %v4581_v22 }
 0x35b   : > { %3726 = vmatpush3.bf16.msra.mxu1 %v4502_v12  ;;  %3729 = vmatprep.mubr.msk.bf16.mxu1 %vm4237_vm0, %v4236_v53  ;;  %v1328_v26 = vsel %vm835_vm1, %v1320_v1, 0 }
 0x35c   : > { %3727 = vmatprep.subr.bf16.mxu1 %v4236_v53 }
 0x35d   : > { %v4106_v3 = vpop.eup %4105 }
 0x35e   : > { %v1129_v56 = vmul.f32 %v4106_v3, %v4585_v30  ;;  %v1314_v5 = vpop.permute.xlu1 %1313  ;;  %v4108_v7 = vpop.eup %4107 }
 0x35f   : > { %3728 = vmatpush3.bf16.msra.mxu1 %v4517_v25  ;;  %v1130_v16 = vmul.f32 %v4108_v7, %v4576_v15  ;;  %v1438_v30 = vpop.permute.xlu0 %1437 }
 0x360   : > { %v1134_v10 = vpack.c.bf16 %v1129_v56, %v1128_v4  ;;  %3757 = vmatprep.subr.bf16.mxu1 %v4236_v53 }
 0x361   : > { %v4110_v14 = vpop.eup %4109 }
 0x362   : > { %v1131_v17 = vmul.f32 %v4110_v14, %v4589_v31  ;;  %3730 = vmatmul.mubr.msk.bf16.vlgmr.msra.gmra.mrb[36].mxu1 %vm835_vm1, %v1134_v10  ;;  %v1436_v18 = vpop.permute.xlu1 %1435  ;;  %v1446_v31 = vsel %vm835_vm1, %v1438_v30, 0 }
 0x363   : > { %3761 = vmatprep.mubr.msk.bf16.mxu1 %vm4237_vm0, %v4236_v53  ;;  %v1443_v28 = vsel %vm835_vm1, %v1436_v18, 0  ;;  %v1432_v33 = vpop.permute.xlu0 %1431 }
 0x364   : > { %v1135_v19 = vpack.c.bf16 %v1131_v17, %v1130_v16 }
 0x366   : > { %3738 = vmatmul.mubr.msk.bf16.vlgmr.msra.gmra.mrb[28].mxu0 %vm835_vm1, %v1135_v19  ;;  %v1373_v22 = vpop.permute.xlu1 %1372 }
 0x367   : > { %3742 = vmatpush3.bf16.xpose.msra.mxu0 %v1325_v13  ;;  %3745 = vmatprep.mubr.msk.bf16.mxu0 %vm4237_vm0, %v4236_v53  ;;  %v1651_v36 = vpop.permute.xlu0 %1650 }
 0x368   : > { %3758 = vmatpush3.bf16.xpose.msra.mxu1 %v1443_v28  ;;  %3743 = vmatprep.subr.bf16.mxu0 %v4236_v53 }
 0x369   : > { %3759 = vmatprep.subr.bf16.mxu1 %v4236_v53 }
 0x36a   : > { %v1497_v15 = vpop.permute.xlu1 %1496 }
 0x36b   : > { %v1505_v43 = vsel %vm835_vm1, %v1497_v15, 0 }
 0x36e   : > { %v1491_v32 = vpop.permute.xlu1 %1490 }
 0x36f   : > { %3744 = vmatpush3.bf16.xpose.msra.mxu0 %v1328_v26 }
 0x370   : > { %3760 = vmatpush3.bf16.xpose.msra.mxu1 %v1446_v31  ;;  %3749 = vmatprep.subr.bf16.mxu0 %v4236_v53 }
 0x371   : > { %3773 = vmatprep.subr.bf16.mxu1 %v4236_v53 }
 0x372   : > { %v1703_v34 = vpop.permute.xlu1 %1702 }
 0x376   : > { %3746 = vmatmul.mubr.msk.bf16.vlgmr.msra.gmra.mrb[32].mxu0 %vm835_vm1, %v1314_v5  ;;  %v1653_v39 = vpop.permute.xlu1 %1652 }
 0x377   : > { %3750 = vmatpush3.bf16.xpose.msra.mxu0 %v1384_v35  ;;  %3762 = vmatmul.mubr.msk.bf16.vlgmr.msra.gmra.mrb[40].mxu1 %vm835_vm1, %v1432_v33 }
 0x378   : > { %3774 = vmatpush3.bf16.msra.mxu1 %v1651_v36  ;;  %3751 = vmatprep.subr.bf16.mxu0 %v4236_v53 }
 0x379   : > { %3775 = vmatprep.subr.bf16.mxu1 %v4236_v53  ;;  %3753 = vmatprep.mubr.msk.bf16.mxu0 %vm4237_vm0, %v4236_v53 }
 0x37a   : > { %3777 = vmatprep.mubr.msk.bf16.mxu1 %vm4237_vm0, %v4236_v53  ;;  %v1705_v44 = vpop.permute.xlu1 %1704 }
 0x37c   : > { %3776 = vmatpush3.bf16.msra.mxu1 %v1653_v39 }
 0x37d   : > { %3789 = vmatprep.subr.bf16.mxu1 %v4236_v53 }
 0x37f   : > { %3752 = vmatpush3.bf16.xpose.msra.mxu0 %v1387_v40 }
 0x380   : > { %3765 = vmatprep.subr.bf16.mxu0 %v4236_v53 }
 0x386   : > { %3754 = vmatmul.mubr.msk.bf16.vlgmr.msra.gmra.mrb[36].mxu0 %vm835_vm1, %v1373_v22 }
 0x387   : > { %3766 = vmatpush3.bf16.xpose.msra.mxu0 %v1502_v41  ;;  %3769 = vmatprep.mubr.msk.bf16.mxu0 %vm4237_vm0, %v4236_v53 }
 0x388   : > { %3767 = vmatprep.subr.bf16.mxu0 %v4236_v53 }
 0x38f   : > { %3768 = vmatpush3.bf16.xpose.msra.mxu0 %v1505_v43 }
 0x390   : > { %3781 = vmatprep.subr.bf16.mxu0 %v4236_v53 }
 0x396   : > { %3770 = vmatmul.mubr.msk.bf16.vlgmr.msra.gmra.mrb[40].mxu0 %vm835_vm1, %v1491_v32 }
 0x397   : > { %3782 = vmatpush3.bf16.msra.mxu0 %v1703_v34  ;;  %3785 = vmatprep.mubr.msk.bf16.mxu0 %vm4237_vm0, %v4236_v53 }
 0x398   : > { %3783 = vmatprep.subr.bf16.mxu0 %v4236_v53 }
 0x39b   : > { %3784 = vmatpush3.bf16.msra.mxu0 %v1705_v44 }
 0x39c   : > { %3797 = vmatprep.subr.bf16.mxu0 %v4236_v53 }
 0x409   : > { %v4684_v45 = vpop.f32.mrb[24].mxu0 }
 0x40a   : > { %v3723_v47 = vpop.f32.mrb[25].mxu0 }
 0x40b   : > { %v4686_v50 = vpop.f32.mrb[26].mxu0 }
 0x40c   : > { %v3724_v51 = vpop.f32.mrb[27].mxu0 }
 0x42d   : > { %v4688_v55 = vpop.f32.mrb[32].mxu1 }
 0x42e   : > { %v3715_v59 = vpop.f32.mrb[33].mxu1 }
 0x42f   : > { %v4690_v61 = vpop.f32.mrb[34].mxu1 }
 0x430   : > { %v3716_v57 = vpop.f32.mrb[35].mxu1 }
 0x435   : > { %v4692_v58 = vpop.f32.mrb[36].mxu1 }
 0x436   : > { %v3731_v60 = vpop.f32.mrb[37].mxu1 }
 0x437   : > { %v4694_v0 = vpop.f32.mrb[38].mxu1 }
 0x438   : > { %v3732_v1 = vpop.f32.mrb[39].mxu1 }
 0x439   : > { %v4696_v2 = vpop.f32.mrb[28].mxu0 }
 0x43a   : > { %v3739_v3 = vpop.f32.mrb[29].mxu0 }
 0x43b   : > { %v4698_v4 = vpop.f32.mrb[30].mxu0 }
 0x43c   : > { %v3740_v56 = vpop.f32.mrb[31].mxu0 }
 0x449   : > { %v1364_v5 = vpop.f32.mrb[32].mxu0 }
 0x44a   : > { %v3747_v7 = vpop.f32.mrb[33].mxu0  ;;  %v1482_v9 = vpop.f32.mrb[40].mxu1  ;;  %v1548_v19 = vmul.f32 0.17677669, %v1364_v5 }
 0x44b   : > { %v1552_v10 = vmul.f32 0.17677669, %v1482_v9  ;;  %v1367_v14 = vpop.f32.mrb[34].mxu0  ;;  %v3763_v16 = vpop.f32.mrb[41].mxu1 }
 0x44c   : > { %v3748_v17 = vpop.f32.mrb[35].mxu0  ;;  %v1485_v18 = vpop.f32.mrb[42].mxu1  ;;  %v1549_v28 = vmul.f32 0.17677669, %v1367_v14  ;;  %v1556_v30 = vsel %vm835_vm1, %v1548_v19, -inf }
 0x44d   : > { %v1553_v21 = vmul.f32 0.17677669, %v1485_v18  ;;  %v3764_v13 = vpop.f32.mrb[43].mxu1  ;;  %v1568_v22 = vsel %vm835_vm1, %v1552_v10, -inf }
 0x44e   : > { %1569 = vmax.xlane.f32.xlu0 %v1568_v22  ;;  %v1559_v26 = vsel %vm835_vm1, %v1549_v28, -inf }
 0x44f   : > { %v1571_v15 = vsel %vm835_vm1, %v1553_v21, -inf }
 0x450   : > { %1572 = vmax.xlane.f32.xlu1 %v1571_v15 }
 0x452   : > { %1557 = vmax.xlane.f32.xlu0 %v1556_v30 }
 0x454   : > { %1560 = vmax.xlane.f32.xlu1 %v1559_v26 }
 0x459   : > { %v1423_v31 = vpop.f32.mrb[36].mxu0 }
 0x45a   : > { %v1550_v32 = vmul.f32 0.17677669, %v1423_v31  ;;  %v3755_v33 = vpop.f32.mrb[37].mxu0 }
 0x45b   : > { %v1426_v34 = vpop.f32.mrb[38].mxu0 }
 0x45c   : > { %v1551_v35 = vmul.f32 0.17677669, %v1426_v34  ;;  %v3756_v36 = vpop.f32.mrb[39].mxu0  ;;  %v1562_v39 = vsel %vm835_vm1, %v1550_v32, -inf }
 0x45d   : > { %1563 = vmax.xlane.f32.xlu0 %v1562_v39 }
 0x45e   : > { %v1565_v40 = vsel %vm835_vm1, %v1551_v35, -inf }
 0x461   : > { %1566 = vmax.xlane.f32.xlu0 %v1565_v40 }
 0x465   : > { %1806 = vrot.lane.b32.xlu1 %v4528_v38, %s4238_s25 }
 0x469   : > { %v1541_v41 = vpop.f32.mrb[40].mxu0 }
 0x46a   : > { %v1554_v43 = vmul.f32 0.17677669, %v1541_v41  ;;  %v3771_v44 = vpop.f32.mrb[41].mxu0 }
 0x46b   : > { %v1544_v47 = vpop.f32.mrb[42].mxu0 }
 0x46c   : > { %v3772_v51 = vpop.f32.mrb[43].mxu0  ;;  %v1574_v59 = vsel %vm835_vm1, %v1554_v43, -inf  ;;  %v1555_v57 = vmul.f32 0.17677669, %v1544_v47 }
 0x46d   : > { %1575 = vmax.xlane.f32.xlu0 %v1574_v59 }
 0x46e   : > { %v1577_v60 = vsel %vm835_vm1, %v1555_v57, -inf }
 0x483   : > { %1754 = vrot.lane.b32.xlu0 %v4502_v12, %s4238_s25 }
 0x489   : > { %1578 = vmax.xlane.f32.xlu1 %v1577_v60 }
 0x4db   : > { %v1570_v1 = vpop.xlane.xlu0 %1569 }
 0x4dc   : > { %v1584_v3 = vsub.f32 %v1552_v10, %v1570_v1 }
 0x4dd   : > { %v1573_v56 = vpop.xlane.xlu1 %1572 }
 0x4de   : > { %v1596_v5 = vmul.f32 1.442695, %v1584_v3  ;;  %v1585_v7 = vsub.f32 %v1553_v21, %v1573_v56 }
 0x4df   : > { %v1558_v9 = vpop.xlane.xlu0 %1557 }
 0x4e0   : > { %4111 = vpow2.f32 %v1596_v5  ;;  %v1598_v14 = vmul.f32 1.442695, %v1585_v7  ;;  %v1580_v16 = vsub.f32 %v1548_v19, %v1558_v9 }
 0x4e1   : > { %v1561_v17 = vpop.xlane.xlu1 %1560 }
 0x4e2   : > { %4113 = vpow2.f32 %v1598_v14  ;;  %v1588_v18 = vmul.f32 1.442695, %v1580_v16  ;;  %v1581_v13 = vsub.f32 %v1549_v28, %v1561_v17 }
 0x4e4   : > { %4115 = vpow2.f32 %v1588_v18  ;;  %v1590_v22 = vmul.f32 1.442695, %v1581_v13 }
 0x4e5   : > { %v4743_v56 = vpop.permute.xlu1 %1806 }
 0x4e6   : > { %4117 = vpow2.f32 %v1590_v22 }
 0x4ea   : > { %v4712_v15 = vpop.eup %4111  ;;  %v1564_v30 = vpop.xlane.xlu0 %1563 }
 0x4eb   : > { %v1582_v26 = vsub.f32 %v1550_v32, %v1564_v30  ;;  %v1616_v10 = vsel %vm835_vm1, %v4712_v15, 0.0 }
 0x4ec   : > { %v4716_v31 = vpop.eup %4113  ;;  %1617 = vadd.xlane.f32.xlu0 %v1616_v10 }
 0x4ed   : > { %v1592_v21 = vmul.f32 1.442695, %v1582_v26  ;;  %v1619_v19 = vsel %vm835_vm1, %v4716_v31, 0.0 }
 0x4ee   : > { %v4720_v33 = vpop.eup %4115  ;;  %1620 = vadd.xlane.f32.xlu1 %v1619_v19  ;;  %v1567_v40 = vpop.xlane.xlu0 %1566 }
 0x4ef   : > { %4119 = vpow2.f32 %v1592_v21  ;;  %v1604_v28 = vsel %vm835_vm1, %v4720_v33, 0.0  ;;  %v1583_v41 = vsub.f32 %v1551_v35, %v1567_v40 }
 0x4f0   : > { %v4118_v34 = vpop.eup %4117  ;;  %1605 = vadd.xlane.f32.xlu0 %v1604_v28 }
 0x4f1   : > { %v1607_v32 = vsel %vm835_vm1, %v4118_v34, 0.0  ;;  %v1594_v44 = vmul.f32 1.442695, %v1583_v41 }
 0x4f2   : > { %1608 = vadd.xlane.f32.xlu1 %v1607_v32 }
 0x4f3   : > { %4121 = vpow2.f32 %v1594_v44 }
 0x4f9   : > { %v4725_v36 = vpop.eup %4119 }
 0x4fa   : > { %v1610_v39 = vsel %vm835_vm1, %v4725_v36, 0.0  ;;  %v1576_v47 = vpop.xlane.xlu0 %1575 }
 0x4fb   : > { %1611 = vadd.xlane.f32.xlu0 %v1610_v39  ;;  %v1586_v51 = vsub.f32 %v1554_v43, %v1576_v47 }
 0x4fd   : > { %v1600_v59 = vmul.f32 1.442695, %v1586_v51  ;;  %v4733_v60 = vpop.eup %4121 }
 0x4fe   : > { %v1613_v1 = vsel %vm835_vm1, %v4733_v60, 0.0  ;;  %v1755_v14 = vpop.permute.xlu0 %1754 }
 0x4ff   : > { %4123 = vpow2.f32 %v1600_v59 }
 0x503   : > { %1808 = vrot.lane.b32.xlu1 %v4543_v54, %s4238_s25 }
 0x509   : > { %v4737_v3 = vpop.eup %4123 }
 0x50a   : > { %v1622_v35 = vsel %vm835_vm1, %v4737_v3, 0.0 }
 0x511   : > { %1756 = vrot.lane.b32.xlu0 %v4517_v25, %s4238_s25 }
 0x516   : > { %v1579_v43 = vpop.xlane.xlu1 %1578 }
 0x517   : > { %v1587_v5 = vsub.f32 %v1555_v57, %v1579_v43 }
 0x519   : > { %v1602_v7 = vmul.f32 1.442695, %v1587_v5 }
 0x51b   : > { %4125 = vpow2.f32 %v1602_v7 }
 0x525   : > { %v4755_v9 = vpop.eup %4125 }
 0x526   : > { %v1625_v57 = vsel %vm835_vm1, %v4755_v9, 0.0 }
 0x527   : > { %1614 = vadd.xlane.f32.xlu1 %v1613_v1 }
 0x530   : > { %1623 = vadd.xlane.f32.xlu0 %v1622_v35 }
 0x538   : > { %1914 = vrot.lane.b32.xlu1 %v4474_v48, %s4239_s26 }
 0x546   : > { %1858 = vrot.lane.b32.xlu0 %v4440_v6, %s4239_s26 }
 0x54a   : > { %1860 = vrot.lane.b32.xlu0 %v4457_v27, %s4239_s26 }
 0x54e   : > { %1970 = vrot.lane.b32.xlu0 %v4500_v11, %s4239_s26 }
 0x552   : > { %2026 = vrot.lane.b32.xlu0 %v4526_v37, %s4239_s26 }
 0x556   : > { %1972 = vrot.lane.b32.xlu0 %v4515_v23, %s4239_s26 }
 0x55a   : > { %1968 = vrot.lane.b32.xlu0 %v4471_v46, %s4239_s26 }
 0x55c   : > { %1626 = vadd.xlane.f32.xlu1 %v1625_v57 }
 0x55e   : > { %2180 = vrot.lane.b32.xlu0 %v4442_v8, %s4239_s26 }
 0x56d   : > { %1916 = vrot.lane.b32.xlu1 %v4489_v62, %s4239_s26 }
 0x571   : > { %1856 = vrot.lane.b32.xlu1 %v4453_v24, %s4239_s26 }
 0x575   : > { %1912 = vrot.lane.b32.xlu1 %v4449_v20, %s4239_s26 }
 0x579   : > { %v1618_v16 = vpop.xlane.xlu0 %1617  ;;  %2028 = vrot.lane.b32.xlu1 %v4541_v52, %s4239_s26 }
 0x57b   : > { %v1621_v17 = vpop.xlane.xlu1 %1620 }
 0x57d   : > { %v1606_v18 = vpop.xlane.xlu0 %1605  ;;  %2024 = vrot.lane.b32.xlu1 %v4467_v42, %s4239_s26 }
 0x57e   : > { %4127 = vrcp.f32 %v1606_v18 }
 0x57f   : > { %v1609_v13 = vpop.xlane.xlu1 %1608 }
 0x580   : > { %4129 = vrcp.f32 %v1609_v13 }
 0x581   : > { %2230 = vrot.lane.b32.xlu1 %v4476_v49, %s4239_s26  ;;  %4131 = vrcp.f32 %v1621_v17 }
 0x582   : > { %4133 = vrcp.f32 %v1618_v16 }
 0x585   : > { %2182 = vrot.lane.b32.xlu1 %v4459_v29, %s4239_s26 }
 0x588   : > { %v4128_v22 = vpop.eup %4127  ;;  %v1612_v21 = vpop.xlane.xlu0 %1611 }
 0x589   : > { %2232 = vrot.lane.b32.xlu1 %v4491_v63, %s4239_s26  ;;  %v1636_v26 = vmul.f32 %v4128_v22, %v4720_v33  ;;  %4135 = vrcp.f32 %v1612_v21 }
 0x58a   : > { %v4130_v30 = vpop.eup %4129 }
 0x58b   : > { %v1637_v10 = vmul.f32 %v4130_v30, %v4118_v34  ;;  %v4132_v28 = vpop.eup %4131  ;;  %v1809_v34 = vpop.permute.xlu1 %1808 }
 0x58c   : > { %v4134_v32 = vpop.eup %4133  ;;  %v1641_v39 = vmul.f32 %v4132_v28, %v4716_v31  ;;  %v1757_v41 = vpop.permute.xlu0 %1756 }
 0x58d   : > { %v1644_v19 = vpack.c.bf16 %v1637_v10, %v1636_v26  ;;  %v1640_v40 = vmul.f32 %v4134_v32, %v4712_v15 }
 0x58f   : > { %3778 = vmatmul.mubr.msk.bf16.vlgmr.msra.gmra.mrb[44].mxu1 %vm835_vm1, %v1644_v19  ;;  %v1646_v33 = vpack.c.bf16 %v1641_v39, %v1640_v40 }
 0x590   : > { %3790 = vmatpush3.bf16.msra.mxu1 %v1755_v14  ;;  %3793 = vmatprep.mubr.msk.bf16.mxu1 %vm4237_vm0, %v4236_v53 }
 0x591   : > { %3791 = vmatprep.subr.bf16.mxu1 %v4236_v53 }
 0x593   : > { %v4136_v47 = vpop.eup %4135 }
 0x594   : > { %3792 = vmatpush3.bf16.msra.mxu1 %v1757_v41  ;;  %v1638_v59 = vmul.f32 %v4136_v47, %v4725_v36 }
 0x595   : > { %3805 = vmatprep.subr.bf16.mxu1 %v4236_v53 }
 0x597   : > { %3794 = vmatmul.mubr.msk.bf16.vlgmr.msra.gmra.mrb[48].mxu1 %vm835_vm1, %v1646_v33 }
 0x598   : > { %3809 = vmatprep.mubr.msk.bf16.mxu1 %vm4237_vm0, %v4236_v53 }
 0x5b4   : > { %v1615_v44 = vpop.xlane.xlu1 %1614 }
 0x5b5   : > { %4137 = vrcp.f32 %v1615_v44 }
 0x5bd   : > { %v1624_v31 = vpop.xlane.xlu0 %1623 }
 0x5be   : > { %4139 = vrcp.f32 %v1624_v31 }
 0x5bf   : > { %v4138_v51 = vpop.eup %4137 }
 0x5c0   : > { %v1639_v15 = vmul.f32 %v4138_v51, %v4733_v60  ;;  %v1915_v60 = vpop.permute.xlu1 %1914 }
 0x5c1   : > { %v1859_v1 = vpop.permute.xlu0 %1858  ;;  %v1922_v19 = vsel %vm835_vm1, %v1915_v60, 0 }
 0x5c2   : > { %v1866_v35 = vsel %vm835_vm1, %v1859_v1, 0  ;;  %v1645_v43 = vpack.c.bf16 %v1639_v15, %v1638_v59 }
 0x5c3   : > { %3806 = vmatpush3.bf16.xpose.msra.mxu1 %v1866_v35 }
 0x5c4   : > { %3786 = vmatmul.mubr.msk.bf16.vlgmr.msra.gmra.mrb[44].mxu0 %vm835_vm1, %v1645_v43  ;;  %3807 = vmatprep.subr.bf16.mxu1 %v4236_v53 }
 0x5c5   : > { %3798 = vmatpush3.bf16.msra.mxu0 %v4743_v56  ;;  %3801 = vmatprep.mubr.msk.bf16.mxu0 %vm4237_vm0, %v4236_v53  ;;  %v1861_v5 = vpop.permute.xlu0 %1860 }
 0x5c6   : > { %3799 = vmatprep.subr.bf16.mxu0 %v4236_v53  ;;  %v1869_v36 = vsel %vm835_vm1, %v1861_v5, 0 }
 0x5c8   : > { %v4140_v17 = vpop.eup %4139 }
 0x5c9   : > { %3800 = vmatpush3.bf16.msra.mxu0 %v1809_v34  ;;  %v1971_v57 = vpop.permute.xlu0 %1970  ;;  %v1642_v22 = vmul.f32 %v4140_v17, %v4737_v3 }
 0x5ca   : > { %3813 = vmatprep.subr.bf16.mxu0 %v4236_v53  ;;  %v1978_v18 = vsel %vm835_vm1, %v1971_v57, 0 }
 0x5cb   : > { %3808 = vmatpush3.bf16.xpose.msra.mxu1 %v1869_v36 }
 0x5cc   : > { %3821 = vmatprep.subr.bf16.mxu1 %v4236_v53 }
 0x5cd   : > { %v2027_v14 = vpop.permute.xlu0 %2026 }
 0x5ce   : > { %v2034_v34 = vsel %vm835_vm1, %v2027_v14, 0 }
 0x5d1   : > { %v1973_v10 = vpop.permute.xlu0 %1972 }
 0x5d2   : > { %v1981_v32 = vsel %vm835_vm1, %v1973_v10, 0 }
 0x5d5   : > { %v1969_v3 = vpop.permute.xlu0 %1968 }
 0x5d9   : > { %v2181_v41 = vpop.permute.xlu0 %2180 }
 0x5e9   : > { %v1627_v7 = vpop.xlane.xlu1 %1626 }
 0x5ea   : > { %4141 = vrcp.f32 %v1627_v7 }
 0x5ed   : > { %v1917_v56 = vpop.permute.xlu1 %1916 }
 0x5ee   : > { %v1925_v39 = vsel %vm835_vm1, %v1917_v56, 0 }
 0x5f1   : > { %v1857_v16 = vpop.permute.xlu1 %1856 }
 0x5f2   : > { %3810 = vmatmul.mubr.msk.bf16.vlgmr.msra.gmra.mrb[52].mxu1 %vm835_vm1, %v1857_v16 }
 0x5f3   : > { %3822 = vmatpush3.bf16.xpose.msra.mxu1 %v1978_v18  ;;  %3825 = vmatprep.mubr.msk.bf16.mxu1 %vm4237_vm0, %v4236_v53 }
 0x5f4   : > { %v4142_v13 = vpop.eup %4141  ;;  %3823 = vmatprep.subr.bf16.mxu1 %v4236_v53 }
 0x5f5   : > { %v1643_v30 = vmul.f32 %v4142_v13, %v4755_v9  ;;  %v1913_v26 = vpop.permute.xlu1 %1912 }
 0x5f7   : > { %v1647_v21 = vpack.c.bf16 %v1643_v30, %v1642_v22 }
 0x5f9   : > { %3802 = vmatmul.mubr.msk.bf16.vlgmr.msra.gmra.mrb[48].mxu0 %vm835_vm1, %v1647_v21  ;;  %v2029_v28 = vpop.permute.xlu1 %2028 }
 0x5fa   : > { %3814 = vmatpush3.bf16.xpose.msra.mxu0 %v1922_v19  ;;  %3817 = vmatprep.mubr.msk.bf16.mxu0 %vm4237_vm0, %v4236_v53  ;;  %v2037_v44 = vsel %vm835_vm1, %v2029_v28, 0 }
 0x5fb   : > { %3824 = vmatpush3.bf16.xpose.msra.mxu1 %v1981_v32  ;;  %3815 = vmatprep.subr.bf16.mxu0 %v4236_v53 }
 0x5fc   : > { %3837 = vmatprep.subr.bf16.mxu1 %v4236_v53 }
 0x5fd   : > { %v2025_v9 = vpop.permute.xlu1 %2024 }
 0x601   : > { %v2231_v40 = vpop.permute.xlu1 %2230 }
 0x602   : > { %3816 = vmatpush3.bf16.xpose.msra.mxu0 %v1925_v39  ;;  %3826 = vmatmul.mubr.msk.bf16.vlgmr.msra.gmra.mrb[56].mxu1 %vm835_vm1, %v1969_v3 }
 0x603   : > { %3838 = vmatpush3.bf16.msra.mxu1 %v2181_v41  ;;  %3829 = vmatprep.subr.bf16.mxu0 %v4236_v53 }
 0x604   : > { %3839 = vmatprep.subr.bf16.mxu1 %v4236_v53  ;;  %3841 = vmatprep.mubr.msk.bf16.mxu1 %vm4237_vm0, %v4236_v53 }
 0x605   : > { %v2183_v33 = vpop.permute.xlu1 %2182 }
 0x607   : > { %3840 = vmatpush3.bf16.msra.mxu1 %v2183_v33 }
 0x608   : > { %3853 = vmatprep.subr.bf16.mxu1 %v4236_v53 }
 0x609   : > { %3818 = vmatmul.mubr.msk.bf16.vlgmr.msra.gmra.mrb[52].mxu0 %vm835_vm1, %v1913_v26  ;;  %v2233_v47 = vpop.permute.xlu1 %2232 }
 0x60a   : > { %3830 = vmatpush3.bf16.xpose.msra.mxu0 %v2034_v34  ;;  %3833 = vmatprep.mubr.msk.bf16.mxu0 %vm4237_vm0, %v4236_v53 }
 0x60b   : > { %3831 = vmatprep.subr.bf16.mxu0 %v4236_v53 }
 0x612   : > { %3832 = vmatpush3.bf16.xpose.msra.mxu0 %v2037_v44 }
 0x613   : > { %3845 = vmatprep.subr.bf16.mxu0 %v4236_v53 }
 0x619   : > { %3834 = vmatmul.mubr.msk.bf16.vlgmr.msra.gmra.mrb[56].mxu0 %vm835_vm1, %v2025_v9 }
 0x61a   : > { %3846 = vmatpush3.bf16.msra.mxu0 %v2231_v40  ;;  %3849 = vmatprep.mubr.msk.bf16.mxu0 %vm4237_vm0, %v4236_v53 }
 0x61b   : > { %3847 = vmatprep.subr.bf16.mxu0 %v4236_v53 }
 0x61e   : > { %3848 = vmatpush3.bf16.msra.mxu0 %v2233_v47 }
 0x61f   : > { %3861 = vmatprep.subr.bf16.mxu0 %v4236_v53 }
 0x662   : > { %v4835_v31 = vpop.f32.mrb[44].mxu1 }
 0x663   : > { %v3779_v51 = vpop.f32.mrb[45].mxu1 }
 0x664   : > { %v4837_v59 = vpop.f32.mrb[46].mxu1 }
 0x665   : > { %v3971_v15 = vpack.i.bf16 %v4837_v59, %v4835_v31  ;;  %v3780_v1 = vpop.f32.mrb[47].mxu1 }
 0x66a   : > { %v4841_v35 = vpop.f32.mrb[48].mxu1 }
 0x66b   : > { %v3795_v43 = vpop.f32.mrb[49].mxu1 }
 0x66c   : > { %v4843_v5 = vpop.f32.mrb[50].mxu1 }
 0x66d   : > { %v3991_v36 = vpack.i.bf16 %v4843_v5, %v4841_v35  ;;  %v3796_v60 = vpop.f32.mrb[51].mxu1 }
 0x697   : > { %v4847_v7 = vpop.f32.mrb[44].mxu0 }
 0x698   : > { %v3787_v57 = vpop.f32.mrb[45].mxu0 }
 0x699   : > { %v4849_v56 = vpop.f32.mrb[46].mxu0 }
 0x69a   : > { %v3976_v14 = vpack.i.bf16 %v4849_v56, %v4847_v7  ;;  %v3788_v16 = vpop.f32.mrb[47].mxu0 }
 0x6c5   : > { %v1905_v17 = vpop.f32.mrb[52].mxu1 }
 0x6c6   : > { %v2080_v18 = vmul.f32 0.17677669, %v1905_v17  ;;  %v3811_v13 = vpop.f32.mrb[53].mxu1 }
 0x6c7   : > { %v1908_v22 = vpop.f32.mrb[54].mxu1 }
 0x6c8   : > { %v2081_v30 = vmul.f32 0.17677669, %v1908_v22  ;;  %v3812_v26 = vpop.f32.mrb[55].mxu1  ;;  %v2088_v10 = vsel %vm835_vm1, %v2080_v18, -inf }
 0x6c9   : > { %2089 = vmax.xlane.f32.xlu0 %v2088_v10 }
 0x6ca   : > { %v2091_v21 = vsel %vm835_vm1, %v2081_v30, -inf }
 0x6cb   : > { %2092 = vmax.xlane.f32.xlu1 %v2091_v21 }
 0x6cc   : > { %v4855_v19 = vpop.f32.mrb[48].mxu0 }
 0x6cd   : > { %v3803_v28 = vpop.f32.mrb[49].mxu0 }
 0x6ce   : > { %v4857_v32 = vpop.f32.mrb[50].mxu0 }
 0x6cf   : > { %v3996_v3 = vpack.i.bf16 %v4857_v32, %v4855_v19  ;;  %v3804_v9 = vpop.f32.mrb[51].mxu0 }
 0x6d5   : > { %v2017_v39 = vpop.f32.mrb[56].mxu1 }
 0x6d6   : > { %v2084_v40 = vmul.f32 0.17677669, %v2017_v39  ;;  %v3827_v41 = vpop.f32.mrb[57].mxu1 }
 0x6d7   : > { %v2020_v33 = vpop.f32.mrb[58].mxu1 }
 0x6d8   : > { %v2085_v34 = vmul.f32 0.17677669, %v2020_v33  ;;  %v3828_v44 = vpop.f32.mrb[59].mxu1  ;;  %v2100_v47 = vsel %vm835_vm1, %v2084_v40, -inf }
 0x6d9   : > { %2101 = vmax.xlane.f32.xlu0 %v2100_v47 }
 0x6da   : > { %v2103_v51 = vsel %vm835_vm1, %v2085_v34, -inf }
 0x6db   : > { %2104 = vmax.xlane.f32.xlu1 %v2103_v51 }
 0x6dc   : > { %v1961_v1 = vpop.f32.mrb[52].mxu0 }
 0x6dd   : > { %v2082_v43 = vmul.f32 0.17677669, %v1961_v1  ;;  %v3819_v60 = vpop.f32.mrb[53].mxu0 }
 0x6de   : > { %v1964_v57 = vpop.f32.mrb[54].mxu0 }
 0x6df   : > { %v2083_v16 = vmul.f32 0.17677669, %v1964_v57  ;;  %v3820_v17 = vpop.f32.mrb[55].mxu0  ;;  %v2094_v13 = vsel %vm835_vm1, %v2082_v43, -inf }
 0x6e0   : > { %2095 = vmax.xlane.f32.xlu0 %v2094_v13 }
 0x6e1   : > { %v2097_v22 = vsel %vm835_vm1, %v2083_v16, -inf }
 0x6e4   : > { %2098 = vmax.xlane.f32.xlu0 %v2097_v22 }
 0x6ec   : > { %2330 = vrot.lane.b32.xlu1 %v4528_v38, %s4239_s26  ;;  %v2073_v26 = vpop.f32.mrb[56].mxu0 }
 0x6ed   : > { %v2086_v10 = vmul.f32 0.17677669, %v2073_v26  ;;  %v3835_v21 = vpop.f32.mrb[57].mxu0 }
 0x6ee   : > { %v2076_v28 = vpop.f32.mrb[58].mxu0 }
 0x6ef   : > { %v3836_v9 = vpop.f32.mrb[59].mxu0  ;;  %v2106_v39 = vsel %vm835_vm1, %v2086_v10, -inf  ;;  %v2087_v41 = vmul.f32 0.17677669, %v2076_v28 }
 0x6f0   : > { %2107 = vmax.xlane.f32.xlu0 %v2106_v39 }
 0x6f1   : > { %v2109_v33 = vsel %vm835_vm1, %v2087_v41, -inf }
 0x706   : > { %2280 = vrot.lane.b32.xlu0 %v4502_v12, %s4239_s26 }
 0x710   : > { %2110 = vmax.xlane.f32.xlu1 %v2109_v33 }
 0x756   : > { %v2090_v44 = vpop.xlane.xlu0 %2089 }
 0x757   : > { %v2112_v47 = vsub.f32 %v2080_v18, %v2090_v44 }
 0x758   : > { %v2093_v51 = vpop.xlane.xlu1 %2092 }
 0x759   : > { %v2120_v1 = vmul.f32 1.442695, %v2112_v47  ;;  %v2113_v60 = vsub.f32 %v2081_v30, %v2093_v51 }
 0x75b   : > { %4143 = vpow2.f32 %v2120_v1  ;;  %v2122_v57 = vmul.f32 1.442695, %v2113_v60 }
 0x75d   : > { %4145 = vpow2.f32 %v2122_v57 }
 0x765   : > { %v4871_v17 = vpop.eup %4143 }
 0x766   : > { %v2102_v13 = vpop.xlane.xlu0 %2101  ;;  %v2136_v22 = vsel %vm835_vm1, %v4871_v17, 0.0 }
 0x767   : > { %v4875_v26 = vpop.eup %4145  ;;  %v2116_v21 = vsub.f32 %v2084_v40, %v2102_v13  ;;  %2137 = vadd.xlane.f32.xlu0 %v2136_v22 }
 0x768   : > { %v2105_v28 = vpop.xlane.xlu1 %2104  ;;  %v2139_v18 = vsel %vm835_vm1, %v4875_v26, 0.0 }
 0x769   : > { %v2128_v9 = vmul.f32 1.442695, %v2116_v21  ;;  %v2117_v39 = vsub.f32 %v2085_v34, %v2105_v28  ;;  %2140 = vadd.xlane.f32.xlu1 %v2139_v18 }
 0x76b   : > { %4147 = vpow2.f32 %v2128_v9  ;;  %v2130_v30 = vmul.f32 1.442695, %v2117_v39 }
 0x76d   : > { %4149 = vpow2.f32 %v2130_v30  ;;  %v2096_v33 = vpop.xlane.xlu0 %2095 }
 0x76e   : > { %v2114_v44 = vsub.f32 %v2082_v43, %v2096_v33 }
 0x770   : > { %v2124_v47 = vmul.f32 1.442695, %v2114_v44 }
 0x771   : > { %v2099_v43 = vpop.xlane.xlu0 %2098 }
 0x772   : > { %4151 = vpow2.f32 %v2124_v47  ;;  %v2115_v13 = vsub.f32 %v2083_v16, %v2099_v43  ;;  %v4905_v16 = vpop.permute.xlu1 %2330 }
 0x774   : > { %v2126_v21 = vmul.f32 1.442695, %v2115_v13 }
 0x775   : > { %v4879_v51 = vpop.eup %4147 }
 0x776   : > { %v2148_v40 = vsel %vm835_vm1, %v4879_v51, 0.0  ;;  %4153 = vpow2.f32 %v2126_v21 }
 0x777   : > { %v4883_v1 = vpop.eup %4149  ;;  %2149 = vadd.xlane.f32.xlu0 %v2148_v40 }
 0x778   : > { %v2151_v60 = vsel %vm835_vm1, %v4883_v1, 0.0 }
 0x779   : > { %2152 = vadd.xlane.f32.xlu1 %v2151_v60 }
 0x77c   : > { %v4887_v34 = vpop.eup %4151 }
 0x77d   : > { %v2142_v57 = vsel %vm835_vm1, %v4887_v34, 0.0  ;;  %v2108_v22 = vpop.xlane.xlu0 %2107 }
 0x77e   : > { %2143 = vadd.xlane.f32.xlu0 %v2142_v57  ;;  %v2118_v28 = vsub.f32 %v2086_v10, %v2108_v22 }
 0x780   : > { %v2132_v18 = vmul.f32 1.442695, %v2118_v28  ;;  %v4895_v9 = vpop.eup %4153 }
 0x781   : > { %v2145_v39 = vsel %vm835_vm1, %v4895_v9, 0.0 }
 0x782   : > { %4155 = vpow2.f32 %v2132_v18 }
 0x78a   : > { %2332 = vrot.lane.b32.xlu1 %v4543_v54, %s4239_s26 }
 0x78c   : > { %v4899_v30 = vpop.eup %4155 }
 0x78d   : > { %v2154_v33 = vsel %vm835_vm1, %v4899_v30, 0.0 }
 0x794   : > { %2282 = vrot.lane.b32.xlu0 %v4517_v25, %s4239_s26 }
 0x79d   : > { %v2111_v10 = vpop.xlane.xlu1 %2110 }
 0x79e   : > { %v2119_v44 = vsub.f32 %v2087_v41, %v2111_v10 }
 0x7a0   : > { %v2134_v47 = vmul.f32 1.442695, %v2119_v44 }
 0x7a2   : > { %4157 = vpow2.f32 %v2134_v47 }
 0x7ae   : > { %2146 = vadd.xlane.f32.xlu1 %v2145_v39 }
 0x7b3   : > { %2155 = vadd.xlane.f32.xlu0 %v2154_v33 }
 0x7bf   : > { %2438 = vrot.lane.b32.xlu1 %v4474_v48, %s4240_s27 }
 0x7c9   : > { %2382 = vrot.lane.b32.xlu0 %v4440_v6, %s4240_s27  ;;  %v4919_v6 = vpop.eup %4157 }
 0x7ca   : > { %v2157_v48 = vsel %vm835_vm1, %v4919_v6, 0.0 }
 0x7cd   : > { %2384 = vrot.lane.b32.xlu0 %v4457_v27, %s4240_s27  ;;  %v2281_v27 = vpop.permute.xlu0 %2280 }
 0x7d1   : > { %2494 = vrot.lane.b32.xlu0 %v4500_v11, %s4240_s27 }
 0x7d5   : > { %2550 = vrot.lane.b32.xlu0 %v4526_v37, %s4240_s27 }
 0x7d9   : > { %2496 = vrot.lane.b32.xlu0 %v4515_v23, %s4240_s27 }
 0x7dd   : > { %2492 = vrot.lane.b32.xlu0 %v4471_v46, %s4240_s27 }
 0x7e3   : > { %2158 = vadd.xlane.f32.xlu1 %v2157_v48 }
 0x7f4   : > { %2440 = vrot.lane.b32.xlu1 %v4489_v62, %s4240_s27  ;;  %v2138_v11 = vpop.xlane.xlu0 %2137 }
 0x7f5   : > { %4159 = vrcp.f32 %v2138_v11 }
 0x7f6   : > { %v2141_v41 = vpop.xlane.xlu1 %2140 }
 0x7f7   : > { %4161 = vrcp.f32 %v2141_v41 }
 0x7f8   : > { %2380 = vrot.lane.b32.xlu1 %v4453_v24, %s4240_s27 }
 0x7fc   : > { %2436 = vrot.lane.b32.xlu1 %v4449_v20, %s4240_s27 }
 0x7ff   : > { %v4160_v46 = vpop.eup %4159 }
 0x800   : > { %2552 = vrot.lane.b32.xlu1 %v4541_v52, %s4240_s27  ;;  %v2168_v37 = vmul.f32 %v4160_v46, %v4871_v17 }
 0x801   : > { %v4162_v23 = vpop.eup %4161 }
 0x802   : > { %v2169_v40 = vmul.f32 %v4162_v23, %v4875_v26 }
 0x804   : > { %v2150_v62 = vpop.xlane.xlu0 %2149  ;;  %2548 = vrot.lane.b32.xlu1 %v4467_v42, %s4240_s27  ;;  %v2176_v60 = vpack.c.bf16 %v2169_v40, %v2168_v37 }
 0x805   : > { %4163 = vrcp.f32 %v2150_v62 }
 0x806   : > { %v2153_v57 = vpop.xlane.xlu1 %2152  ;;  %3842 = vmatmul.mubr.msk.bf16.vlgmr.msra.gmra.mrb[60].mxu1 %vm835_vm1, %v2176_v60 }
 0x807   : > { %4165 = vrcp.f32 %v2153_v57  ;;  %3854 = vmatpush3.bf16.msra.mxu1 %v2281_v27  ;;  %3857 = vmatprep.mubr.msk.bf16.mxu1 %vm4237_vm0, %v4236_v53 }
 0x808   : > { %3855 = vmatprep.subr.bf16.mxu1 %v4236_v53 }
 0x80a   : > { %v2333_v13 = vpop.permute.xlu1 %2332 }
 0x80b   : > { %v2144_v20 = vpop.xlane.xlu0 %2143 }
 0x80c   : > { %4167 = vrcp.f32 %v2144_v20 }
 0x80f   : > { %v4164_v24 = vpop.eup %4163  ;;  %v2283_v52 = vpop.permute.xlu0 %2282 }
 0x810   : > { %3856 = vmatpush3.bf16.msra.mxu1 %v2283_v52  ;;  %v2172_v42 = vmul.f32 %v4164_v24, %v4879_v51 }
 0x811   : > { %v4166_v17 = vpop.eup %4165  ;;  %3869 = vmatprep.subr.bf16.mxu1 %v4236_v53 }
 0x812   : > { %v2173_v26 = vmul.f32 %v4166_v17, %v4883_v1 }
 0x814   : > { %v2178_v43 = vpack.c.bf16 %v2173_v26, %v2172_v42 }
 0x816   : > { %3858 = vmatmul.mubr.msk.bf16.vlgmr.msra.gmra.mrb[64].mxu1 %vm835_vm1, %v2178_v43  ;;  %v4168_v28 = vpop.eup %4167 }
 0x817   : > { %3873 = vmatprep.mubr.msk.bf16.mxu1 %vm4237_vm0, %v4236_v53  ;;  %v2170_v51 = vmul.f32 %v4168_v28, %v4887_v34 }
 0x83b   : > { %v2147_v22 = vpop.xlane.xlu1 %2146 }
 0x83c   : > { %4169 = vrcp.f32 %v2147_v22 }
 0x83f   : > { %v2439_v34 = vpop.permute.xlu1 %2438 }
 0x840   : > { %v2156_v21 = vpop.xlane.xlu0 %2155  ;;  %v2446_v57 = vsel %vm835_vm1, %v2439_v34, 0 }
 0x841   : > { %4171 = vrcp.f32 %v2156_v21 }
 0x844   : > { %v2383_v18 = vpop.permute.xlu0 %2382 }
 0x845   : > { %v2390_v39 = vsel %vm835_vm1, %v2383_v18, 0 }
 0x846   : > { %v4170_v33 = vpop.eup %4169  ;;  %3870 = vmatpush3.bf16.xpose.msra.mxu1 %v2390_v39 }
 0x847   : > { %v2171_v1 = vmul.f32 %v4170_v33, %v4895_v9  ;;  %3871 = vmatprep.subr.bf16.mxu1 %v4236_v53 }
 0x848   : > { %v2385_v44 = vpop.permute.xlu0 %2384 }
 0x849   : > { %v2177_v10 = vpack.c.bf16 %v2171_v1, %v2170_v51  ;;  %v2393_v47 = vsel %vm835_vm1, %v2385_v44, 0 }
 0x84b   : > { %3850 = vmatmul.mubr.msk.bf16.vlgmr.msra.gmra.mrb[60].mxu0 %vm835_vm1, %v2177_v10  ;;  %v4172_v41 = vpop.eup %4171 }
 0x84c   : > { %3862 = vmatpush3.bf16.msra.mxu0 %v4905_v16  ;;  %3865 = vmatprep.mubr.msk.bf16.mxu0 %vm4237_vm0, %v4236_v53  ;;  %v2495_v48 = vpop.permute.xlu0 %2494  ;;  %v2174_v37 = vmul.f32 %v4172_v41, %v4899_v30 }
 0x84d   : > { %3863 = vmatprep.subr.bf16.mxu0 %v4236_v53  ;;  %v2502_v46 = vsel %vm835_vm1, %v2495_v48, 0 }
 0x84e   : > { %3872 = vmatpush3.bf16.xpose.msra.mxu1 %v2393_v47 }
 0x84f   : > { %3885 = vmatprep.subr.bf16.mxu1 %v4236_v53 }
 0x850   : > { %3864 = vmatpush3.bf16.msra.mxu0 %v2333_v13  ;;  %v2551_v16 = vpop.permute.xlu0 %2550 }
 0x851   : > { %3877 = vmatprep.subr.bf16.mxu0 %v4236_v53  ;;  %v2558_v52 = vsel %vm835_vm1, %v2551_v16, 0 }
 0x854   : > { %v2497_v62 = vpop.permute.xlu0 %2496 }
 0x855   : > { %v2505_v20 = vsel %vm835_vm1, %v2497_v62, 0 }
 0x858   : > { %v2493_v30 = vpop.permute.xlu0 %2492 }
 0x870   : > { %v2159_v9 = vpop.xlane.xlu1 %2158 }
 0x871   : > { %4173 = vrcp.f32 %v2159_v9 }
 0x874   : > { %v2441_v27 = vpop.permute.xlu1 %2440 }
 0x878   : > { %v2381_v11 = vpop.permute.xlu1 %2380 }
 0x879   : > { %3874 = vmatmul.mubr.msk.bf16.vlgmr.msra.gmra.mrb[68].mxu1 %vm835_vm1, %v2381_v11 }
 0x87a   : > { %3886 = vmatpush3.bf16.xpose.msra.mxu1 %v2502_v46  ;;  %3889 = vmatprep.mubr.msk.bf16.mxu1 %vm4237_vm0, %v4236_v53 }
 0x87b   : > { %v4174_v23 = vpop.eup %4173  ;;  %3887 = vmatprep.subr.bf16.mxu1 %v4236_v53 }
 0x87c   : > { %v2175_v40 = vmul.f32 %v4174_v23, %v4919_v6  ;;  %v2449_v6 = vsel %vm835_vm1, %v2441_v27, 0  ;;  %v2437_v24 = vpop.permute.xlu1 %2436 }
 0x87e   : > { %v2179_v60 = vpack.c.bf16 %v2175_v40, %v2174_v37 }
 0x880   : > { %3866 = vmatmul.mubr.msk.bf16.vlgmr.msra.gmra.mrb[64].mxu0 %vm835_vm1, %v2179_v60  ;;  %v2553_v17 = vpop.permute.xlu1 %2552 }
 0x881   : > { %3878 = vmatpush3.bf16.xpose.msra.mxu0 %v2446_v57  ;;  %3881 = vmatprep.mubr.msk.bf16.mxu0 %vm4237_vm0, %v4236_v53  ;;  %v2561_v42 = vsel %vm835_vm1, %v2553_v17, 0 }
 0x882   : > { %3888 = vmatpush3.bf16.xpose.msra.mxu1 %v2505_v20  ;;  %3879 = vmatprep.subr.bf16.mxu0 %v4236_v53 }
 0x883   : > { %3901 = vmatprep.subr.bf16.mxu1 %v4236_v53 }
 0x884   : > { %v2549_v26 = vpop.permute.xlu1 %2548 }
 0x889   : > { %3880 = vmatpush3.bf16.xpose.msra.mxu0 %v2449_v6  ;;  %3890 = vmatmul.mubr.msk.bf16.vlgmr.msra.gmra.mrb[72].mxu1 %vm835_vm1, %v2493_v30 }
 0x88a   : > { %3893 = vmatprep.subr.bf16.mxu0 %v4236_v53  ;;  %3905 = vmatprep.mubr.msk.bf16.mxu1 %vm4237_vm0, %v4236_v53 }
 0x890   : > { %3882 = vmatmul.mubr.msk.bf16.vlgmr.msra.gmra.mrb[68].mxu0 %vm835_vm1, %v2437_v24 }
 0x891   : > { %3894 = vmatpush3.bf16.xpose.msra.mxu0 %v2558_v52  ;;  %3897 = vmatprep.mubr.msk.bf16.mxu0 %vm4237_vm0, %v4236_v53 }
 0x892   : > { %3895 = vmatprep.subr.bf16.mxu0 %v4236_v53 }
 0x899   : > { %3896 = vmatpush3.bf16.xpose.msra.mxu0 %v2561_v42 }
 0x89a   : > { %3909 = vmatprep.subr.bf16.mxu0 %v4236_v53 }
 0x8a0   : > { %3898 = vmatmul.mubr.msk.bf16.vlgmr.msra.gmra.mrb[72].mxu0 %vm835_vm1, %v2549_v26 }
 0x8a1   : > { %3913 = vmatprep.mubr.msk.bf16.mxu0 %vm4237_vm0, %v4236_v53 }
 0x8d9   : > { %v4986_v43 = vpop.f32.mrb[60].mxu1 }
 0x8da   : > { %v3843_v13 = vpop.f32.mrb[61].mxu1 }
 0x8db   : > { %v4988_v22 = vpop.f32.mrb[62].mxu1 }
 0x8dc   : > { %v3981_v21 = vpack.i.bf16 %v4988_v22, %v4986_v43  ;;  %v3844_v28 = vpop.f32.mrb[63].mxu1 }
 0x8e9   : > { %v4992_v18 = vpop.f32.mrb[64].mxu1 }
 0x8ea   : > { %v3859_v39 = vpop.f32.mrb[65].mxu1 }
 0x8eb   : > { %v4994_v33 = vpop.f32.mrb[66].mxu1 }
 0x8ec   : > { %v4006_v51 = vpack.i.bf16 %v4994_v33, %v4992_v18  ;;  %v3860_v1 = vpop.f32.mrb[67].mxu1  ;;  %v4074_v18 = vld [vmem:[%s5230_s6 + $0x38] sm:$0xff]  }
 0x91e   : > { %v4998_v10 = vpop.f32.mrb[60].mxu0 }
 0x91f   : > { %v3851_v44 = vpop.f32.mrb[61].mxu0 }
 0x920   : > { %v5000_v47 = vpop.f32.mrb[62].mxu0 }
 0x921   : > { %v3986_v34 = vpack.i.bf16 %v5000_v47, %v4998_v10  ;;  %v3852_v9 = vpop.f32.mrb[63].mxu0 }
 0x94c   : > { %v2429_v48 = vpop.f32.mrb[68].mxu1 }
 0x94d   : > { %v2604_v27 = vmul.f32 0.17677669, %v2429_v48  ;;  %v3875_v16 = vpop.f32.mrb[69].mxu1 }
 0x94e   : > { %v2432_v11 = vpop.f32.mrb[70].mxu1 }
 0x94f   : > { %v2605_v41 = vmul.f32 0.17677669, %v2432_v11  ;;  %v3876_v46 = vpop.f32.mrb[71].mxu1  ;;  %v2612_v23 = vsel %vm835_vm1, %v2604_v27, -inf }
 0x950   : > { %2613 = vmax.xlane.f32.xlu0 %v2612_v23 }
 0x951   : > { %v2615_v37 = vsel %vm835_vm1, %v2605_v41, -inf }
 0x952   : > { %2616 = vmax.xlane.f32.xlu1 %v2615_v37 }
 0x953   : > { %v5006_v40 = vpop.f32.mrb[64].mxu0 }
 0x954   : > { %v3867_v62 = vpop.f32.mrb[65].mxu0 }
 0x955   : > { %v5008_v60 = vpop.f32.mrb[66].mxu0 }
 0x956   : > { %v4016_v57 = vpack.i.bf16 %v5008_v60, %v5006_v40  ;;  %v3868_v20 = vpop.f32.mrb[67].mxu0 }
 0x95c   : > { %v2541_v30 = vpop.f32.mrb[72].mxu1 }
 0x95d   : > { %v3891_v6 = vpop.f32.mrb[73].mxu1  ;;  %v2608_v48 = vmul.f32 0.17677669, %v2541_v30 }
 0x95e   : > { %v2544_v24 = vpop.f32.mrb[74].mxu1 }
 0x95f   : > { %v2609_v52 = vmul.f32 0.17677669, %v2544_v24  ;;  %v3892_v17 = vpop.f32.mrb[75].mxu1  ;;  %v2624_v11 = vsel %vm835_vm1, %v2608_v48, -inf }
 0x961   : > { %v2627_v42 = vsel %vm835_vm1, %v2609_v52, -inf }
 0x962   : > { %2628 = vmax.xlane.f32.xlu1 %v2627_v42 }
 0x963   : > { %v2485_v26 = vpop.f32.mrb[68].mxu0 }
 0x964   : > { %v2606_v13 = vmul.f32 0.17677669, %v2485_v26  ;;  %v3883_v28 = vpop.f32.mrb[69].mxu0 }
 0x965   : > { %v2488_v39 = vpop.f32.mrb[70].mxu0 }
 0x966   : > { %v2607_v1 = vmul.f32 0.17677669, %v2488_v39  ;;  %v3884_v44 = vpop.f32.mrb[71].mxu0  ;;  %v2618_v9 = vsel %vm835_vm1, %v2606_v13, -inf }
 0x967   : > { %2619 = vmax.xlane.f32.xlu0 %v2618_v9 }
 0x968   : > { %v2621_v16 = vsel %vm835_vm1, %v2607_v1, -inf }
 0x96b   : > { %2622 = vmax.xlane.f32.xlu0 %v2621_v16 }
 0x96f   : > { %2625 = vmax.xlane.f32.xlu0 %v2624_v11 }
 0x973   : > { %v2597_v46 = vpop.f32.mrb[72].mxu0 }
 0x974   : > { %v2610_v23 = vmul.f32 0.17677669, %v2597_v46  ;;  %v3899_v37 = vpop.f32.mrb[73].mxu0 }
 0x975   : > { %v2600_v62 = vpop.f32.mrb[74].mxu0 }
 0x976   : > { %v2611_v20 = vmul.f32 0.17677669, %v2600_v62  ;;  %v3900_v6 = vpop.f32.mrb[75].mxu0  ;;  %v2630_v24 = vsel %vm835_vm1, %v2610_v23, -inf }
 0x977   : > { %2631 = vmax.xlane.f32.xlu0 %v2630_v24 }
 0x978   : > { %v2633_v17 = vsel %vm835_vm1, %v2611_v20, -inf }
 0x979   : > { %2634 = vmax.xlane.f32.xlu1 %v2633_v17 }
 0x98a   : > { %2754 = vrot.lane.b32.xlu1 %v4476_v49, %s4240_s27 }
 0x98d   : > { %2704 = vrot.lane.b32.xlu0 %v4442_v8, %s4240_s27 }
 0x98e   : > { %2706 = vrot.lane.b32.xlu1 %v4459_v29, %s4240_s27 }
 0x991   : > { %2804 = vrot.lane.b32.xlu0 %v4502_v12, %s4240_s27 }
 0x992   : > { %2756 = vrot.lane.b32.xlu1 %v4491_v63, %s4240_s27 }
 0x996   : > { %2854 = vrot.lane.b32.xlu1 %v4528_v38, %s4240_s27 }
 0x9dd   : > { %v2614_v30 = vpop.xlane.xlu0 %2613 }
 0x9de   : > { %v2636_v42 = vsub.f32 %v2604_v27, %v2614_v30 }
 0x9df   : > { %v2617_v26 = vpop.xlane.xlu1 %2616 }
 0x9e0   : > { %v2644_v28 = vmul.f32 1.442695, %v2636_v42  ;;  %v2637_v49 = vsub.f32 %v2605_v41, %v2617_v26 }
 0x9e2   : > { %4175 = vpow2.f32 %v2644_v28  ;;  %v2646_v39 = vmul.f32 1.442695, %v2637_v49 }
 0x9e4   : > { %4177 = vpow2.f32 %v2646_v39 }
 0x9ec   : > { %v5030_v8 = vpop.eup %4175 }
 0x9ed   : > { %v2660_v29 = vsel %vm835_vm1, %v5030_v8, 0.0 }
 0x9ee   : > { %v5034_v12 = vpop.eup %4177  ;;  %2661 = vadd.xlane.f32.xlu0 %v2660_v29 }
 0x9ef   : > { %v2629_v63 = vpop.xlane.xlu1 %2628  ;;  %v2663_v38 = vsel %vm835_vm1, %v5034_v12, 0.0 }
 0x9f0   : > { %v2641_v44 = vsub.f32 %v2609_v52, %v2629_v63  ;;  %2664 = vadd.xlane.f32.xlu1 %v2663_v38 }
 0x9f2   : > { %v2654_v27 = vmul.f32 1.442695, %v2641_v44 }
 0x9f4   : > { %4179 = vpow2.f32 %v2654_v27  ;;  %v2620_v41 = vpop.xlane.xlu0 %2619 }
 0x9f5   : > { %v2638_v11 = vsub.f32 %v2606_v13, %v2620_v41 }
 0x9f7   : > { %v2648_v24 = vmul.f32 1.442695, %v2638_v11 }
 0x9f8   : > { %v2623_v9 = vpop.xlane.xlu0 %2622 }
 0x9f9   : > { %v2639_v16 = vsub.f32 %v2607_v1, %v2623_v9 }
 0x9fb   : > { %v2650_v46 = vmul.f32 1.442695, %v2639_v16 }
 0x9fc   : > { %v2626_v37 = vpop.xlane.xlu0 %2625 }
 0x9fd   : > { %4181 = vpow2.f32 %v2650_v46  ;;  %v2640_v62 = vsub.f32 %v2608_v48, %v2626_v37 }
 0x9fe   : > { %v5038_v6 = vpop.eup %4179 }
 0x9ff   : > { %v2652_v17 = vmul.f32 1.442695, %v2640_v62  ;;  %v2675_v30 = vsel %vm835_vm1, %v5038_v6, 0.0 }
 0xa00   : > { %2676 = vadd.xlane.f32.xlu1 %v2675_v30 }
 0xa01   : > { %4183 = vpow2.f32 %v2652_v17 }
 0xa02   : > { %4185 = vpow2.f32 %v2648_v24 }
 0xa04   : > { %v2632_v52 = vpop.xlane.xlu0 %2631 }
 0xa05   : > { %v2642_v42 = vsub.f32 %v2610_v23, %v2632_v52 }
 0xa06   : > { %v2635_v26 = vpop.xlane.xlu1 %2634 }
 0xa07   : > { %v5042_v28 = vpop.eup %4181  ;;  %v2656_v13 = vmul.f32 1.442695, %v2642_v42  ;;  %v2643_v1 = vsub.f32 %v2611_v20, %v2635_v26 }
 0xa08   : > { %v2705_v49 = vpop.permute.xlu0 %2704  ;;  %v2669_v48 = vsel %vm835_vm1, %v5042_v28, 0.0 }
 0xa09   : > { %4187 = vpow2.f32 %v2656_v13  ;;  %v2658_v39 = vmul.f32 1.442695, %v2643_v1  ;;  %3902 = vmatpush3.bf16.msra.mxu1 %v2705_v49  ;;  %2670 = vadd.xlane.f32.xlu1 %v2669_v48  ;;  %v4068_v13 = vld [vmem:[%s5230_s6 + $0x8] sm:$0xff]  }
 0xa0a   : > { %v2755_v29 = vpop.permute.xlu1 %2754  ;;  %3903 = vmatprep.subr.bf16.mxu1 %v4236_v53 }
 0xa0b   : > { %v4184_v63 = vpop.eup %4183  ;;  %4189 = vpow2.f32 %v2658_v39  ;;  %3910 = vmatpush3.bf16.msra.mxu0 %v2755_v29 }
 0xa0c   : > { %v2672_v23 = vsel %vm835_vm1, %v4184_v63, 0.0  ;;  %3911 = vmatprep.subr.bf16.mxu0 %v4236_v53  ;;  %v4186_v38 = vpop.eup %4185 }
 0xa0d   : > { %2673 = vadd.xlane.f32.xlu0 %v2672_v23  ;;  %v2666_v44 = vsel %vm835_vm1, %v4186_v38, 0.0  ;;  %v4071_v23 = vld [vmem:[%s5230_s6 + $0x20] sm:$0xff]  }
 0xa0e   : > { %v2707_v20 = vpop.permute.xlu1 %2706 }
 0xa0f   : > { %3904 = vmatpush3.bf16.msra.mxu1 %v2707_v20  ;;  %v4073_v20 = vld [vmem:[%s5230_s6 + $0x30] sm:$0xff]  }
 0xa10   : > { %3917 = vmatprep.subr.bf16.mxu1 %v4236_v53 }
 0xa11   : > { %2667 = vadd.xlane.f32.xlu0 %v2666_v44 }
 0xa12   : > { %v2757_v27 = vpop.permute.xlu1 %2756 }
 0xa13   : > { %v5051_v41 = vpop.eup %4187  ;;  %3912 = vmatpush3.bf16.msra.mxu0 %v2757_v27 }
 0xa14   : > { %v2678_v9 = vsel %vm835_vm1, %v5051_v41, 0.0  ;;  %3925 = vmatprep.subr.bf16.mxu0 %v4236_v53 }
 0xa15   : > { %v4190_v16 = vpop.eup %4189  ;;  %2679 = vadd.xlane.f32.xlu0 %v2678_v9 }
 0xa16   : > { %v2681_v11 = vsel %vm835_vm1, %v4190_v16, 0.0 }
 0xa17   : > { %2682 = vadd.xlane.f32.xlu1 %v2681_v11 }
 0xa28   : > { %2856 = vrot.lane.b32.xlu1 %v4543_v54, %s4240_s27  ;;  %v2855_v54 = vpop.permute.xlu1 %2854 }
 0xa2b   : > { %2806 = vrot.lane.b32.xlu0 %v4517_v25, %s4240_s27  ;;  %v2805_v25 = vpop.permute.xlu0 %2804 }
 0xa2c   : > { %3977 = vrot.lane.b32.xlu1 %v3976_v14, %s4240_s27 }
 0xa2f   : > { %3972 = vrot.lane.b32.xlu0 %v3971_v15, %s4240_s27 }
 0xa30   : > { %3987 = vrot.lane.b32.xlu1 %v3986_v34, %s4239_s26 }
 0xa33   : > { %3982 = vrot.lane.b32.xlu0 %v3981_v21, %s4239_s26 }
 0xa34   : > { %3997 = vrot.lane.b32.xlu1 %v3996_v3, %s4240_s27 }
 0xa37   : > { %3992 = vrot.lane.b32.xlu0 %v3991_v36, %s4240_s27 }
 0xa7b   : > { %v2662_v31 = vpop.xlane.xlu0 %2661 }
 0xa7c   : > { %4191 = vrcp.f32 %v2662_v31 }
 0xa7d   : > { %v2665_v59 = vpop.xlane.xlu1 %2664 }
 0xa7e   : > { %4193 = vrcp.f32 %v2665_v59 }
 0xa86   : > { %v4192_v15 = vpop.eup %4191 }
 0xa87   : > { %v2692_v56 = vmul.f32 %v4192_v15, %v5030_v8 }
 0xa88   : > { %v4194_v7 = vpop.eup %4193 }
 0xa89   : > { %v2693_v14 = vmul.f32 %v4194_v7, %v5034_v12 }
 0xa8b   : > { %v2700_v43 = vpack.c.bf16 %v2693_v14, %v2692_v56 }
 0xa8d   : > { %3906 = vmatmul.mubr.msk.bf16.vlgmr.msra.gmra.mrb[76].mxu1 %vm835_vm1, %v2700_v43  ;;  %v2677_v35 = vpop.xlane.xlu1 %2676 }
 0xa8e   : > { %3918 = vmatpush3.bf16.msra.mxu1 %v2805_v25  ;;  %3921 = vmatprep.mubr.msk.bf16.mxu1 %vm4237_vm0, %v4236_v53  ;;  %4195 = vrcp.f32 %v2677_v35 }
 0xa8f   : > { %3919 = vmatprep.subr.bf16.mxu1 %v4236_v53 }
 0xa96   : > { %v2671_v5 = vpop.xlane.xlu1 %2670 }
 0xa98   : > { %v4196_v3 = vpop.eup %4195 }
 0xa99   : > { %v2697_v10 = vmul.f32 %v4196_v3, %v5038_v6 }
 0xa9a   : > { %v2674_v36 = vpop.xlane.xlu0 %2673 }
 0xa9b   : > { %4197 = vrcp.f32 %v2674_v36 }
 0xa9c   : > { %4199 = vrcp.f32 %v2671_v5 }
 0xa9e   : > { %v2668_v19 = vpop.xlane.xlu0 %2667 }
 0xa9f   : > { %4201 = vrcp.f32 %v2668_v19 }
 0xaa2   : > { %v2680_v32 = vpop.xlane.xlu0 %2679 }
 0xaa3   : > { %4203 = vrcp.f32 %v2680_v32 }
 0xaa4   : > { %v2683_v22 = vpop.xlane.xlu1 %2682 }
 0xaa5   : > { %v4198_v21 = vpop.eup %4197  ;;  %4205 = vrcp.f32 %v2683_v22 }
 0xaa6   : > { %v2696_v47 = vmul.f32 %v4198_v21, %v4184_v63  ;;  %v2807_v34 = vpop.permute.xlu0 %2806  ;;  %v4200_v8 = vpop.eup %4199  ;;  %v4070_v63 = vld [vmem:[%s5230_s6 + $0x18] sm:$0xff]  }
 0xaa7   : > { %3920 = vmatpush3.bf16.msra.mxu1 %v2807_v34  ;;  %v2695_v37 = vmul.f32 %v4200_v8, %v5042_v28  ;;  %v4067_v28 = vld [vmem:[%s5230_s6] sm:$0xff]  }
 0xaa8   : > { %v2702_v12 = vpack.c.bf16 %v2697_v10, %v2696_v47  ;;  %v2857_v42 = vpop.permute.xlu1 %2856  ;;  %3933 = vmatprep.subr.bf16.mxu1 %v4067_v28 }
 0xaa9   : > { %v4202_v46 = vpop.eup %4201 }
 0xaaa   : > { %v2694_v62 = vmul.f32 %v4202_v46, %v4186_v38  ;;  %3922 = vmatmul.mubr.msk.bf16.vlgmr.msra.gmra.mrb[80].mxu1 %vm835_vm1, %v2702_v12  ;;  %v4072_v38 = vld [vmem:[%s5230_s6 + $0x28] sm:$0xff]   ;;  %v3973_v14 = vpop.permute.xlu0 %3972 }
 0xaab   : > { %3934 = vmatpush3.bf16.msra.mxu1 %v4067_v28  ;;  %v3975_v5 = vunpack.i.h.bf16 %v3973_v14  ;;  %v3974_v36 = vunpack.i.l.bf16 %v3973_v14 }
 0xaac   : > { %v2701_v24 = vpack.c.bf16 %v2695_v37, %v2694_v62  ;;  %3935 = vmatprep.subr.bf16.mxu1 %v4068_v13  ;;  %v3978_v12 = vpop.permute.xlu1 %3977 }
 0xaad   : > { %v4204_v17 = vpop.eup %4203  ;;  %v3001_v40 = vsel %vm835_vm1, %v4690_v61, %v3975_v5  ;;  %v3000_v60 = vsel %vm835_vm1, %v4688_v55, %v3974_v36  ;;  %v3980_v55 = vunpack.i.h.bf16 %v3978_v12  ;;  %v4224_v36 = vld [vmem:[%s4361_s14] sm:$0xff]  }
 0xaae   : > { %3914 = vmatmul.mubr.msk.bf16.vlgmr.msra.gmra.mrb[76].mxu0 %vm835_vm1, %v2701_v24  ;;  %v2698_v52 = vmul.f32 %v4204_v17, %v5051_v41  ;;  %v3983_v43 = vpop.permute.xlu0 %3982 }
 0xaaf   : > { %v4206_v30 = vpop.eup %4205  ;;  %3926 = vmatpush3.bf16.msra.mxu0 %v2855_v54  ;;  %3929 = vmatprep.mubr.msk.bf16.mxu0 %vm4237_vm0, %v4236_v53  ;;  %v3985_v19 = vunpack.i.h.bf16 %v3983_v43  ;;  %v3984_v32 = vunpack.i.l.bf16 %v3983_v43 }
 0xab0   : > { %v2699_v6 = vmul.f32 %v4206_v30, %v4190_v16  ;;  %3927 = vmatprep.subr.bf16.mxu0 %v4236_v53  ;;  %v4069_v53 = vld [vmem:[%s5230_s6 + $0x10] sm:$0xff]   ;;  %3936 = vmatpush3.bf16.msra.mxu1 %v4068_v13  ;;  %v3988_v46 = vpop.permute.xlu1 %3987  ;;  %v3979_v30 = vunpack.i.l.bf16 %v3978_v12 }
 0xab1   : > { %3937 = vmatprep.subr.bf16.mxu1 %v4069_v53  ;;  %v3009_v21 = vsel %vm3008_vm2, %v3000_v60, %v3984_v32  ;;  %v3010_v10 = vsel %vm3008_vm2, %v3001_v40, %v3985_v19  ;;  %v403_v40 = vunpack.c.h.bf16 %v4224_v36 }
 0xab2   : > { %v2703_v26 = vpack.c.bf16 %v2699_v6, %v2698_v52  ;;  %v3993_v35 = vpop.permute.xlu0 %3992 }
 0xab3   : > { %3928 = vmatpush3.bf16.msra.mxu0 %v2857_v42  ;;  %v3995_v62 = vunpack.i.h.bf16 %v3993_v35  ;;  %v3994_v61 = vunpack.i.l.bf16 %v3993_v35  ;;  %v3478_v35 = vld [vmem:[%s5231_s7] ss:$0 sm:$0xff] }
 0xab4   : > { %3938 = vmatpush3.bf16.msra.mxu1 %v4069_v53  ;;  %v3998_v6 = vpop.permute.xlu1 %3997 }
 0xab5   : > { %3939 = vmatprep.subr.bf16.mxu1 %v4070_v63  ;;  %v3005_v42 = vsel %vm835_vm1, %v4694_v0, %v3995_v62  ;;  %v3003_v0 = vsel %vm835_vm1, %v4686_v50, %v3980_v55 }
 0xab6   : > { %3930 = vmatmul.mubr.msk.bf16.vlgmr.msra.gmra.mrb[80].mxu0 %vm835_vm1, %v2703_v26  ;;  %v3004_v26 = vsel %vm835_vm1, %v4692_v58, %v3994_v61  ;;  %v3002_v58 = vsel %vm835_vm1, %v4684_v45, %v3979_v30  ;;  %v4225_v61 = vld [vmem:[%s4361_s14 + $0x10] sm:$0xff]  }
 0xab7   : > { %v406_v55 = vunpack.c.l.bf16 %v4225_v61 }
 0xab8   : > { %3940 = vmatpush3.bf16.msra.mxu1 %v4070_v63 }
 0xab9   : > { %3941 = vmatprep.subr.bf16.mxu1 %v4071_v23 }
 0xabc   : > { %3942 = vmatpush3.bf16.msra.mxu1 %v4071_v23 }
 0xabd   : > { %3943 = vmatprep.subr.bf16.mxu1 %v4072_v38 }
 0xac0   : > { %3944 = vmatpush3.bf16.msra.mxu1 %v4072_v38 }
 0xac1   : > { %3945 = vmatprep.subr.bf16.mxu1 %v4073_v20 }
 0xac4   : > { %3946 = vmatpush3.bf16.msra.mxu1 %v4073_v20 }
 0xac5   : > { %3947 = vmatprep.subr.bf16.mxu1 %v4074_v18 }
 0xac8   : > { %3948 = vmatpush3.bf16.msra.mxu1 %v4074_v18 }
 0xb60   : > { %v2747_v1 = vpop.f32.mrb[76].mxu1 }
 0xb61   : > { %v3907_v49 = vpop.f32.mrb[77].mxu1 }
 0xb62   : > { %v2750_v48 = vpop.f32.mrb[78].mxu1  ;;  %v3989_v49 = vunpack.i.l.bf16 %v3988_v46 }
 0xb63   : > { %v4001_v39 = vpack.i.bf16 %v2750_v48, %v2747_v1  ;;  %v3908_v29 = vpop.f32.mrb[79].mxu1  ;;  %v3990_v1 = vunpack.i.h.bf16 %v3988_v46 }
 0xb64   : > { %v3011_v18 = vsel %vm3008_vm2, %v3002_v58, %v3989_v49 }
 0xb65   : > { %4002 = vrot.lane.b32.xlu0 %v4001_v39, %s4238_s25 }
 0xb69   : > { %4007 = vrot.lane.b32.xlu0 %v4006_v51, %s4239_s26 }
 0xb7d   : > { %v2847_v33 = vpop.f32.mrb[80].mxu1 }
 0xb7e   : > { %v3923_v51 = vpop.f32.mrb[81].mxu1 }
 0xb7f   : > { %v2850_v44 = vpop.f32.mrb[82].mxu1 }
 0xb80   : > { %v4021_v27 = vpack.i.bf16 %v2850_v44, %v2847_v33  ;;  %v3924_v41 = vpop.f32.mrb[83].mxu1  ;;  %v3012_v33 = vsel %vm3008_vm2, %v3003_v0, %v3990_v1 }
 0xb81   : > { %v2797_v9 = vpop.f32.mrb[76].mxu0 }
 0xb82   : > { %4022 = vrot.lane.b32.xlu0 %v4021_v27, %s4238_s25  ;;  %v3915_v16 = vpop.f32.mrb[77].mxu0 }
 0xb83   : > { %v2800_v11 = vpop.f32.mrb[78].mxu0  ;;  %v3999_v16 = vunpack.i.l.bf16 %v3998_v6 }
 0xb84   : > { %v4011_v25 = vpack.i.bf16 %v2800_v11, %v2797_v9  ;;  %v3916_v54 = vpop.f32.mrb[79].mxu0  ;;  %v4000_v9 = vunpack.i.h.bf16 %v3998_v6 }
 0xb85   : > { %v3006_v54 = vsel %vm835_vm1, %v4696_v2, %v3999_v16  ;;  %v402_v2 = vunpack.c.l.bf16 %v4224_v36 }
 0xb86   : > { %4012 = vrot.lane.b32.xlu1 %v4011_v25, %s4238_s25  ;;  %v3007_v25 = vsel %vm835_vm1, %v4698_v4, %v4000_v9  ;;  %v4223_v4 = vld [vmem:[%s4361_s14 + $0x8] sm:$0xff]  }
 0xb87   : > { %v404_v5 = vunpack.c.l.bf16 %v4223_v4 }
 0xb89   : > { %v2897_v31 = vpop.f32.mrb[80].mxu0 }
 0xb8a   : > { %4017 = vrot.lane.b32.xlu1 %v4016_v57, %s4239_s26  ;;  %v3931_v59 = vpop.f32.mrb[81].mxu0 }
 0xb8b   : > { %v2900_v15 = vpop.f32.mrb[82].mxu0 }
 0xb8c   : > { %v4026_v7 = vpack.i.bf16 %v2900_v15, %v2897_v31  ;;  %v3932_v56 = vpop.f32.mrb[83].mxu0 }
 0xb8e   : > { %4027 = vrot.lane.b32.xlu1 %v4026_v7, %s4238_s25 }
 0xbd7   : > { %v4003_v3 = vpop.permute.xlu0 %4002 }
 0xbd8   : > { %v4005_v57 = vunpack.i.h.bf16 %v4003_v3  ;;  %v4004_v22 = vunpack.i.l.bf16 %v4003_v3 }
 0xbda   : > { %v3018_v47 = vsel %vm3017_vm3, %v3009_v21, %v4004_v22  ;;  %v3019_v34 = vsel %vm3017_vm3, %v3010_v10, %v4005_v57 }
 0xbdb   : > { %v3026_v8 = vpack.c.bf16 %v3019_v34, %v3018_v47  ;;  %v4008_v37 = vpop.permute.xlu0 %4007 }
 0xbdc   : > { %v4010_v24 = vunpack.i.h.bf16 %v4008_v37  ;;  %v4009_v17 = vunpack.i.l.bf16 %v4008_v37 }
 0xbdd   : > { %3949 = vmatprep.mubr.bf16.mxu1 %v3026_v8  ;;  %v405_v8 = vunpack.c.h.bf16 %v4223_v4 }
 0xbde   : > { %v3014_v53 = vsel %vm3008_vm2, %v3005_v42, %v4010_v24  ;;  %v3013_v48 = vsel %vm3008_vm2, %v3004_v26, %v4009_v17  ;;  %v407_v24 = vunpack.c.h.bf16 %v4225_v61  ;;  %v4226_v42 = vld [vmem:[%s4361_s14 + $0x18] sm:$0xff]  }
 0xbdf   : > { %v409_v26 = vunpack.c.h.bf16 %v4226_v42  ;;  %v408_v1 = vunpack.c.l.bf16 %v4226_v42 }
 0xbf4   : > { %v4023_v52 = vpop.permute.xlu0 %4022 }
 0xbf5   : > { %v4025_v28 = vunpack.i.h.bf16 %v4023_v52  ;;  %v4024_v13 = vunpack.i.l.bf16 %v4023_v52 }
 0xbf7   : > { %v3022_v39 = vsel %vm3017_vm3, %v3013_v48, %v4024_v13  ;;  %v3023_v29 = vsel %vm3017_vm3, %v3014_v53, %v4025_v28 }
 0xbf8   : > { %v4013_v63 = vpop.permute.xlu1 %4012  ;;  %v3028_v23 = vpack.c.bf16 %v3023_v29, %v3022_v39 }
 0xbf9   : > { %v4015_v38 = vunpack.i.h.bf16 %v4013_v63  ;;  %v4014_v20 = vunpack.i.l.bf16 %v4013_v63 }
 0xbfb   : > { %v3021_v51 = vsel %vm3017_vm3, %v3012_v33, %v4015_v38  ;;  %v3020_v44 = vsel %vm3017_vm3, %v3011_v18, %v4014_v20 }
 0xbfc   : > { %v3027_v27 = vpack.c.bf16 %v3021_v51, %v3020_v44  ;;  %v4018_v41 = vpop.permute.xlu1 %4017 }
 0xbfd   : > { %v4020_v11 = vunpack.i.h.bf16 %v4018_v41  ;;  %v4019_v50 = vunpack.i.l.bf16 %v4018_v41 }
 0xbfe   : > { %3950 = vmatmul.mubr.bf16.vlgmr.msra.gmra.mrb[84].mxu1 %v3027_v27 }
 0xbff   : > { %3953 = vmatprep.mubr.bf16.mxu1 %v3028_v23  ;;  %v3016_v15 = vsel %vm3008_vm2, %v3007_v25, %v4020_v11  ;;  %v3015_v7 = vsel %vm3008_vm2, %v3006_v54, %v4019_v50 }
 0xc00   : > { %v4028_v45 = vpop.permute.xlu1 %4027 }
 0xc01   : > { %v4030_v31 = vunpack.i.h.bf16 %v4028_v45  ;;  %v4029_v59 = vunpack.i.l.bf16 %v4028_v45 }
 0xc03   : > { %v3024_v56 = vsel %vm3017_vm3, %v3015_v7, %v4029_v59  ;;  %v3025_v14 = vsel %vm3017_vm3, %v3016_v15, %v4030_v31 }
 0xc04   : > { %v3029_v43 = vpack.c.bf16 %v3025_v14, %v3024_v56 }
 0xc06   : > { %3954 = vmatmul.mubr.bf16.gmra.mrb[88].mxu1 %v3029_v43 }
 0xcd1   : > { %v3951_v19 = vpop.f32.mrb[84].mxu1 }
 0xcd2   : > { %v3144_v32 = vadd.f32 %v3951_v19, %v3478_v35  ;;  %v3135_v3 = vpop.f32.mrb[85].mxu1 }
 0xcd3   : > { %v3136_v60 = vadd.f32 %v3478_v35, %v3135_v3  ;;  %v3952_v57 = vpop.f32.mrb[86].mxu1 }
 0xcd4   : > { %v3168_v22 = vadd.f32 %v3144_v32, %v404_v5  ;;  %v3138_v21 = vpop.f32.mrb[87].mxu1  ;;  %v3147_v12 = vadd.f32 %v3952_v57, %v3478_v35 }
 0xcd5   : > { %v3166_v10 = vadd.f32 %v3136_v60, %v402_v2  ;;  %v3139_v47 = vadd.f32 %v3478_v35, %v3138_v21 }
 0xcd6   : > { %3180 = vadd.xlane.f32.xlu0 %v3168_v22  ;;  %v3169_v17 = vadd.f32 %v3147_v12, %v405_v8 }
 0xcd7   : > { %v3167_v34 = vadd.f32 %v3139_v47, %v403_v40 }
 0xcd9   : > { %3178 = vadd.xlane.f32.xlu1 %v3167_v34  ;;  %v3955_v46 = vpop.f32.mrb[88].mxu1 }
 0xcda   : > { %v3151_v37 = vpop.f32.mrb[89].mxu1  ;;  %3176 = vadd.xlane.f32.xlu0 %v3166_v10  ;;  %v3160_v49 = vadd.f32 %v3955_v46, %v3478_v35 }
 0xcdb   : > { %v3956_v62 = vpop.f32.mrb[90].mxu1  ;;  %v3152_v30 = vadd.f32 %v3478_v35, %v3151_v37 }
 0xcdc   : > { %v3154_v6 = vpop.f32.mrb[91].mxu1  ;;  %v3163_v28 = vadd.f32 %v3956_v62, %v3478_v35  ;;  %v3172_v39 = vadd.f32 %v3160_v49, %v408_v1 }
 0xcdd   : > { %v3155_v52 = vadd.f32 %v3478_v35, %v3154_v6  ;;  %v3170_v53 = vadd.f32 %v3152_v30, %v406_v55 }
 0xcde   : > { %3182 = vadd.xlane.f32.xlu0 %v3169_v17  ;;  %v3173_v48 = vadd.f32 %v3163_v28, %v409_v26 }
 0xcdf   : > { %v3171_v13 = vadd.f32 %v3155_v52, %v407_v24 }
 0xce1   : > { %3186 = vadd.xlane.f32.xlu1 %v3171_v13 }
 0xce2   : > { %3184 = vadd.xlane.f32.xlu0 %v3170_v53 }
 0xce5   : > { %3190 = vadd.xlane.f32.xlu1 %v3173_v48 }
 0xce6   : > { %3188 = vadd.xlane.f32.xlu0 %v3172_v39 }
 0xd63   : > { %v3181_v29 = vpop.xlane.xlu0 %3180 }
 0xd64   : > { %v3195_v63 = vmul.f32 0.0078125, %v3181_v29 }
 0xd66   : > { %v5175_v23 = vsub.f32 %v3168_v22, %v3195_v63  ;;  %v3179_v58 = vpop.xlane.xlu1 %3178 }
 0xd67   : > { %v3177_v0 = vpop.xlane.xlu0 %3176  ;;  %v3194_v33 = vmul.f32 0.0078125, %v3179_v58 }
 0xd68   : > { %v3193_v38 = vmul.f32 0.0078125, %v3177_v0  ;;  %v3211_v20 = vmul.f32 %v5175_v23, %v5175_v23 }
 0xd69   : > { %v5183_v16 = vsub.f32 %v3167_v34, %v3194_v33 }
 0xd6a   : > { %v5179_v18 = vsub.f32 %v3166_v10, %v3193_v38  ;;  %3221 = vadd.xlane.f32.xlu0 %v3211_v20 }
 0xd6b   : > { %v3183_v51 = vpop.xlane.xlu0 %3182  ;;  %v3210_v15 = vmul.f32 %v5183_v16, %v5183_v16 }
 0xd6c   : > { %v3196_v44 = vmul.f32 0.0078125, %v3183_v51  ;;  %v3209_v27 = vmul.f32 %v5179_v18, %v5179_v18 }
 0xd6e   : > { %v3204_v41 = vsub.f32 %v3169_v17, %v3196_v44  ;;  %v3187_v9 = vpop.xlane.xlu1 %3186  ;;  %3217 = vadd.xlane.f32.xlu0 %v3209_v27 }
 0xd6f   : > { %v3185_v11 = vpop.xlane.xlu0 %3184  ;;  %v3198_v50 = vmul.f32 0.0078125, %v3187_v9 }
 0xd70   : > { %v3197_v45 = vmul.f32 0.0078125, %v3185_v11  ;;  %v3212_v25 = vmul.f32 %v3204_v41, %v3204_v41 }
 0xd71   : > { %v5189_v7 = vsub.f32 %v3171_v13, %v3198_v50 }
 0xd72   : > { %v5185_v54 = vsub.f32 %v3170_v53, %v3197_v45  ;;  %v3191_v31 = vpop.xlane.xlu1 %3190  ;;  %3223 = vadd.xlane.f32.xlu1 %v3212_v25 }
 0xd73   : > { %v3189_v59 = vpop.xlane.xlu0 %3188  ;;  %v3200_v56 = vmul.f32 0.0078125, %v3191_v31  ;;  %v3214_v5 = vmul.f32 %v5189_v7, %v5189_v7 }
 0xd74   : > { %v3199_v14 = vmul.f32 0.0078125, %v3189_v59  ;;  %v3213_v43 = vmul.f32 %v5185_v54, %v5185_v54 }
 0xd75   : > { %v5195_v4 = vsub.f32 %v3173_v48, %v3200_v56  ;;  %v3487_v48 = vld [vmem:[%s5232_s8] ss:$0 sm:$0xff] }
 0xd76   : > { %v5193_v35 = vsub.f32 %v3172_v39, %v3199_v14  ;;  %3219 = vadd.xlane.f32.xlu1 %v3210_v15  ;;  %3225 = vadd.xlane.f32.xlu0 %v3213_v43 }
 0xd77   : > { %v3216_v2 = vmul.f32 %v5195_v4, %v5195_v4 }
 0xd78   : > { %v3215_v36 = vmul.f32 %v5193_v35, %v5193_v35 }
 0xd7a   : > { %3227 = vadd.xlane.f32.xlu1 %v3214_v5  ;;  %3229 = vadd.xlane.f32.xlu0 %v3215_v36 }
 0xd7e   : > { %3231 = vadd.xlane.f32.xlu1 %v3216_v2 }
 0xdf7   : > { %v3222_v19 = vpop.xlane.xlu0 %3221 }
 0xdf8   : > { %v3235_v32 = vmul.f32 0.0078125, %v3222_v19 }
 0xdfa   : > { %v3243_v57 = vadd.f32 1e-05, %v3235_v32 }
 0xdfb   : > { %v3218_v3 = vpop.xlane.xlu0 %3217 }
 0xdfc   : > { %v3233_v40 = vmul.f32 0.0078125, %v3218_v3 }
 0xdfe   : > { %v3241_v60 = vadd.f32 1e-05, %v3233_v40 }
 0xdff   : > { %v3224_v22 = vpop.xlane.xlu1 %3223 }
 0xe00   : > { %v3236_v21 = vmul.f32 0.0078125, %v3224_v22  ;;  %4207 = vrsqrt.f32 %v3241_v60 }
 0xe01   : > { %4209 = vrsqrt.f32 %v3243_v57 }
 0xe02   : > { %v3244_v10 = vadd.f32 1e-05, %v3236_v21 }
 0xe03   : > { %v3220_v47 = vpop.xlane.xlu1 %3219  ;;  %v3226_v34 = vpop.xlane.xlu0 %3225 }
 0xe04   : > { %4211 = vrsqrt.f32 %v3244_v10  ;;  %v3234_v8 = vmul.f32 0.0078125, %v3220_v47  ;;  %v3237_v12 = vmul.f32 0.0078125, %v3226_v34 }
 0xe06   : > { %v3242_v46 = vadd.f32 1e-05, %v3234_v8  ;;  %v3245_v37 = vadd.f32 1e-05, %v3237_v12 }
 0xe07   : > { %v3228_v62 = vpop.xlane.xlu1 %3227  ;;  %v3230_v61 = vpop.xlane.xlu0 %3229 }
 0xe08   : > { %4213 = vrsqrt.f32 %v3242_v46  ;;  %v3238_v24 = vmul.f32 0.0078125, %v3228_v62  ;;  %v3239_v17 = vmul.f32 0.0078125, %v3230_v61 }
 0xe09   : > { %4215 = vrsqrt.f32 %v3245_v37 }
 0xe0a   : > { %v3246_v55 = vadd.f32 1e-05, %v3238_v24  ;;  %v3247_v30 = vadd.f32 1e-05, %v3239_v17  ;;  %v4208_v52 = vpop.eup %4207 }
 0xe0b   : > { %v3232_v6 = vpop.xlane.xlu1 %3231  ;;  %v4210_v26 = vpop.eup %4209  ;;  %v3257_v1 = vmul.f32 %v4208_v52, %v5179_v18  ;;  %v3488_v18 = vld [vmem:[%s5233_s9] ss:$0 sm:$0xff] }
 0xe0c   : > { %4217 = vrsqrt.f32 %v3246_v55  ;;  %v3240_v42 = vmul.f32 0.0078125, %v3232_v6  ;;  %v3259_v53 = vmul.f32 %v4210_v26, %v5175_v23 }
 0xe0d   : > { %4219 = vrsqrt.f32 %v3247_v30  ;;  %v3271_v0 = vmul.f32 %v3487_v48, %v3257_v1 }
 0xe0e   : > { %v4212_v28 = vpop.eup %4211  ;;  %v3248_v13 = vadd.f32 1e-05, %v3240_v42  ;;  %v3273_v38 = vmul.f32 %v3487_v48, %v3259_v53 }
 0xe0f   : > { %v3260_v49 = vmul.f32 %v4212_v28, %v3204_v41  ;;  %v3285_v27 = vadd.f32 %v3488_v18, %v3271_v0 }
 0xe10   : > { %4221 = vrsqrt.f32 %v3248_v13 }
 0xe11   : > { %v3274_v29 = vmul.f32 %v3487_v48, %v3260_v49 }
 0xe12   : > { %v4214_v39 = vpop.eup %4213 }
 0xe13   : > { %v4216_v63 = vpop.eup %4215  ;;  %v3258_v58 = vmul.f32 %v4214_v39, %v5183_v16  ;;  %v3288_v51 = vadd.f32 %v3488_v18, %v3274_v29  ;;  %v3287_v16 = vadd.f32 %v3488_v18, %v3273_v38 }
 0xe14   : > { %v3261_v20 = vmul.f32 %v4216_v63, %v5185_v54 }
 0xe15   : > { %v3272_v23 = vmul.f32 %v3487_v48, %v3258_v58  ;;  %v3518_v31 = vpack.c.bf16 %v3288_v51, %v3287_v16 }
 0xe16   : > { %v4218_v33 = vpop.eup %4217  ;;  %v3275_v9 = vmul.f32 %v3487_v48, %v3261_v20 }
 0xe17   : > { %v4220_v44 = vpop.eup %4219  ;;  %v3286_v41 = vadd.f32 %v3488_v18, %v3272_v23  ;;  %v3262_v11 = vmul.f32 %v4218_v33, %v5189_v7  ;;  %3530 = vst [vmem:[%s391_s17 + $0x8] sm:$0xff] %v3518_v31  }
 0xe18   : > { %v3263_v50 = vmul.f32 %v4220_v44, %v5193_v35  ;;  %v3289_v59 = vadd.f32 %v3488_v18, %v3275_v9 }
 0xe19   : > { %v3513_v45 = vpack.c.bf16 %v3286_v41, %v3285_v27  ;;  %v3276_v25 = vmul.f32 %v3487_v48, %v3262_v11 }
 0xe1a   : > { %v4222_v54 = vpop.eup %4221  ;;  %v3277_v56 = vmul.f32 %v3487_v48, %v3263_v50 }
 0xe1b   : > { %3514 = vst [vmem:[%s391_s17] sm:$0xff] %v3513_v45   ;;  %v3290_v15 = vadd.f32 %v3488_v18, %v3276_v25  ;;  %v3264_v14 = vmul.f32 %v4222_v54, %v5195_v4 }
 0xe1c   : > { %v3291_v5 = vadd.f32 %v3488_v18, %v3277_v56 }
 0xe1d   : > { %v3523_v7 = vpack.c.bf16 %v3290_v15, %v3289_v59  ;;  %v3278_v43 = vmul.f32 %v3487_v48, %v3264_v14 }
 0xe1f   : > { %3531 = vst [vmem:[%s391_s17 + $0x10] sm:$0xff] %v3523_v7   ;;  %v3292_v36 = vadd.f32 %v3488_v18, %v3278_v43 }
 0xe21   : > { %v3528_v2 = vpack.c.bf16 %v3292_v36, %v3291_v5 }
 0xe23   : > { %3532 = vst [vmem:[%s391_s17 + $0x18] sm:$0xff] %v3528_v2  }
 0xe24 PF: > { %s20_s13 = sadd.s32 1, %s4233_s13  }
 0xe25   : > { %p17_p4 = scmp.ge.s32.totalorder %s20_s13, 4  }
 0xe27   :  { %19 = sbr.rel (!%p17_p4) target bundleno = 1 (0x1), region = 93 }

</bundles_post_ra>
